<compile_context>
chip_gen: v7x
topology: tpu7x:2x2x1
jax: 0.10.0
libtpu: 0.0.40
codegen_flags: <defaults>
</compile_context>

<pallas_src>
import functools
import math

import jax
import jax.numpy as jnp
from jax.experimental import pallas as pl
from jax.experimental.pallas import tpu as pltpu

NEG_SLOPE = 0.01                     # nn.LeakyReLU default
BN_EPS = 1e-5                        # nn.BatchNorm2d default
_VMEM_LIMIT = 48 * 1024 * 1024       # scoped VMEM limit handed to Mosaic
_VMEM_BUDGET = 24 * 1024 * 1024      # soft per-step budget for the tile picker
_MAX_TILE_ROWS = 8192                # max MXU M-rows per tile


def _divisors_desc(n):
    return sorted((t for t in range(1, n + 1) if n % t == 0), reverse=True)


def _pick_row_tile(hout, wout, n_batch, vmem_of_tile):
    """Largest divisor of `hout` whose tile fits the VMEM budget, keeps the
    MXU M-dimension modest, and (when possible) leaves >= 4 grid steps."""
    divs = _divisors_desc(hout)
    for need_steps in (True, False):
        for t in divs:
            if t * wout > _MAX_TILE_ROWS:
                continue
            if vmem_of_tile(t) > _VMEM_BUDGET:
                continue
            if need_steps and n_batch * (hout // t) < 4:
                continue
            return t
    return 1


def _conv_tile_vmem(tr, *, hr, wp, wout, cin, cout, in_bytes, out_bytes):
    m = tr * wout
    io = (tr + hr) * wp * cin * in_bytes + m * cout * out_bytes + 2 * cout * 4
    scratch = (tr + hr) * wp * cin * 2            # bf16 staging tile
    resident = 9 * cin * cout * 2 + cout * 4 + 2 * cin * 4
    acc = m * cout * 4                            # f32 accumulator
    return 2 * io + scratch + resident + acc      # 2x: double-buffered pipeline


# ----------------------------------------------------------------------------
# Conv(3x3) + bias + LeakyReLU + per-tile BN-stat epilogue.  Optionally applies
# a per-channel affine (the previous BN) to the input tile in VMEM before
# convolving -- with a border mask so zero padding stays exact.
# ----------------------------------------------------------------------------
def _conv_tap_kernel(x_ref, halo_ref, w_ref, b_ref, aff_ref,
                     o_ref, st_ref, xt_ref, *,
                     kh, kw, dil, tr, hin, win, wout, wp, pad, hr,
                     apply_affine):
    cout = o_ref.shape[-1]
    row0 = pl.program_id(1) * tr                         # first padded row of tile

    if apply_affine:
        aff = aff_ref[...]                               # (2, Cin) f32
        scale = aff[0:1, :].reshape(1, 1, -1)            # (1, 1, Cin)
        shift = aff[1:2, :].reshape(1, 1, -1)
        col_ids = jax.lax.broadcasted_iota(jnp.int32, (1, wp, 1), 1)
        col_ok = (col_ids >= pad) & (col_ids < win + pad)

        def stage(v, nrows, roff):
            # Folded previous-BN affine, applied only inside the real image so
            # the zero padding stays exactly zero; then bf16 for the MXU.
            rid = roff + jax.lax.broadcasted_iota(jnp.int32, (nrows, 1, 1), 0)
            ok = (rid >= pad) & (rid < hin + pad) & col_ok
            v = v.astype(jnp.float32) * scale + jnp.where(ok, shift, 0.0)
            return v.astype(xt_ref.dtype)
    else:
        def stage(v, nrows, roff):                       # conv1: plain bf16 cast
            return v.astype(xt_ref.dtype)

    # Assemble the (tr + halo) padded-input rows for this tile in VMEM.
    xt_ref[0:tr, :, :] = stage(x_ref[0], tr, row0)
    xt_ref[tr:tr + hr, :, :] = stage(halo_ref[0], hr, row0 + tr)

    # Per-tap accumulation on the MXU: (tr*Wout, Cin) @ (Cin, Cout), f32 accum.
    acc = jnp.zeros((tr * wout, cout), jnp.float32)
    for i in range(kh):
        for j in range(kw):
            patch = xt_ref[i * dil:i * dil + tr, j * dil:j * dil + wout, :]
            acc += jnp.dot(patch.reshape(tr * wout, patch.shape[-1]),
                           w_ref[i * kw + j],
                           preferred_element_type=jnp.float32)

    y = acc + b_ref[...]                                 # fused bias
    y = jnp.where(y >= 0.0, y, NEG_SLOPE * y)            # fused LeakyReLU
    o_ref[0] = y.reshape(tr, wout, cout).astype(o_ref.dtype)

    # Epilogue: per-channel partial sums feeding the following BatchNorm,
    # taken from the f32 values (before the bf16 store).
    st_ref[0, 0:1, :] = jnp.sum(y, axis=0, keepdims=True)
    st_ref[0, 1:2, :] = jnp.sum(y * y, axis=0, keepdims=True)


def conv3x3_act_stats(x, w_taps, bias, in_affine, *, dilation):
    """x: (N, H, W, Cin) NHWC. w_taps: (9, Cin, Cout) bf16. bias: (1, Cout) f32.
    in_affine: (2, Cin) f32 per-channel (scale, shift) folded into the input
    read (the previous BatchNorm), or None.
    Returns (y, stats): y = LeakyReLU(conv(x') + b) in NHWC bf16,
    stats = per-row-tile (sum, sum_sq) of y (f32), shape (N*T, 2, Cout)."""
    N, H, W, Cin = x.shape
    Cout = w_taps.shape[-1]
    kh = kw = 3
    d = dilation
    pad = 1                                   # matches nn.Conv2d(..., padding=1)
    hr = (kh - 1) * d                         # halo rows below each tile
    Hout = H + 2 * pad - (kh - 1) * d
    Wout = W + 2 * pad - (kw - 1) * d
    assert Hout > 0 and Wout > 0, "dilation too large for this spatial size"
    Hp, Wp = H + 2 * pad, W + 2 * pad

    vmem_of_tile = functools.partial(
        _conv_tile_vmem, hr=hr, wp=Wp, wout=Wout, cin=Cin, cout=Cout,
        in_bytes=x.dtype.itemsize, out_bytes=2)
    tr = _pick_row_tile(Hout, Wout, N, vmem_of_tile)
    T = Hout // tr

    xp = jnp.pad(x, ((0, 0), (pad, pad), (pad, pad), (0, 0)))
    # Tiny pre-extracted halo (hr rows per tile) so BlockSpecs stay non-overlapping.
    halo = jnp.stack([xp[:, t * tr + tr:t * tr + tr + hr] for t in range(T)],
                     axis=1).reshape(N * T, hr, Wp, Cin)

    apply_affine = in_affine is not None
    if in_affine is None:
        in_affine = jnp.zeros((2, Cin), jnp.float32)      # unused placeholder

    kern = functools.partial(_conv_tap_kernel, kh=kh, kw=kw, dil=d, tr=tr,
                             hin=H, win=W, wout=Wout, wp=Wp, pad=pad, hr=hr,
                             apply_affine=apply_affine)

    y, stats = pl.pallas_call(
        kern,
        out_shape=(jax.ShapeDtypeStruct((N, Hout, Wout, Cout), jnp.bfloat16),
                   jax.ShapeDtypeStruct((N * T, 2, Cout), jnp.float32)),
        grid=(N, T),
        in_specs=[
            pl.BlockSpec((1, tr, Wp, Cin), lambda n, t: (n, t, 0, 0)),
            pl.BlockSpec((1, hr, Wp, Cin), lambda n, t: (n * T + t, 0, 0, 0)),
            pl.BlockSpec((kh * kw, Cin, Cout), lambda n, t: (0, 0, 0)),
            pl.BlockSpec((1, Cout), lambda n, t: (0, 0)),
            pl.BlockSpec((2, Cin), lambda n, t: (0, 0)),
        ],
        out_specs=(
            pl.BlockSpec((1, tr, Wout, Cout), lambda n, t: (n, t, 0, 0)),
            pl.BlockSpec((1, 2, Cout), lambda n, t: (n * T + t, 0, 0)),
        ),
        scratch_shapes=[pltpu.VMEM((tr + hr, Wp, Cin), jnp.bfloat16)],
        compiler_params=pltpu.CompilerParams(
            dimension_semantics=("parallel", "parallel"),
            vmem_limit_bytes=_VMEM_LIMIT),
    )(xp, halo, w_taps, bias, in_affine)
    return y, stats


# ----------------------------------------------------------------------------
# Final BatchNorm: small row-tiled per-channel scale/shift kernel (bf16 in,
# f32 out).
# ----------------------------------------------------------------------------
def _affine_kernel(x_ref, aff_ref, o_ref):
    aff = aff_ref[...]                                   # (2, C)
    s = aff[0:1, :].reshape(1, 1, -1)
    b = aff[1:2, :].reshape(1, 1, -1)
    o_ref[0] = (x_ref[0].astype(jnp.float32) * s + b).astype(o_ref.dtype)


def apply_channel_affine(x, aff):
    N, H, W, C = x.shape
    in_b = x.dtype.itemsize

    def vmem_of_tile(t):
        return 2 * (t * W * C * (in_b + 4)) + 2 * C * 4

    tr = _pick_row_tile(H, W, N, vmem_of_tile)
    T = H // tr
    return pl.pallas_call(
        _affine_kernel,
        out_shape=jax.ShapeDtypeStruct((N, H, W, C), jnp.float32),
        grid=(N, T),
        in_specs=[pl.BlockSpec((1, tr, W, C), lambda n, t: (n, t, 0, 0)),
                  pl.BlockSpec((2, C), lambda n, t: (0, 0))],
        out_specs=pl.BlockSpec((1, tr, W, C), lambda n, t: (n, t, 0, 0)),
        compiler_params=pltpu.CompilerParams(
            dimension_semantics=("parallel", "parallel"),
            vmem_limit_bytes=_VMEM_LIMIT),
    )(x, aff)


def _bn_affine_from_stats(stats, count, gamma, beta):
    """Turn accumulated (sum, sum_sq) into a per-channel (scale, shift)."""
    tot = jnp.sum(stats, axis=0)                          # (2, C)
    mean = tot[0] / count
    var = jnp.maximum(tot[1] / count - mean * mean, 0.0)  # biased var (training BN)
    s = gamma * jax.lax.rsqrt(var + BN_EPS)
    return jnp.stack([s, beta - mean * s]).astype(jnp.float32)


# ----------------------------------------------------------------------------
# Module forward
# ----------------------------------------------------------------------------
def _to_tap_matrix(w_oihw):
    co, ci, kh, kw = w_oihw.shape
    return jnp.transpose(w_oihw, (2, 3, 1, 0)).reshape(kh * kw, ci, co).astype(jnp.bfloat16)


def double_conv_bn_forward(params, x_nchw, dilation=1):
    x = jnp.transpose(x_nchw, (0, 2, 3, 1)).astype(jnp.float32)   # NCHW -> NHWC (once)

    w1 = _to_tap_matrix(params["conv1"]["w"])
    w2 = _to_tap_matrix(params["conv2"]["w"])
    b1 = params["conv1"]["b"].reshape(1, -1).astype(jnp.float32)
    b2 = params["conv2"]["b"].reshape(1, -1).astype(jnp.float32)

    # conv1 + LeakyReLU; BN1 batch statistics accumulated in the kernel epilogue.
    a1, st1 = conv3x3_act_stats(x, w1, b1, None, dilation=dilation)
    cnt1 = float(a1.shape[0] * a1.shape[1] * a1.shape[2])
    aff1 = _bn_affine_from_stats(st1, cnt1, params["bn1"]["gamma"], params["bn1"]["beta"])

    # conv2 + LeakyReLU with BN1 folded into the input read (no standalone BN1 pass).
    a2, st2 = conv3x3_act_stats(a1, w2, b2, aff1, dilation=dilation)
    cnt2 = float(a2.shape[0] * a2.shape[1] * a2.shape[2])
    aff2 = _bn_affine_from_stats(st2, cnt2, params["bn2"]["gamma"], params["bn2"]["beta"])

    y = apply_channel_affine(a2, aff2)                    # final BN2 normalize (f32)
    return jnp.transpose(y, (0, 3, 1, 2))                 # NHWC -> NCHW (once)


def init_double_conv_bn(key, in_channels, out_channels):
    k1, k2, k3, k4 = jax.random.split(key, 4)

    def conv_init(kw_, kb_, cin, cout, k=3):
        s = 1.0 / math.sqrt(cin * k * k)
        return {"w": jax.random.uniform(kw_, (cout, cin, k, k), jnp.float32, -s, s),
                "b": jax.random.uniform(kb_, (cout,), jnp.float32, -s, s)}

    def bn_init(c):   # PyTorch default: weight=1, bias=0
        return {"gamma": jnp.ones((c,), jnp.float32),
                "beta": jnp.zeros((c,), jnp.float32)}

    return {"conv1": conv_init(k1, k2, in_channels, out_channels),
            "bn1": bn_init(out_channels),
            "conv2": conv_init(k3, k4, out_channels, out_channels),
            "bn2": bn_init(out_channels)}


# ----------------------------------------------------------------------------
# Pure-JAX reference (f32) for a sanity check (matches the PyTorch module:
# padding=1, training-mode BatchNorm).
# ----------------------------------------------------------------------------
def _reference_forward(params, x, dilation=1):
    d = dilation

    def conv(h, w, b):
        y = jax.lax.conv_general_dilated(
            h, w, window_strides=(1, 1), padding=[(1, 1), (1, 1)],
            rhs_dilation=(d, d), dimension_numbers=("NCHW", "OIHW", "NCHW"))
        return y + b[None, :, None, None]

    def lrelu(v):
        return jnp.where(v >= 0, v, NEG_SLOPE * v)

    def bn(h, g, b):
        m = jnp.mean(h, axis=(0, 2, 3), keepdims=True)
        v = jnp.mean((h - m) ** 2, axis=(0, 2, 3), keepdims=True)
        return (h - m) * jax.lax.rsqrt(v + BN_EPS) * g[None, :, None, None] \
            + b[None, :, None, None]

    h = bn(lrelu(conv(x, params["conv1"]["w"], params["conv1"]["b"])),
           params["bn1"]["gamma"], params["bn1"]["beta"])
    h = bn(lrelu(conv(h, params["conv2"]["w"], params["conv2"]["b"])),
           params["bn2"]["gamma"], params["bn2"]["beta"])
    return h


# ----------------------------------------------------------------------------
if __name__ == "__main__":
    in_channels, out_channels = 4, 8
    batch, spatial, dilation = 2, 16, 1

    x = jax.random.normal(jax.random.PRNGKey(0),
                          (batch, in_channels, spatial, spatial), jnp.float32)
    params = init_double_conv_bn(jax.random.PRNGKey(1), in_channels, out_channels)

    fwd = jax.jit(functools.partial(double_conv_bn_forward, dilation=dilation))
    y = jax.block_until_ready(fwd(params, x))

    assert y.shape == (batch, out_channels, spatial, spatial), y.shape
    assert bool(jnp.all(jnp.isfinite(y)))

    # Sanity check vs an f32 XLA reference (loose tolerance: MXU operands and
    # intermediate activations are bf16, so ~1e-2-level noise after two
    # BatchNorm normalizations).
    ref = _reference_forward(params, x, dilation=dilation)
    mean_err = float(jnp.mean(jnp.abs(y - ref)))
    assert mean_err < 5e-2, f"mean abs err vs reference: {mean_err}"
    assert bool(jnp.allclose(y, ref, rtol=1e-1, atol=2e-1)), \
        f"max abs err vs reference: {float(jnp.max(jnp.abs(y - ref)))}"

    print("KERNEL_OK")
</pallas_src>

<mosaic_0001>
module attributes {stable_mosaic.version = 11 : i64} {
  func.func @_conv_tap_kernel(%arg0: i32, %arg1: i32, %arg2: memref<1x8x18x4xf32, #tpu.memory_space<vmem>>, %arg3: memref<1x2x18x4xf32, #tpu.memory_space<vmem>>, %arg4: memref<9x4x8xbf16, #tpu.memory_space<vmem>>, %arg5: memref<1x8xf32, #tpu.memory_space<vmem>>, %arg6: memref<2x4xf32, #tpu.memory_space<vmem>>, %arg7: memref<1x8x16x8xbf16, #tpu.memory_space<vmem>>, %arg8: memref<1x2x8xf32, #tpu.memory_space<vmem>>, %arg9: memref<10x18x4xbf16, #tpu.memory_space<vmem>>) attributes {dimension_semantics = [#tpu.dimension_semantics<parallel>, #tpu.dimension_semantics<parallel>], iteration_bounds = array<i64: 2, 2>, scalar_prefetch = 0 : i64, scratch_operands = 1 : i64, tpu.core_type = #tpu.core_type<tc>, window_params = [{transform_indices = @transform_0, window_bounds = array<i64: 1, 8, 18, 4>}, {transform_indices = @transform_1, window_bounds = array<i64: 1, 2, 18, 4>}, {pipeline_mode = #tpu.pipeline_mode<synchronous>, transform_indices = @transform_2, window_bounds = array<i64: 9, 4, 8>}, {pipeline_mode = #tpu.pipeline_mode<synchronous>, transform_indices = @transform_3, window_bounds = array<i64: 1, 8>}, {pipeline_mode = #tpu.pipeline_mode<synchronous>, transform_indices = @transform_4, window_bounds = array<i64: 2, 4>}, {transform_indices = @transform_5, window_bounds = array<i64: 1, 8, 16, 8>}, {transform_indices = @transform_6, window_bounds = array<i64: 1, 2, 8>}]} {
    %c0 = arith.constant 0 : index
    %c0_0 = arith.constant 0 : index
    %c0_1 = arith.constant 0 : index
    %c0_2 = arith.constant 0 : index
    %0 = vector.load %arg2[%c0, %c0_0, %c0_1, %c0_2] : memref<1x8x18x4xf32, #tpu.memory_space<vmem>>, vector<1x8x18x4xf32>
    %1 = vector.shape_cast %0 : vector<1x8x18x4xf32> to vector<8x18x4xf32>
    %2 = arith.truncf %1 : vector<8x18x4xf32> to vector<8x18x4xbf16>
    %c0_3 = arith.constant 0 : index
    %c0_4 = arith.constant 0 : index
    %c0_5 = arith.constant 0 : index
    %3 = vector.load %arg9[%c0_3, %c0_4, %c0_5] : memref<10x18x4xbf16, #tpu.memory_space<vmem>>, vector<8x18x4xbf16>
    tpu.vector_store %arg9[%c0_3, %c0_4, %c0_5], %2 {strides = array<i32>} : memref<10x18x4xbf16, #tpu.memory_space<vmem>>, vector<8x18x4xbf16>,
    %c0_6 = arith.constant 0 : index
    %c0_7 = arith.constant 0 : index
    %c0_8 = arith.constant 0 : index
    %c0_9 = arith.constant 0 : index
    %4 = vector.load %arg3[%c0_6, %c0_7, %c0_8, %c0_9] : memref<1x2x18x4xf32, #tpu.memory_space<vmem>>, vector<1x2x18x4xf32>
    %5 = vector.shape_cast %4 : vector<1x2x18x4xf32> to vector<2x18x4xf32>
    %6 = arith.truncf %5 : vector<2x18x4xf32> to vector<2x18x4xbf16>
    %c8 = arith.constant 8 : index
    %c0_10 = arith.constant 0 : index
    %c0_11 = arith.constant 0 : index
    %7 = vector.load %arg9[%c8, %c0_10, %c0_11] : memref<10x18x4xbf16, #tpu.memory_space<vmem>>, vector<2x18x4xbf16>
    tpu.vector_store %arg9[%c8, %c0_10, %c0_11], %6 {strides = array<i32>} : memref<10x18x4xbf16, #tpu.memory_space<vmem>>, vector<2x18x4xbf16>,
    %cst = arith.constant 0.000000e+00 : f32
    %8 = vector.broadcast %cst : f32 to vector<128x8xf32>
    %c0_12 = arith.constant 0 : index
    %c0_13 = arith.constant 0 : index
    %c0_14 = arith.constant 0 : index
    %9 = vector.load %arg9[%c0_12, %c0_13, %c0_14] : memref<10x18x4xbf16, #tpu.memory_space<vmem>>, vector<8x16x4xbf16>
    %10 = vector.shape_cast %9 : vector<8x16x4xbf16> to vector<128x4xbf16>
    %c0_15 = arith.constant 0 : index
    %c0_16 = arith.constant 0 : index
    %c0_17 = arith.constant 0 : index
    %11 = vector.load %arg4[%c0_15, %c0_16, %c0_17] : memref<9x4x8xbf16, #tpu.memory_space<vmem>>, vector<1x4x8xbf16>
    %12 = vector.shape_cast %11 : vector<1x4x8xbf16> to vector<4x8xbf16>
    %cst_18 = arith.constant dense<0.000000e+00> : vector<128x8xf32>
    %13 = tpu.matmul %10, %12, %cst_18 {dimension_numbers = #tpu.dot_dimension_numbers<[1], [0], [0], [1], [0, 0, 1, 1], [], []>} : vector<128x4xbf16>, vector<4x8xbf16>, vector<128x8xf32> -> vector<128x8xf32>
    %14 = arith.addf %8, %13 : vector<128x8xf32>
    %c0_19 = arith.constant 0 : index
    %c1 = arith.constant 1 : index
    %c0_20 = arith.constant 0 : index
    %15 = vector.load %arg9[%c0_19, %c1, %c0_20] : memref<10x18x4xbf16, #tpu.memory_space<vmem>>, vector<8x16x4xbf16>
    %16 = vector.shape_cast %15 : vector<8x16x4xbf16> to vector<128x4xbf16>
    %c1_21 = arith.constant 1 : index
    %c0_22 = arith.constant 0 : index
    %c0_23 = arith.constant 0 : index
    %17 = vector.load %arg4[%c1_21, %c0_22, %c0_23] : memref<9x4x8xbf16, #tpu.memory_space<vmem>>, vector<1x4x8xbf16>
    %18 = vector.shape_cast %17 : vector<1x4x8xbf16> to vector<4x8xbf16>
    %cst_24 = arith.constant dense<0.000000e+00> : vector<128x8xf32>
    %19 = tpu.matmul %16, %18, %cst_24 {dimension_numbers = #tpu.dot_dimension_numbers<[1], [0], [0], [1], [0, 0, 1, 1], [], []>} : vector<128x4xbf16>, vector<4x8xbf16>, vector<128x8xf32> -> vector<128x8xf32>
    %20 = arith.addf %14, %19 : vector<128x8xf32>
    %c0_25 = arith.constant 0 : index
    %c2 = arith.constant 2 : index
    %c0_26 = arith.constant 0 : index
    %21 = vector.load %arg9[%c0_25, %c2, %c0_26] : memref<10x18x4xbf16, #tpu.memory_space<vmem>>, vector<8x16x4xbf16>
    %22 = vector.shape_cast %21 : vector<8x16x4xbf16> to vector<128x4xbf16>
    %c2_27 = arith.constant 2 : index
    %c0_28 = arith.constant 0 : index
    %c0_29 = arith.constant 0 : index
    %23 = vector.load %arg4[%c2_27, %c0_28, %c0_29] : memref<9x4x8xbf16, #tpu.memory_space<vmem>>, vector<1x4x8xbf16>
    %24 = vector.shape_cast %23 : vector<1x4x8xbf16> to vector<4x8xbf16>
    %cst_30 = arith.constant dense<0.000000e+00> : vector<128x8xf32>
    %25 = tpu.matmul %22, %24, %cst_30 {dimension_numbers = #tpu.dot_dimension_numbers<[1], [0], [0], [1], [0, 0, 1, 1], [], []>} : vector<128x4xbf16>, vector<4x8xbf16>, vector<128x8xf32> -> vector<128x8xf32>
    %26 = arith.addf %20, %25 : vector<128x8xf32>
    %c1_31 = arith.constant 1 : index
    %c0_32 = arith.constant 0 : index
    %c0_33 = arith.constant 0 : index
    %27 = vector.load %arg9[%c1_31, %c0_32, %c0_33] : memref<10x18x4xbf16, #tpu.memory_space<vmem>>, vector<8x16x4xbf16>
    %28 = vector.shape_cast %27 : vector<8x16x4xbf16> to vector<128x4xbf16>
    %c3 = arith.constant 3 : index
    %c0_34 = arith.constant 0 : index
    %c0_35 = arith.constant 0 : index
    %29 = vector.load %arg4[%c3, %c0_34, %c0_35] : memref<9x4x8xbf16, #tpu.memory_space<vmem>>, vector<1x4x8xbf16>
    %30 = vector.shape_cast %29 : vector<1x4x8xbf16> to vector<4x8xbf16>
    %cst_36 = arith.constant dense<0.000000e+00> : vector<128x8xf32>
    %31 = tpu.matmul %28, %30, %cst_36 {dimension_numbers = #tpu.dot_dimension_numbers<[1], [0], [0], [1], [0, 0, 1, 1], [], []>} : vector<128x4xbf16>, vector<4x8xbf16>, vector<128x8xf32> -> vector<128x8xf32>
    %32 = arith.addf %26, %31 : vector<128x8xf32>
    %c1_37 = arith.constant 1 : index
    %c1_38 = arith.constant 1 : index
    %c0_39 = arith.constant 0 : index
    %33 = vector.load %arg9[%c1_37, %c1_38, %c0_39] : memref<10x18x4xbf16, #tpu.memory_space<vmem>>, vector<8x16x4xbf16>
    %34 = vector.shape_cast %33 : vector<8x16x4xbf16> to vector<128x4xbf16>
    %c4 = arith.constant 4 : index
    %c0_40 = arith.constant 0 : index
    %c0_41 = arith.constant 0 : index
    %35 = vector.load %arg4[%c4, %c0_40, %c0_41] : memref<9x4x8xbf16, #tpu.memory_space<vmem>>, vector<1x4x8xbf16>
    %36 = vector.shape_cast %35 : vector<1x4x8xbf16> to vector<4x8xbf16>
    %cst_42 = arith.constant dense<0.000000e+00> : vector<128x8xf32>
    %37 = tpu.matmul %34, %36, %cst_42 {dimension_numbers = #tpu.dot_dimension_numbers<[1], [0], [0], [1], [0, 0, 1, 1], [], []>} : vector<128x4xbf16>, vector<4x8xbf16>, vector<128x8xf32> -> vector<128x8xf32>
    %38 = arith.addf %32, %37 : vector<128x8xf32>
    %c1_43 = arith.constant 1 : index
    %c2_44 = arith.constant 2 : index
    %c0_45 = arith.constant 0 : index
    %39 = vector.load %arg9[%c1_43, %c2_44, %c0_45] : memref<10x18x4xbf16, #tpu.memory_space<vmem>>, vector<8x16x4xbf16>
    %40 = vector.shape_cast %39 : vector<8x16x4xbf16> to vector<128x4xbf16>
    %c5 = arith.constant 5 : index
    %c0_46 = arith.constant 0 : index
    %c0_47 = arith.constant 0 : index
    %41 = vector.load %arg4[%c5, %c0_46, %c0_47] : memref<9x4x8xbf16, #tpu.memory_space<vmem>>, vector<1x4x8xbf16>
    %42 = vector.shape_cast %41 : vector<1x4x8xbf16> to vector<4x8xbf16>
    %cst_48 = arith.constant dense<0.000000e+00> : vector<128x8xf32>
    %43 = tpu.matmul %40, %42, %cst_48 {dimension_numbers = #tpu.dot_dimension_numbers<[1], [0], [0], [1], [0, 0, 1, 1], [], []>} : vector<128x4xbf16>, vector<4x8xbf16>, vector<128x8xf32> -> vector<128x8xf32>
    %44 = arith.addf %38, %43 : vector<128x8xf32>
    %c2_49 = arith.constant 2 : index
    %c0_50 = arith.constant 0 : index
    %c0_51 = arith.constant 0 : index
    %45 = vector.load %arg9[%c2_49, %c0_50, %c0_51] : memref<10x18x4xbf16, #tpu.memory_space<vmem>>, vector<8x16x4xbf16>
    %46 = vector.shape_cast %45 : vector<8x16x4xbf16> to vector<128x4xbf16>
    %c6 = arith.constant 6 : index
    %c0_52 = arith.constant 0 : index
    %c0_53 = arith.constant 0 : index
    %47 = vector.load %arg4[%c6, %c0_52, %c0_53] : memref<9x4x8xbf16, #tpu.memory_space<vmem>>, vector<1x4x8xbf16>
    %48 = vector.shape_cast %47 : vector<1x4x8xbf16> to vector<4x8xbf16>
    %cst_54 = arith.constant dense<0.000000e+00> : vector<128x8xf32>
    %49 = tpu.matmul %46, %48, %cst_54 {dimension_numbers = #tpu.dot_dimension_numbers<[1], [0], [0], [1], [0, 0, 1, 1], [], []>} : vector<128x4xbf16>, vector<4x8xbf16>, vector<128x8xf32> -> vector<128x8xf32>
    %50 = arith.addf %44, %49 : vector<128x8xf32>
    %c2_55 = arith.constant 2 : index
    %c1_56 = arith.constant 1 : index
    %c0_57 = arith.constant 0 : index
    %51 = vector.load %arg9[%c2_55, %c1_56, %c0_57] : memref<10x18x4xbf16, #tpu.memory_space<vmem>>, vector<8x16x4xbf16>
    %52 = vector.shape_cast %51 : vector<8x16x4xbf16> to vector<128x4xbf16>
    %c7 = arith.constant 7 : index
    %c0_58 = arith.constant 0 : index
    %c0_59 = arith.constant 0 : index
    %53 = vector.load %arg4[%c7, %c0_58, %c0_59] : memref<9x4x8xbf16, #tpu.memory_space<vmem>>, vector<1x4x8xbf16>
    %54 = vector.shape_cast %53 : vector<1x4x8xbf16> to vector<4x8xbf16>
    %cst_60 = arith.constant dense<0.000000e+00> : vector<128x8xf32>
    %55 = tpu.matmul %52, %54, %cst_60 {dimension_numbers = #tpu.dot_dimension_numbers<[1], [0], [0], [1], [0, 0, 1, 1], [], []>} : vector<128x4xbf16>, vector<4x8xbf16>, vector<128x8xf32> -> vector<128x8xf32>
    %56 = arith.addf %50, %55 : vector<128x8xf32>
    %c2_61 = arith.constant 2 : index
    %c2_62 = arith.constant 2 : index
    %c0_63 = arith.constant 0 : index
    %57 = vector.load %arg9[%c2_61, %c2_62, %c0_63] : memref<10x18x4xbf16, #tpu.memory_space<vmem>>, vector<8x16x4xbf16>
    %58 = vector.shape_cast %57 : vector<8x16x4xbf16> to vector<128x4xbf16>
    %c8_64 = arith.constant 8 : index
    %c0_65 = arith.constant 0 : index
    %c0_66 = arith.constant 0 : index
    %59 = vector.load %arg4[%c8_64, %c0_65, %c0_66] : memref<9x4x8xbf16, #tpu.memory_space<vmem>>, vector<1x4x8xbf16>
    %60 = vector.shape_cast %59 : vector<1x4x8xbf16> to vector<4x8xbf16>
    %cst_67 = arith.constant dense<0.000000e+00> : vector<128x8xf32>
    %61 = tpu.matmul %58, %60, %cst_67 {dimension_numbers = #tpu.dot_dimension_numbers<[1], [0], [0], [1], [0, 0, 1, 1], [], []>} : vector<128x4xbf16>, vector<4x8xbf16>, vector<128x8xf32> -> vector<128x8xf32>
    %62 = arith.addf %56, %61 : vector<128x8xf32>
    %c0_68 = arith.constant 0 : index
    %c0_69 = arith.constant 0 : index
    %63 = vector.load %arg5[%c0_68, %c0_69] : memref<1x8xf32, #tpu.memory_space<vmem>>, vector<1x8xf32>
    %64 = vector.broadcast %63 : vector<1x8xf32> to vector<128x8xf32>
    %65 = arith.addf %62, %64 : vector<128x8xf32>
    %cst_70 = arith.constant 0.000000e+00 : f32
    %66 = vector.broadcast %cst_70 : f32 to vector<128x8xf32>
    %67 = arith.cmpf oge, %65, %66 : vector<128x8xf32>
    %cst_71 = arith.constant 0.00999999977 : f32
    %68 = vector.broadcast %cst_71 : f32 to vector<128x8xf32>
    %69 = arith.mulf %68, %65 : vector<128x8xf32>
    %70 = arith.select %67, %65, %69 : vector<128x8xi1>, vector<128x8xf32>
    %71 = vector.shape_cast %70 : vector<128x8xf32> to vector<8x16x8xf32>
    %72 = arith.truncf %71 : vector<8x16x8xf32> to vector<8x16x8xbf16>
    %c0_72 = arith.constant 0 : index
    %c0_73 = arith.constant 0 : index
    %c0_74 = arith.constant 0 : index
    %c0_75 = arith.constant 0 : index
    %73 = vector.load %arg7[%c0_72, %c0_73, %c0_74, %c0_75] : memref<1x8x16x8xbf16, #tpu.memory_space<vmem>>, vector<1x8x16x8xbf16>
    %74 = vector.shape_cast %73 : vector<1x8x16x8xbf16> to vector<8x16x8xbf16>
    %75 = vector.shape_cast %72 : vector<8x16x8xbf16> to vector<1x8x16x8xbf16>
    tpu.vector_store %arg7[%c0_72, %c0_73, %c0_74, %c0_75], %75 {strides = array<i32>} : memref<1x8x16x8xbf16, #tpu.memory_space<vmem>>, vector<1x8x16x8xbf16>,
    %cst_76 = arith.constant dense<0.000000e+00> : vector<8xf32>
    %76 = vector.multi_reduction <add>, %70, %cst_76 [0] : vector<128x8xf32> to vector<8xf32>
    %77 = vector.shape_cast %76 : vector<8xf32> to vector<1x8xf32>
    %c0_77 = arith.constant 0 : index
    %c0_78 = arith.constant 0 : index
    %c0_79 = arith.constant 0 : index
    %78 = vector.load %arg8[%c0_77, %c0_78, %c0_79] : memref<1x2x8xf32, #tpu.memory_space<vmem>>, vector<1x1x8xf32>
    %79 = vector.shape_cast %78 : vector<1x1x8xf32> to vector<1x8xf32>
    %80 = vector.shape_cast %77 : vector<1x8xf32> to vector<1x1x8xf32>
    tpu.vector_store %arg8[%c0_77, %c0_78, %c0_79], %80 {strides = array<i32>} : memref<1x2x8xf32, #tpu.memory_space<vmem>>, vector<1x1x8xf32>,
    %81 = arith.mulf %70, %70 : vector<128x8xf32>
    %cst_80 = arith.constant dense<0.000000e+00> : vector<8xf32>
    %82 = vector.multi_reduction <add>, %81, %cst_80 [0] : vector<128x8xf32> to vector<8xf32>
    %83 = vector.shape_cast %82 : vector<8xf32> to vector<1x8xf32>
    %c0_81 = arith.constant 0 : index
    %c1_82 = arith.constant 1 : index
    %c0_83 = arith.constant 0 : index
    %84 = vector.load %arg8[%c0_81, %c1_82, %c0_83] : memref<1x2x8xf32, #tpu.memory_space<vmem>>, vector<1x1x8xf32>
    %85 = vector.shape_cast %84 : vector<1x1x8xf32> to vector<1x8xf32>
    %86 = vector.shape_cast %83 : vector<1x8xf32> to vector<1x1x8xf32>
    tpu.vector_store %arg8[%c0_81, %c1_82, %c0_83], %86 {strides = array<i32>} : memref<1x2x8xf32, #tpu.memory_space<vmem>>, vector<1x1x8xf32>,
    return
  }
  func.func @transform_0(%arg0: i32, %arg1: i32) -> (i32, i32, i32, i32) {
    %c0_i32 = arith.constant 0 : i32
    %c0_i32_0 = arith.constant 0 : i32
    %c0_i32_1 = arith.constant 0 : i32
    return %arg0, %arg1, %c0_i32, %c0_i32_0 : i32, i32, i32, i32
  }
  func.func @transform_1(%arg0: i32, %arg1: i32) -> (i32, i32, i32, i32) {
    %c2_i32 = arith.constant 2 : i32
    %0 = arith.muli %arg0, %c2_i32 : i32
    %1 = arith.addi %0, %arg1 : i32
    %c0_i32 = arith.constant 0 : i32
    %c0_i32_0 = arith.constant 0 : i32
    %c0_i32_1 = arith.constant 0 : i32
    %c0_i32_2 = arith.constant 0 : i32
    return %1, %c0_i32, %c0_i32_0, %c0_i32_1 : i32, i32, i32, i32
  }
  func.func @transform_2(%arg0: i32, %arg1: i32) -> (i32, i32, i32) {
    %c0_i32 = arith.constant 0 : i32
    %c0_i32_0 = arith.constant 0 : i32
    %c0_i32_1 = arith.constant 0 : i32
    %c0_i32_2 = arith.constant 0 : i32
    return %c0_i32, %c0_i32_0, %c0_i32_1 : i32, i32, i32
  }
  func.func @transform_3(%arg0: i32, %arg1: i32) -> (i32, i32) {
    %c0_i32 = arith.constant 0 : i32
    %c0_i32_0 = arith.constant 0 : i32
    %c0_i32_1 = arith.constant 0 : i32
    return %c0_i32, %c0_i32_0 : i32, i32
  }
  func.func @transform_4(%arg0: i32, %arg1: i32) -> (i32, i32) {
    %c0_i32 = arith.constant 0 : i32
    %c0_i32_0 = arith.constant 0 : i32
    %c0_i32_1 = arith.constant 0 : i32
    return %c0_i32, %c0_i32_0 : i32, i32
  }
  func.func @transform_5(%arg0: i32, %arg1: i32) -> (i32, i32, i32, i32) {
    %c0_i32 = arith.constant 0 : i32
    %c0_i32_0 = arith.constant 0 : i32
    %c0_i32_1 = arith.constant 0 : i32
    return %arg0, %arg1, %c0_i32, %c0_i32_0 : i32, i32, i32, i32
  }
  func.func @transform_6(%arg0: i32, %arg1: i32) -> (i32, i32, i32) {
    %c2_i32 = arith.constant 2 : i32
    %0 = arith.muli %arg0, %c2_i32 : i32
    %1 = arith.addi %0, %arg1 : i32
    %c0_i32 = arith.constant 0 : i32
    %c0_i32_0 = arith.constant 0 : i32
    %c0_i32_1 = arith.constant 0 : i32
    return %1, %c0_i32, %c0_i32_0 : i32, i32, i32
  }
}

module attributes {stable_mosaic.version = 11 : i64} {
  func.func @_conv_tap_kernel(%arg0: i32, %arg1: i32, %arg2: memref<1x8x18x8xbf16, #tpu.memory_space<vmem>>, %arg3: memref<1x2x18x8xbf16, #tpu.memory_space<vmem>>, %arg4: memref<9x8x8xbf16, #tpu.memory_space<vmem>>, %arg5: memref<1x8xf32, #tpu.memory_space<vmem>>, %arg6: memref<2x8xf32, #tpu.memory_space<vmem>>, %arg7: memref<1x8x16x8xbf16, #tpu.memory_space<vmem>>, %arg8: memref<1x2x8xf32, #tpu.memory_space<vmem>>, %arg9: memref<10x18x8xbf16, #tpu.memory_space<vmem>>) attributes {dimension_semantics = [#tpu.dimension_semantics<parallel>, #tpu.dimension_semantics<parallel>], iteration_bounds = array<i64: 2, 2>, scalar_prefetch = 0 : i64, scratch_operands = 1 : i64, tpu.core_type = #tpu.core_type<tc>, window_params = [{transform_indices = @transform_0, window_bounds = array<i64: 1, 8, 18, 8>}, {transform_indices = @transform_1, window_bounds = array<i64: 1, 2, 18, 8>}, {pipeline_mode = #tpu.pipeline_mode<synchronous>, transform_indices = @transform_2, window_bounds = array<i64: 9, 8, 8>}, {pipeline_mode = #tpu.pipeline_mode<synchronous>, transform_indices = @transform_3, window_bounds = array<i64: 1, 8>}, {pipeline_mode = #tpu.pipeline_mode<synchronous>, transform_indices = @transform_4, window_bounds = array<i64: 2, 8>}, {transform_indices = @transform_5, window_bounds = array<i64: 1, 8, 16, 8>}, {transform_indices = @transform_6, window_bounds = array<i64: 1, 2, 8>}]} {
    %c8_i32 = arith.constant 8 : i32
    %0 = arith.muli %arg1, %c8_i32 : i32
    %c0 = arith.constant 0 : index
    %c0_0 = arith.constant 0 : index
    %1 = vector.load %arg6[%c0, %c0_0] : memref<2x8xf32, #tpu.memory_space<vmem>>, vector<2x8xf32>
    %2 = vector.extract_strided_slice %1 {offsets = [0, 0], sizes = [1, 8], strides = [1, 1]} : vector<2x8xf32> to vector<1x8xf32>
    %3 = vector.shape_cast %2 : vector<1x8xf32> to vector<1x1x8xf32>
    %4 = vector.extract_strided_slice %1 {offsets = [1, 0], sizes = [1, 8], strides = [1, 1]} : vector<2x8xf32> to vector<1x8xf32>
    %5 = vector.shape_cast %4 : vector<1x8xf32> to vector<1x1x8xf32>
    %6 = tpu.iota {dimensions = array<i32: 1>} : vector<1x18x1xi32>
    %c1_i32 = arith.constant 1 : i32
    %7 = vector.broadcast %c1_i32 : i32 to vector<1x18x1xi32>
    %8 = arith.cmpi sge, %6, %7 : vector<1x18x1xi32>
    %c17_i32 = arith.constant 17 : i32
    %9 = vector.broadcast %c17_i32 : i32 to vector<1x18x1xi32>
    %10 = arith.cmpi slt, %6, %9 : vector<1x18x1xi32>
    %11 = arith.andi %8, %10 : vector<1x18x1xi1>
    %c0_1 = arith.constant 0 : index
    %c0_2 = arith.constant 0 : index
    %c0_3 = arith.constant 0 : index
    %c0_4 = arith.constant 0 : index
    %12 = vector.load %arg2[%c0_1, %c0_2, %c0_3, %c0_4] : memref<1x8x18x8xbf16, #tpu.memory_space<vmem>>, vector<1x8x18x8xbf16>
    %13 = vector.shape_cast %12 : vector<1x8x18x8xbf16> to vector<8x18x8xbf16>
    %14 = tpu.iota {dimensions = array<i32: 0>} : vector<8x1x1xi32>
    %15 = vector.broadcast %0 : i32 to vector<8x1x1xi32>
    %16 = arith.addi %15, %14 : vector<8x1x1xi32>
    %c1_i32_5 = arith.constant 1 : i32
    %17 = vector.broadcast %c1_i32_5 : i32 to vector<8x1x1xi32>
    %18 = arith.cmpi sge, %16, %17 : vector<8x1x1xi32>
    %c17_i32_6 = arith.constant 17 : i32
    %19 = vector.broadcast %c17_i32_6 : i32 to vector<8x1x1xi32>
    %20 = arith.cmpi slt, %16, %19 : vector<8x1x1xi32>
    %21 = arith.andi %18, %20 : vector<8x1x1xi1>
    %22 = vector.broadcast %21 : vector<8x1x1xi1> to vector<8x18x1xi1>
    %23 = vector.broadcast %11 : vector<1x18x1xi1> to vector<8x18x1xi1>
    %24 = arith.andi %22, %23 : vector<8x18x1xi1>
    %25 = arith.extf %13 : vector<8x18x8xbf16> to vector<8x18x8xf32>
    %26 = vector.broadcast %3 : vector<1x1x8xf32> to vector<8x18x8xf32>
    %27 = arith.mulf %25, %26 : vector<8x18x8xf32>
    %cst = arith.constant 0.000000e+00 : f32
    %28 = vector.shape_cast %24 : vector<8x18x1xi1> to vector<8x18x1xi1>
    %29 = vector.broadcast %28 : vector<8x18x1xi1> to vector<8x18x8xi1>
    %30 = vector.shape_cast %5 : vector<1x1x8xf32> to vector<1x1x8xf32>
    %31 = vector.broadcast %30 : vector<1x1x8xf32> to vector<8x18x8xf32>
    %32 = vector.broadcast %cst : f32 to vector<8x18x8xf32>
    %33 = arith.select %29, %31, %32 : vector<8x18x8xi1>, vector<8x18x8xf32>
    %34 = arith.addf %27, %33 : vector<8x18x8xf32>
    %35 = arith.truncf %34 : vector<8x18x8xf32> to vector<8x18x8xbf16>
    %c0_7 = arith.constant 0 : index
    %c0_8 = arith.constant 0 : index
    %c0_9 = arith.constant 0 : index
    %36 = vector.load %arg9[%c0_7, %c0_8, %c0_9] : memref<10x18x8xbf16, #tpu.memory_space<vmem>>, vector<8x18x8xbf16>
    tpu.vector_store %arg9[%c0_7, %c0_8, %c0_9], %35 {strides = array<i32>} : memref<10x18x8xbf16, #tpu.memory_space<vmem>>, vector<8x18x8xbf16>,
    %c0_10 = arith.constant 0 : index
    %c0_11 = arith.constant 0 : index
    %c0_12 = arith.constant 0 : index
    %c0_13 = arith.constant 0 : index
    %37 = vector.load %arg3[%c0_10, %c0_11, %c0_12, %c0_13] : memref<1x2x18x8xbf16, #tpu.memory_space<vmem>>, vector<1x2x18x8xbf16>
    %38 = vector.shape_cast %37 : vector<1x2x18x8xbf16> to vector<2x18x8xbf16>
    %c8_i32_14 = arith.constant 8 : i32
    %39 = arith.addi %0, %c8_i32_14 : i32
    %40 = tpu.iota {dimensions = array<i32: 0>} : vector<2x1x1xi32>
    %41 = vector.broadcast %39 : i32 to vector<2x1x1xi32>
    %42 = arith.addi %41, %40 : vector<2x1x1xi32>
    %c1_i32_15 = arith.constant 1 : i32
    %43 = vector.broadcast %c1_i32_15 : i32 to vector<2x1x1xi32>
    %44 = arith.cmpi sge, %42, %43 : vector<2x1x1xi32>
    %c17_i32_16 = arith.constant 17 : i32
    %45 = vector.broadcast %c17_i32_16 : i32 to vector<2x1x1xi32>
    %46 = arith.cmpi slt, %42, %45 : vector<2x1x1xi32>
    %47 = arith.andi %44, %46 : vector<2x1x1xi1>
    %48 = vector.broadcast %47 : vector<2x1x1xi1> to vector<2x18x1xi1>
    %49 = vector.broadcast %11 : vector<1x18x1xi1> to vector<2x18x1xi1>
    %50 = arith.andi %48, %49 : vector<2x18x1xi1>
    %51 = arith.extf %38 : vector<2x18x8xbf16> to vector<2x18x8xf32>
    %52 = vector.broadcast %3 : vector<1x1x8xf32> to vector<2x18x8xf32>
    %53 = arith.mulf %51, %52 : vector<2x18x8xf32>
    %cst_17 = arith.constant 0.000000e+00 : f32
    %54 = vector.shape_cast %50 : vector<2x18x1xi1> to vector<2x18x1xi1>
    %55 = vector.broadcast %54 : vector<2x18x1xi1> to vector<2x18x8xi1>
    %56 = vector.shape_cast %5 : vector<1x1x8xf32> to vector<1x1x8xf32>
    %57 = vector.broadcast %56 : vector<1x1x8xf32> to vector<2x18x8xf32>
    %58 = vector.broadcast %cst_17 : f32 to vector<2x18x8xf32>
    %59 = arith.select %55, %57, %58 : vector<2x18x8xi1>, vector<2x18x8xf32>
    %60 = arith.addf %53, %59 : vector<2x18x8xf32>
    %61 = arith.truncf %60 : vector<2x18x8xf32> to vector<2x18x8xbf16>
    %c8 = arith.constant 8 : index
    %c0_18 = arith.constant 0 : index
    %c0_19 = arith.constant 0 : index
    %62 = vector.load %arg9[%c8, %c0_18, %c0_19] : memref<10x18x8xbf16, #tpu.memory_space<vmem>>, vector<2x18x8xbf16>
    tpu.vector_store %arg9[%c8, %c0_18, %c0_19], %61 {strides = array<i32>} : memref<10x18x8xbf16, #tpu.memory_space<vmem>>, vector<2x18x8xbf16>,
    %cst_20 = arith.constant 0.000000e+00 : f32
    %63 = vector.broadcast %cst_20 : f32 to vector<128x8xf32>
    %c0_21 = arith.constant 0 : index
    %c0_22 = arith.constant 0 : index
    %c0_23 = arith.constant 0 : index
    %64 = vector.load %arg9[%c0_21, %c0_22, %c0_23] : memref<10x18x8xbf16, #tpu.memory_space<vmem>>, vector<8x16x8xbf16>
    %65 = vector.shape_cast %64 : vector<8x16x8xbf16> to vector<128x8xbf16>
    %c0_24 = arith.constant 0 : index
    %c0_25 = arith.constant 0 : index
    %c0_26 = arith.constant 0 : index
    %66 = vector.load %arg4[%c0_24, %c0_25, %c0_26] : memref<9x8x8xbf16, #tpu.memory_space<vmem>>, vector<1x8x8xbf16>
    %67 = vector.shape_cast %66 : vector<1x8x8xbf16> to vector<8x8xbf16>
    %cst_27 = arith.constant dense<0.000000e+00> : vector<128x8xf32>
    %68 = tpu.matmul %65, %67, %cst_27 {dimension_numbers = #tpu.dot_dimension_numbers<[1], [0], [0], [1], [0, 0, 1, 1], [], []>} : vector<128x8xbf16>, vector<8x8xbf16>, vector<128x8xf32> -> vector<128x8xf32>
    %69 = arith.addf %63, %68 : vector<128x8xf32>
    %c0_28 = arith.constant 0 : index
    %c1 = arith.constant 1 : index
    %c0_29 = arith.constant 0 : index
    %70 = vector.load %arg9[%c0_28, %c1, %c0_29] : memref<10x18x8xbf16, #tpu.memory_space<vmem>>, vector<8x16x8xbf16>
    %71 = vector.shape_cast %70 : vector<8x16x8xbf16> to vector<128x8xbf16>
    %c1_30 = arith.constant 1 : index
    %c0_31 = arith.constant 0 : index
    %c0_32 = arith.constant 0 : index
    %72 = vector.load %arg4[%c1_30, %c0_31, %c0_32] : memref<9x8x8xbf16, #tpu.memory_space<vmem>>, vector<1x8x8xbf16>
    %73 = vector.shape_cast %72 : vector<1x8x8xbf16> to vector<8x8xbf16>
    %cst_33 = arith.constant dense<0.000000e+00> : vector<128x8xf32>
    %74 = tpu.matmul %71, %73, %cst_33 {dimension_numbers = #tpu.dot_dimension_numbers<[1], [0], [0], [1], [0, 0, 1, 1], [], []>} : vector<128x8xbf16>, vector<8x8xbf16>, vector<128x8xf32> -> vector<128x8xf32>
    %75 = arith.addf %69, %74 : vector<128x8xf32>
    %c0_34 = arith.constant 0 : index
    %c2 = arith.constant 2 : index
    %c0_35 = arith.constant 0 : index
    %76 = vector.load %arg9[%c0_34, %c2, %c0_35] : memref<10x18x8xbf16, #tpu.memory_space<vmem>>, vector<8x16x8xbf16>
    %77 = vector.shape_cast %76 : vector<8x16x8xbf16> to vector<128x8xbf16>
    %c2_36 = arith.constant 2 : index
    %c0_37 = arith.constant 0 : index
    %c0_38 = arith.constant 0 : index
    %78 = vector.load %arg4[%c2_36, %c0_37, %c0_38] : memref<9x8x8xbf16, #tpu.memory_space<vmem>>, vector<1x8x8xbf16>
    %79 = vector.shape_cast %78 : vector<1x8x8xbf16> to vector<8x8xbf16>
    %cst_39 = arith.constant dense<0.000000e+00> : vector<128x8xf32>
    %80 = tpu.matmul %77, %79, %cst_39 {dimension_numbers = #tpu.dot_dimension_numbers<[1], [0], [0], [1], [0, 0, 1, 1], [], []>} : vector<128x8xbf16>, vector<8x8xbf16>, vector<128x8xf32> -> vector<128x8xf32>
    %81 = arith.addf %75, %80 : vector<128x8xf32>
    %c1_40 = arith.constant 1 : index
    %c0_41 = arith.constant 0 : index
    %c0_42 = arith.constant 0 : index
    %82 = vector.load %arg9[%c1_40, %c0_41, %c0_42] : memref<10x18x8xbf16, #tpu.memory_space<vmem>>, vector<8x16x8xbf16>
    %83 = vector.shape_cast %82 : vector<8x16x8xbf16> to vector<128x8xbf16>
    %c3 = arith.constant 3 : index
    %c0_43 = arith.constant 0 : index
    %c0_44 = arith.constant 0 : index
    %84 = vector.load %arg4[%c3, %c0_43, %c0_44] : memref<9x8x8xbf16, #tpu.memory_space<vmem>>, vector<1x8x8xbf16>
    %85 = vector.shape_cast %84 : vector<1x8x8xbf16> to vector<8x8xbf16>
    %cst_45 = arith.constant dense<0.000000e+00> : vector<128x8xf32>
    %86 = tpu.matmul %83, %85, %cst_45 {dimension_numbers = #tpu.dot_dimension_numbers<[1], [0], [0], [1], [0, 0, 1, 1], [], []>} : vector<128x8xbf16>, vector<8x8xbf16>, vector<128x8xf32> -> vector<128x8xf32>
    %87 = arith.addf %81, %86 : vector<128x8xf32>
    %c1_46 = arith.constant 1 : index
    %c1_47 = arith.constant 1 : index
    %c0_48 = arith.constant 0 : index
    %88 = vector.load %arg9[%c1_46, %c1_47, %c0_48] : memref<10x18x8xbf16, #tpu.memory_space<vmem>>, vector<8x16x8xbf16>
    %89 = vector.shape_cast %88 : vector<8x16x8xbf16> to vector<128x8xbf16>
    %c4 = arith.constant 4 : index
    %c0_49 = arith.constant 0 : index
    %c0_50 = arith.constant 0 : index
    %90 = vector.load %arg4[%c4, %c0_49, %c0_50] : memref<9x8x8xbf16, #tpu.memory_space<vmem>>, vector<1x8x8xbf16>
    %91 = vector.shape_cast %90 : vector<1x8x8xbf16> to vector<8x8xbf16>
    %cst_51 = arith.constant dense<0.000000e+00> : vector<128x8xf32>
    %92 = tpu.matmul %89, %91, %cst_51 {dimension_numbers = #tpu.dot_dimension_numbers<[1], [0], [0], [1], [0, 0, 1, 1], [], []>} : vector<128x8xbf16>, vector<8x8xbf16>, vector<128x8xf32> -> vector<128x8xf32>
    %93 = arith.addf %87, %92 : vector<128x8xf32>
    %c1_52 = arith.constant 1 : index
    %c2_53 = arith.constant 2 : index
    %c0_54 = arith.constant 0 : index
    %94 = vector.load %arg9[%c1_52, %c2_53, %c0_54] : memref<10x18x8xbf16, #tpu.memory_space<vmem>>, vector<8x16x8xbf16>
    %95 = vector.shape_cast %94 : vector<8x16x8xbf16> to vector<128x8xbf16>
    %c5 = arith.constant 5 : index
    %c0_55 = arith.constant 0 : index
    %c0_56 = arith.constant 0 : index
    %96 = vector.load %arg4[%c5, %c0_55, %c0_56] : memref<9x8x8xbf16, #tpu.memory_space<vmem>>, vector<1x8x8xbf16>
    %97 = vector.shape_cast %96 : vector<1x8x8xbf16> to vector<8x8xbf16>
    %cst_57 = arith.constant dense<0.000000e+00> : vector<128x8xf32>
    %98 = tpu.matmul %95, %97, %cst_57 {dimension_numbers = #tpu.dot_dimension_numbers<[1], [0], [0], [1], [0, 0, 1, 1], [], []>} : vector<128x8xbf16>, vector<8x8xbf16>, vector<128x8xf32> -> vector<128x8xf32>
    %99 = arith.addf %93, %98 : vector<128x8xf32>
    %c2_58 = arith.constant 2 : index
    %c0_59 = arith.constant 0 : index
    %c0_60 = arith.constant 0 : index
    %100 = vector.load %arg9[%c2_58, %c0_59, %c0_60] : memref<10x18x8xbf16, #tpu.memory_space<vmem>>, vector<8x16x8xbf16>
    %101 = vector.shape_cast %100 : vector<8x16x8xbf16> to vector<128x8xbf16>
    %c6 = arith.constant 6 : index
    %c0_61 = arith.constant 0 : index
    %c0_62 = arith.constant 0 : index
    %102 = vector.load %arg4[%c6, %c0_61, %c0_62] : memref<9x8x8xbf16, #tpu.memory_space<vmem>>, vector<1x8x8xbf16>
    %103 = vector.shape_cast %102 : vector<1x8x8xbf16> to vector<8x8xbf16>
    %cst_63 = arith.constant dense<0.000000e+00> : vector<128x8xf32>
    %104 = tpu.matmul %101, %103, %cst_63 {dimension_numbers = #tpu.dot_dimension_numbers<[1], [0], [0], [1], [0, 0, 1, 1], [], []>} : vector<128x8xbf16>, vector<8x8xbf16>, vector<128x8xf32> -> vector<128x8xf32>
    %105 = arith.addf %99, %104 : vector<128x8xf32>
    %c2_64 = arith.constant 2 : index
    %c1_65 = arith.constant 1 : index
    %c0_66 = arith.constant 0 : index
    %106 = vector.load %arg9[%c2_64, %c1_65, %c0_66] : memref<10x18x8xbf16, #tpu.memory_space<vmem>>, vector<8x16x8xbf16>
    %107 = vector.shape_cast %106 : vector<8x16x8xbf16> to vector<128x8xbf16>
    %c7 = arith.constant 7 : index
    %c0_67 = arith.constant 0 : index
    %c0_68 = arith.constant 0 : index
    %108 = vector.load %arg4[%c7, %c0_67, %c0_68] : memref<9x8x8xbf16, #tpu.memory_space<vmem>>, vector<1x8x8xbf16>
    %109 = vector.shape_cast %108 : vector<1x8x8xbf16> to vector<8x8xbf16>
    %cst_69 = arith.constant dense<0.000000e+00> : vector<128x8xf32>
    %110 = tpu.matmul %107, %109, %cst_69 {dimension_numbers = #tpu.dot_dimension_numbers<[1], [0], [0], [1], [0, 0, 1, 1], [], []>} : vector<128x8xbf16>, vector<8x8xbf16>, vector<128x8xf32> -> vector<128x8xf32>
    %111 = arith.addf %105, %110 : vector<128x8xf32>
    %c2_70 = arith.constant 2 : index
    %c2_71 = arith.constant 2 : index
    %c0_72 = arith.constant 0 : index
    %112 = vector.load %arg9[%c2_70, %c2_71, %c0_72] : memref<10x18x8xbf16, #tpu.memory_space<vmem>>, vector<8x16x8xbf16>
    %113 = vector.shape_cast %112 : vector<8x16x8xbf16> to vector<128x8xbf16>
    %c8_73 = arith.constant 8 : index
    %c0_74 = arith.constant 0 : index
    %c0_75 = arith.constant 0 : index
    %114 = vector.load %arg4[%c8_73, %c0_74, %c0_75] : memref<9x8x8xbf16, #tpu.memory_space<vmem>>, vector<1x8x8xbf16>
    %115 = vector.shape_cast %114 : vector<1x8x8xbf16> to vector<8x8xbf16>
    %cst_76 = arith.constant dense<0.000000e+00> : vector<128x8xf32>
    %116 = tpu.matmul %113, %115, %cst_76 {dimension_numbers = #tpu.dot_dimension_numbers<[1], [0], [0], [1], [0, 0, 1, 1], [], []>} : vector<128x8xbf16>, vector<8x8xbf16>, vector<128x8xf32> -> vector<128x8xf32>
    %117 = arith.addf %111, %116 : vector<128x8xf32>
    %c0_77 = arith.constant 0 : index
    %c0_78 = arith.constant 0 : index
    %118 = vector.load %arg5[%c0_77, %c0_78] : memref<1x8xf32, #tpu.memory_space<vmem>>, vector<1x8xf32>
    %119 = vector.broadcast %118 : vector<1x8xf32> to vector<128x8xf32>
    %120 = arith.addf %117, %119 : vector<128x8xf32>
    %cst_79 = arith.constant 0.000000e+00 : f32
    %121 = vector.broadcast %cst_79 : f32 to vector<128x8xf32>
    %122 = arith.cmpf oge, %120, %121 : vector<128x8xf32>
    %cst_80 = arith.constant 0.00999999977 : f32
    %123 = vector.broadcast %cst_80 : f32 to vector<128x8xf32>
    %124 = arith.mulf %123, %120 : vector<128x8xf32>
    %125 = arith.select %122, %120, %124 : vector<128x8xi1>, vector<128x8xf32>
    %126 = vector.shape_cast %125 : vector<128x8xf32> to vector<8x16x8xf32>
    %127 = arith.truncf %126 : vector<8x16x8xf32> to vector<8x16x8xbf16>
    %c0_81 = arith.constant 0 : index
    %c0_82 = arith.constant 0 : index
    %c0_83 = arith.constant 0 : index
    %c0_84 = arith.constant 0 : index
    %128 = vector.load %arg7[%c0_81, %c0_82, %c0_83, %c0_84] : memref<1x8x16x8xbf16, #tpu.memory_space<vmem>>, vector<1x8x16x8xbf16>
    %129 = vector.shape_cast %128 : vector<1x8x16x8xbf16> to vector<8x16x8xbf16>
    %130 = vector.shape_cast %127 : vector<8x16x8xbf16> to vector<1x8x16x8xbf16>
    tpu.vector_store %arg7[%c0_81, %c0_82, %c0_83, %c0_84], %130 {strides = array<i32>} : memref<1x8x16x8xbf16, #tpu.memory_space<vmem>>, vector<1x8x16x8xbf16>,
    %cst_85 = arith.constant dense<0.000000e+00> : vector<8xf32>
    %131 = vector.multi_reduction <add>, %125, %cst_85 [0] : vector<128x8xf32> to vector<8xf32>
    %132 = vector.shape_cast %131 : vector<8xf32> to vector<1x8xf32>
    %c0_86 = arith.constant 0 : index
    %c0_87 = arith.constant 0 : index
    %c0_88 = arith.constant 0 : index
    %133 = vector.load %arg8[%c0_86, %c0_87, %c0_88] : memref<1x2x8xf32, #tpu.memory_space<vmem>>, vector<1x1x8xf32>
    %134 = vector.shape_cast %133 : vector<1x1x8xf32> to vector<1x8xf32>
    %135 = vector.shape_cast %132 : vector<1x8xf32> to vector<1x1x8xf32>
    tpu.vector_store %arg8[%c0_86, %c0_87, %c0_88], %135 {strides = array<i32>} : memref<1x2x8xf32, #tpu.memory_space<vmem>>, vector<1x1x8xf32>,
    %136 = arith.mulf %125, %125 : vector<128x8xf32>
    %cst_89 = arith.constant dense<0.000000e+00> : vector<8xf32>
    %137 = vector.multi_reduction <add>, %136, %cst_89 [0] : vector<128x8xf32> to vector<8xf32>
    %138 = vector.shape_cast %137 : vector<8xf32> to vector<1x8xf32>
    %c0_90 = arith.constant 0 : index
    %c1_91 = arith.constant 1 : index
    %c0_92 = arith.constant 0 : index
    %139 = vector.load %arg8[%c0_90, %c1_91, %c0_92] : memref<1x2x8xf32, #tpu.memory_space<vmem>>, vector<1x1x8xf32>
    %140 = vector.shape_cast %139 : vector<1x1x8xf32> to vector<1x8xf32>
    %141 = vector.shape_cast %138 : vector<1x8xf32> to vector<1x1x8xf32>
    tpu.vector_store %arg8[%c0_90, %c1_91, %c0_92], %141 {strides = array<i32>} : memref<1x2x8xf32, #tpu.memory_space<vmem>>, vector<1x1x8xf32>,
    return
  }
  func.func @transform_0(%arg0: i32, %arg1: i32) -> (i32, i32, i32, i32) {
    %c0_i32 = arith.constant 0 : i32
    %c0_i32_0 = arith.constant 0 : i32
    %c0_i32_1 = arith.constant 0 : i32
    return %arg0, %arg1, %c0_i32, %c0_i32_0 : i32, i32, i32, i32
  }
  func.func @transform_1(%arg0: i32, %arg1: i32) -> (i32, i32, i32, i32) {
    %c2_i32 = arith.constant 2 : i32
    %0 = arith.muli %arg0, %c2_i32 : i32
    %1 = arith.addi %0, %arg1 : i32
    %c0_i32 = arith.constant 0 : i32
    %c0_i32_0 = arith.constant 0 : i32
    %c0_i32_1 = arith.constant 0 : i32
    %c0_i32_2 = arith.constant 0 : i32
    return %1, %c0_i32, %c0_i32_0, %c0_i32_1 : i32, i32, i32, i32
  }
  func.func @transform_2(%arg0: i32, %arg1: i32) -> (i32, i32, i32) {
    %c0_i32 = arith.constant 0 : i32
    %c0_i32_0 = arith.constant 0 : i32
    %c0_i32_1 = arith.constant 0 : i32
    %c0_i32_2 = arith.constant 0 : i32
    return %c0_i32, %c0_i32_0, %c0_i32_1 : i32, i32, i32
  }
  func.func @transform_3(%arg0: i32, %arg1: i32) -> (i32, i32) {
    %c0_i32 = arith.constant 0 : i32
    %c0_i32_0 = arith.constant 0 : i32
    %c0_i32_1 = arith.constant 0 : i32
    return %c0_i32, %c0_i32_0 : i32, i32
  }
  func.func @transform_4(%arg0: i32, %arg1: i32) -> (i32, i32) {
    %c0_i32 = arith.constant 0 : i32
    %c0_i32_0 = arith.constant 0 : i32
    %c0_i32_1 = arith.constant 0 : i32
    return %c0_i32, %c0_i32_0 : i32, i32
  }
  func.func @transform_5(%arg0: i32, %arg1: i32) -> (i32, i32, i32, i32) {
    %c0_i32 = arith.constant 0 : i32
    %c0_i32_0 = arith.constant 0 : i32
    %c0_i32_1 = arith.constant 0 : i32
    return %arg0, %arg1, %c0_i32, %c0_i32_0 : i32, i32, i32, i32
  }
  func.func @transform_6(%arg0: i32, %arg1: i32) -> (i32, i32, i32) {
    %c2_i32 = arith.constant 2 : i32
    %0 = arith.muli %arg0, %c2_i32 : i32
    %1 = arith.addi %0, %arg1 : i32
    %c0_i32 = arith.constant 0 : i32
    %c0_i32_0 = arith.constant 0 : i32
    %c0_i32_1 = arith.constant 0 : i32
    return %1, %c0_i32, %c0_i32_0 : i32, i32, i32
  }
}

module attributes {stable_mosaic.version = 11 : i64} {
  func.func @_affine_kernel(%arg0: i32, %arg1: i32, %arg2: memref<1x8x16x8xbf16, #tpu.memory_space<vmem>>, %arg3: memref<2x8xf32, #tpu.memory_space<vmem>>, %arg4: memref<1x8x16x8xf32, #tpu.memory_space<vmem>>) attributes {dimension_semantics = [#tpu.dimension_semantics<parallel>, #tpu.dimension_semantics<parallel>], iteration_bounds = array<i64: 2, 2>, scalar_prefetch = 0 : i64, scratch_operands = 0 : i64, tpu.core_type = #tpu.core_type<tc>, window_params = [{transform_indices = @transform_0, window_bounds = array<i64: 1, 8, 16, 8>}, {pipeline_mode = #tpu.pipeline_mode<synchronous>, transform_indices = @transform_1, window_bounds = array<i64: 2, 8>}, {transform_indices = @transform_2, window_bounds = array<i64: 1, 8, 16, 8>}]} {
    %c0 = arith.constant 0 : index
    %c0_0 = arith.constant 0 : index
    %0 = vector.load %arg3[%c0, %c0_0] : memref<2x8xf32, #tpu.memory_space<vmem>>, vector<2x8xf32>
    %1 = vector.extract_strided_slice %0 {offsets = [0, 0], sizes = [1, 8], strides = [1, 1]} : vector<2x8xf32> to vector<1x8xf32>
    %2 = vector.shape_cast %1 : vector<1x8xf32> to vector<1x1x8xf32>
    %3 = vector.extract_strided_slice %0 {offsets = [1, 0], sizes = [1, 8], strides = [1, 1]} : vector<2x8xf32> to vector<1x8xf32>
    %4 = vector.shape_cast %3 : vector<1x8xf32> to vector<1x1x8xf32>
    %c0_1 = arith.constant 0 : index
    %c0_2 = arith.constant 0 : index
    %c0_3 = arith.constant 0 : index
    %c0_4 = arith.constant 0 : index
    %5 = vector.load %arg2[%c0_1, %c0_2, %c0_3, %c0_4] : memref<1x8x16x8xbf16, #tpu.memory_space<vmem>>, vector<1x8x16x8xbf16>
    %6 = vector.shape_cast %5 : vector<1x8x16x8xbf16> to vector<8x16x8xbf16>
    %7 = arith.extf %6 : vector<8x16x8xbf16> to vector<8x16x8xf32>
    %8 = vector.broadcast %2 : vector<1x1x8xf32> to vector<8x16x8xf32>
    %9 = arith.mulf %7, %8 : vector<8x16x8xf32>
    %10 = vector.broadcast %4 : vector<1x1x8xf32> to vector<8x16x8xf32>
    %11 = arith.addf %9, %10 : vector<8x16x8xf32>
    %c0_5 = arith.constant 0 : index
    %c0_6 = arith.constant 0 : index
    %c0_7 = arith.constant 0 : index
    %c0_8 = arith.constant 0 : index
    %12 = vector.load %arg4[%c0_5, %c0_6, %c0_7, %c0_8] : memref<1x8x16x8xf32, #tpu.memory_space<vmem>>, vector<1x8x16x8xf32>
    %13 = vector.shape_cast %12 : vector<1x8x16x8xf32> to vector<8x16x8xf32>
    %14 = vector.shape_cast %11 : vector<8x16x8xf32> to vector<1x8x16x8xf32>
    tpu.vector_store %arg4[%c0_5, %c0_6, %c0_7, %c0_8], %14 {strides = array<i32>} : memref<1x8x16x8xf32, #tpu.memory_space<vmem>>, vector<1x8x16x8xf32>,
    return
  }
  func.func @transform_0(%arg0: i32, %arg1: i32) -> (i32, i32, i32, i32) {
    %c0_i32 = arith.constant 0 : i32
    %c0_i32_0 = arith.constant 0 : i32
    %c0_i32_1 = arith.constant 0 : i32
    return %arg0, %arg1, %c0_i32, %c0_i32_0 : i32, i32, i32, i32
  }
  func.func @transform_1(%arg0: i32, %arg1: i32) -> (i32, i32) {
    %c0_i32 = arith.constant 0 : i32
    %c0_i32_0 = arith.constant 0 : i32
    %c0_i32_1 = arith.constant 0 : i32
    return %c0_i32, %c0_i32_0 : i32, i32
  }
  func.func @transform_2(%arg0: i32, %arg1: i32) -> (i32, i32, i32, i32) {
    %c0_i32 = arith.constant 0 : i32
    %c0_i32_0 = arith.constant 0 : i32
    %c0_i32_1 = arith.constant 0 : i32
    return %arg0, %arg1, %c0_i32, %c0_i32_0 : i32, i32, i32, i32
  }
}

</mosaic_0001>

<bundles_post_ra>
// kernel: double_conv_bn_forward.5
= control target key start
LH: loop header
LB: loop body
LE: loop exit
PB: predicated region body
PF: predicated region fallthrough
CT: control target
= control target key end

     0   :  { %s526_s9 = smov 0   ;;  %s528_s10 = smov 0   ;;  %s642_s0 = inlined_call_operand.vmem [shape: bf16[2,16,16,8], index: 0, kind: input, shape index: {}]   ;;  %s643_s1 = inlined_call_operand.vmem [shape: f32[2,8], index: 1, kind: input, shape index: {}]   ;;  %s644_s2 = inlined_call_operand.vmem [shape: f32[2,16,16,8], index: 2, kind: output, shape index: {}]  }
   0x1   :  { %s530_s11 = smov 0   ;;  %s532_s12 = smov 0  }
   0x2   :  { %s534_s13 = smov 0  }
   0x3 LB: > { %s21_s14 = sadd.s32 1, %s501_s11  ;;  %s24_s15 = sadd.s32 1, %s505_s12  ;;  %s509_s13 = sphi %s534_s13, %s12_s13   ;;  %s505_s12 = sphi %s532_s12, %s648_s12   ;;  %s501_s11 = sphi %s530_s11, %s647_s11   ;;  %s497_s10 = sphi %s528_s10, %s646_s10   ;;  %s493_s9 = sphi %s526_s9, %s645_s9  }
   0x4   : > { %p22_p0 = scmp.ge.s32.totalorder %s21_s14, 2  ;;  %p381_p1 = scmp.ge.s32.totalorder %s509_s13, 1 }
   0x5   : > { %p134_p2 = scmp.lt.s32.totalorder %s509_s13, 5 }
   0x6   : > { %s650_s14 = smov (%p22_p0, %s21_s14), 0  ;;  %s652_s15 = smov (!%p22_p0, %s24_s15), %s505_s12 }
   0x7   : > { %p135_p3 = pnand %p381_p1, %p134_p2  ;;  %p26_p4 = scmp.ge.s32.totalorder %s652_s15, 2 }
   0x8   : > { %s382_s16 = sshll.u32 (!%p135_p3), %s493_s9, 3  ;;  %p167_p5 = scmp.lt.s32.totalorder (!%p135_p3), %s497_s10, 1  ;;  %v221_v0 = vlaneseq (!%p135_p3)  ;;  %v188_v3 = vld [vmem:[%s643_s1] sm:$0x3] (!%p135_p3)  ;;  %vm261_vm0 = vcmask (!%p135_p3), 64512  }
   0x9   : > { %s654_s15 = smov (%p26_p4, %s652_s15), 0  ;;  %138 = sbr.rel (%p135_p3) target bundleno = 38 (0x26), region = 28 }
   0xa   : > { %p169_p6 = scmp.lt.s32.totalorder (!%p135_p3), %s382_s16, 15  ;;  %v222_v1 = vshrl.u32 (!%p135_p3), %v221_v0, 7 }
   0xc   : > { %v223_v2 = vsub.s32 (!%p135_p3), 0, %v222_v1  ;;  %v243_v4 = vsub.s32 (!%p135_p3), 1, %v222_v1 }
   0xe   : > { %v224_v5 = vrot.slane (!%p135_p3), %v188_v3, %v223_v2  ;;  %v565_v7 = vrot.slane (!%p135_p3), %v188_v3, %v243_v4 }
  0x10   : > { %s656_s10 = smov (!%p167_p5, %s497_s10), 1  ;;  %s658_s16 = smov (!%p169_p6, %s382_s16), 15 }
  0x11   : > { %s384_s17 = sshll.u32 %s656_s10, 5  ;;  %s383_s18 = sshll.u32 %s658_s16, 1 }
  0x12   : > { %s173_s21 = sadd.s32 %s384_s17, %s383_s18 }
  0x13   : > { %s385_s22 = sshll.u32 %s173_s21, 2  ;;  %s389_s26 = sshll.u32 %s173_s21, 3 }
  0x14   : > { %s562_s25 = scalar_lea.vmem %s642_s0, %s385_s22  ;;  %s573_s29 = scalar_lea.vmem %s644_s2, %s389_s26 }
  0x15   : > { %v393_v6 = vld [vmem:[%s562_s25] sm:$0xff]   ;;  %v424_v8 = vld [vmem:[%s562_s25 + $0x8] sm:$0xff]   ;;  %v425_v9 = vld [vmem:[%s562_s25 + $0x10] sm:$0xff]  }
  0x16   : > { %v394_v10 = vunpack.c.l.bf16 %v393_v6  ;;  %v395_v11 = vunpack.c.h.bf16 %v393_v6  ;;  %v398_v12 = vunpack.c.l.bf16 %v424_v8  ;;  %v399_v13 = vunpack.c.h.bf16 %v424_v8  ;;  %v426_v14 = vld [vmem:[%s562_s25 + $0x18] sm:$0xff]   ;;  %v427_v27 = vld [vmem:[%s562_s25 + $0x20] sm:$0xff]   ;;  %v428_v28 = vld [vmem:[%s562_s25 + $0x28] sm:$0xff]  }
  0x17   : > { %v402_v15 = vunpack.c.l.bf16 %v425_v9  ;;  %v403_v16 = vunpack.c.h.bf16 %v425_v9  ;;  %v406_v17 = vunpack.c.l.bf16 %v426_v14  ;;  %v407_v18 = vunpack.c.h.bf16 %v426_v14  ;;  %v429_v33 = vld [vmem:[%s562_s25 + $0x30] sm:$0xff]   ;;  %v430_v34 = vld [vmem:[%s562_s25 + $0x38] sm:$0xff]  }
  0x18   : > { %v225_v19 = vmul.f32 %v394_v10, %v224_v5  ;;  %v226_v20 = vmul.f32 %v395_v11, %v224_v5  ;;  %v227_v21 = vmul.f32 %v398_v12, %v224_v5  ;;  %v228_v22 = vmul.f32 %v399_v13, %v224_v5 }
  0x19   : > { %v229_v23 = vmul.f32 %v402_v15, %v224_v5  ;;  %v230_v24 = vmul.f32 %v403_v16, %v224_v5  ;;  %v231_v25 = vmul.f32 %v406_v17, %v224_v5  ;;  %v232_v26 = vmul.f32 %v407_v18, %v224_v5 }
  0x1a   : > { %v245_v29 = vadd.f32 %v565_v7, %v225_v19  ;;  %v246_v30 = vadd.f32 %v565_v7, %v226_v20  ;;  %v247_v31 = vadd.f32 %v565_v7, %v227_v21  ;;  %v248_v32 = vadd.f32 %v565_v7, %v228_v22 }
  0x1b   : > { %v249_v35 = vadd.f32 %v565_v7, %v229_v23  ;;  %v250_v36 = vadd.f32 %v565_v7, %v230_v24  ;;  %v251_v37 = vadd.f32 %v565_v7, %v231_v25  ;;  %v252_v38 = vadd.f32 %v565_v7, %v232_v26 }
  0x1c   : > { %262 = vst.msk [vmem:[%s573_s29] sm:$0xff] %vm261_vm0, %v245_v29  ;;  %263 = vst.msk [vmem:[%s573_s29 + $0x8] sm:$0xff] %vm261_vm0, %v246_v30  ;;  %v410_v39 = vunpack.c.l.bf16 %v427_v27  ;;  %v411_v40 = vunpack.c.h.bf16 %v427_v27  ;;  %v414_v41 = vunpack.c.l.bf16 %v428_v28  ;;  %v415_v42 = vunpack.c.h.bf16 %v428_v28 }
  0x1d   : > { %264 = vst.msk [vmem:[%s573_s29 + $0x10] sm:$0xff] %vm261_vm0, %v247_v31  ;;  %265 = vst.msk [vmem:[%s573_s29 + $0x18] sm:$0xff] %vm261_vm0, %v248_v32  ;;  %v418_v43 = vunpack.c.l.bf16 %v429_v33  ;;  %v419_v44 = vunpack.c.h.bf16 %v429_v33  ;;  %v422_v45 = vunpack.c.l.bf16 %v430_v34  ;;  %v423_v46 = vunpack.c.h.bf16 %v430_v34 }
  0x1e   : > { %266 = vst.msk [vmem:[%s573_s29 + $0x20] sm:$0xff] %vm261_vm0, %v249_v35  ;;  %267 = vst.msk [vmem:[%s573_s29 + $0x28] sm:$0xff] %vm261_vm0, %v250_v36  ;;  %v233_v47 = vmul.f32 %v410_v39, %v224_v5  ;;  %v234_v48 = vmul.f32 %v411_v40, %v224_v5  ;;  %v235_v49 = vmul.f32 %v414_v41, %v224_v5 }
  0x1f   : > { %268 = vst.msk [vmem:[%s573_s29 + $0x30] sm:$0xff] %vm261_vm0, %v251_v37  ;;  %269 = vst.msk [vmem:[%s573_s29 + $0x38] sm:$0xff] %vm261_vm0, %v252_v38  ;;  %v236_v50 = vmul.f32 %v415_v42, %v224_v5  ;;  %v237_v51 = vmul.f32 %v418_v43, %v224_v5  ;;  %v238_v52 = vmul.f32 %v419_v44, %v224_v5 }
  0x20   : > { %v239_v53 = vmul.f32 %v422_v45, %v224_v5  ;;  %v240_v54 = vmul.f32 %v423_v46, %v224_v5  ;;  %v253_v55 = vadd.f32 %v565_v7, %v233_v47  ;;  %v254_v56 = vadd.f32 %v565_v7, %v234_v48 }
  0x21   : > { %v255_v57 = vadd.f32 %v565_v7, %v235_v49  ;;  %v256_v58 = vadd.f32 %v565_v7, %v236_v50  ;;  %v257_v59 = vadd.f32 %v565_v7, %v237_v51  ;;  %v258_v60 = vadd.f32 %v565_v7, %v238_v52 }
  0x22   : > { %v259_v61 = vadd.f32 %v565_v7, %v239_v53  ;;  %v260_v62 = vadd.f32 %v565_v7, %v240_v54  ;;  %270 = vst.msk [vmem:[%s573_s29 + $0x40] sm:$0xff] %vm261_vm0, %v253_v55  ;;  %271 = vst.msk [vmem:[%s573_s29 + $0x48] sm:$0xff] %vm261_vm0, %v254_v56 }
  0x23   : > { %272 = vst.msk [vmem:[%s573_s29 + $0x50] sm:$0xff] %vm261_vm0, %v255_v57  ;;  %273 = vst.msk [vmem:[%s573_s29 + $0x58] sm:$0xff] %vm261_vm0, %v256_v58 }
  0x24   : > { %274 = vst.msk [vmem:[%s573_s29 + $0x60] sm:$0xff] %vm261_vm0, %v257_v59  ;;  %275 = vst.msk [vmem:[%s573_s29 + $0x68] sm:$0xff] %vm261_vm0, %v258_v60 }
  0x25   : > { %276 = vst.msk [vmem:[%s573_s29 + $0x70] sm:$0xff] %vm261_vm0, %v259_v61  ;;  %277 = vst.msk [vmem:[%s573_s29 + $0x78] sm:$0xff] %vm261_vm0, %v260_v62 }
  0x26 PF: > { %s12_s13 = sadd.s32 1, %s509_s13   ;;  %s645_s9 = smov %s501_s11 }
  0x27   : > { %p9_p7 = scmp.ge.s32.totalorder %s12_s13, 6   ;;  %s646_s10 = smov %s505_s12 }
  0x28   : > { %s647_s11 = smov %s650_s14  ;;  %s648_s12 = smov %s654_s15 }
  0x29   :  { %11 = sbr.rel (!%p9_p7) target bundleno = 3 (0x3), region = 58 }

// kernel: double_conv_bn_forward.4
= control target key start
LH: loop header
LB: loop body
LE: loop exit
PB: predicated region body
PF: predicated region fallthrough
CT: control target
= control target key end

     0   :  { %s4552_s21 = smov 0   ;;  %s4554_s22 = smov 0   ;;  %s5907_s0 = inlined_call_operand.vmem [shape: bf16[2,18,18,8], index: 0, kind: input, shape index: {}]   ;;  %s5908_s1 = inlined_call_operand.vmem [shape: bf16[4,2,18,8], index: 1, kind: input, shape index: {}]   ;;  %s5909_s2 = inlined_call_operand.vmem [shape: bf16[9,8,8], index: 2, kind: input, shape index: {}]   ;;  %s5910_s3 = inlined_call_operand.vmem [shape: f32[1,8], index: 3, kind: input, shape index: {}]   ;;  %s5911_s4 = inlined_call_operand.vmem [shape: f32[2,8], index: 4, kind: input, shape index: {}]   ;;  %s5912_s5 = inlined_call_operand.vmem [shape: bf16[2,16,16,8], index: 5, kind: output, shape index: {0}]   ;;  %s5913_s6 = inlined_call_operand.vmem [shape: f32[4,2,8], index: 6, kind: output, shape index: {1}]  }
   0x1   :  { %s4556_s23 = smov 0   ;;  %s4558_s24 = smov 0  }
   0x2   :  { %s4560_s25 = smov 0  }
   0x3 LB: > { %s26_s26 = sadd.s32 1, %s4507_s23  ;;  %s29_s27 = sadd.s32 1, %s4511_s24  ;;  %s4515_s25 = sphi %s4560_s25, %s17_s25   ;;  %s4511_s24 = sphi %s4558_s24, %s5983_s24   ;;  %s4507_s23 = sphi %s4556_s23, %s5982_s23   ;;  %s4503_s22 = sphi %s4554_s22, %s5981_s22   ;;  %s4499_s21 = sphi %s4552_s21, %s5980_s21  }
   0x4   : > { %p27_p0 = scmp.ge.s32.totalorder %s26_s26, 2  ;;  %p3724_p1 = scmp.ge.s32.totalorder %s4515_s25, 1 }
   0x5   : > { %p269_p2 = scmp.lt.s32.totalorder %s4515_s25, 5 }
   0x6   : > { %s5985_s26 = smov (%p27_p0, %s26_s26), 0  ;;  %s5987_s27 = smov (!%p27_p0, %s29_s27), %s4511_s24 }
   0x7   : > { %p270_p3 = pnand %p3724_p1, %p269_p2  ;;  %p31_p4 = scmp.ge.s32.totalorder %s5987_s27, 2 }
   0x9   : > { %s5989_s27 = smov (%p31_p4, %s5987_s27), 0  ;;  %273 = sbr.rel (%p270_p3) target bundleno = 499 (0x1f3), region = 40 }
  0x10   : > { %v3766_v0 = vld [vmem:[%s5909_s2 + $0x4] sm:$0xf]  ;;  %vm1141_vm0 = vcmask 1043456   ;;  %v3841_v1 = vld [vmem:[%s5909_s2 + $0x10] sm:$0xf]  ;;  %s4593_s8 = sshll.u32 %s4499_s21, 3  ;;  %v379_v2 = vlaneseq }
  0x11   : > { %4403 = vmatprep.subr.msk.bf16.mxu1 %vm1141_vm0, %v3766_v0  ;;  %4407 = vmatprep.subr.msk.bf16.mxu0 %vm1141_vm0, %v3841_v1  ;;  %v1143_v3 = vsel %vm1141_vm0, %v3766_v0, 0  ;;  %v4599_v4 = vsel %vm1141_vm0, %v3841_v1, 0  ;;  %p333_p5 = scmp.lt.s32.totalorder %s4503_s22, 1  ;;  %p335_p6 = scmp.lt.s32.totalorder %s4593_s8, 17  ;;  %v4604_v5 = vstv %s4593_s8  ;;  %v4614_v7 = vld [vmem:[%s5909_s2] sm:$0xf] }
  0x12   : > { %5918 = vst [vmem:[#allocation3_spill] sm:$0xff] %v4599_v4  ;;  %4112 = vmatpush3.bf16.msra.mxu1 %v1143_v3  ;;  %4184 = vmatpush3.bf16.msra.mxu0 %v4599_v4  ;;  %v4607_v6 = vshrl.u32 %v379_v2, 7  ;;  %vm424_vm1 = vcmp.ge.s32.totalorder %v4604_v5, 1  ;;  %vm432_vm2 = vcmp.lt.s32.totalorder %v4604_v5, 17  ;;  %v378_v8 = vld [vmem:[%s5911_s4] sm:$0x3] }
  0x13   : > { %s4617_s11 = scalar_select %p333_p5, %s4503_s22, 1  ;;  %vm4622_vm3 = vmand %vm424_vm1, %vm432_vm2  ;;  %4404 = vmatprep.subr.msk.bf16.mxu1 %vm1141_vm0, %v4614_v7  ;;  %v417_v13 = vadd.s32 1, %v4604_v5  ;;  %v4640_v14 = vld [vmem:[%s5909_s2 + $0x14] sm:$0xf]  ;;  %v418_v17 = vadd.s32 2, %v4604_v5  ;;  %v419_v19 = vadd.s32 3, %v4604_v5 }
  0x14   : > { %s336_s14 = scalar_select %p335_p6, %s4593_s8, 17  ;;  %v4630_v10 = vadd.s32 16, %v4607_v6  ;;  %vm383_vm4 = vcmp.ge.s32.totalorder %v4607_v6, 1  ;;  %v520_v11 = vsub.s32 0, %v4607_v6  ;;  %v596_v12 = vsub.s32 1, %v4607_v6  ;;  %4409 = vmatprep.subr.msk.bf16.mxu0 %vm1141_vm0, %v4640_v14 }
  0x15   : > { %s4414_s15 = smul.u32 54, %s4617_s11  ;;  %vm4647_vm6 = vmand %vm4622_vm3, %vm383_vm4  ;;  %vm425_vm8 = vcmp.ge.s32.totalorder %v417_v13, 1  ;;  %vm433_vm9 = vcmp.lt.s32.totalorder %v417_v13, 17  ;;  %vm750_vm11 = vcmask 60416   ;;  %vm753_vm12 = vcmask 57344   ;;  %s3727_s13 = sshll.u32 %s4503_s22, 1 }
  0x16   : > { %s4413_s18 = smul.u32 3, %s336_s14  ;;  %vm388_vm5 = vcmp.lt.s32.totalorder %v4630_v10, 17  ;;  %v4651_v16 = vrot.slane %v378_v8, %v596_v12  ;;  %v4665_v20 = vrot.slane %v378_v8, %v520_v11  ;;  %vm4667_vm10 = vmand %vm425_vm8, %vm433_vm9  ;;  %vm426_vm14 = vcmp.ge.s32.totalorder %v418_v17, 1  ;;  %s5169_s22 = sadd.s32 %s4499_s21, %s3727_s13 }
  0x17   : > { %vm4660_vm7 = vmand %vm4622_vm3, %vm388_vm5  ;;  %vm434_vm1 = vcmp.lt.s32.totalorder %v418_v17, 17  ;;  %vm427_vm2 = vcmp.ge.s32.totalorder %v419_v19, 1  ;;  %p350_p7 = scmp.lt.s32.totalorder %s5169_s22, 3  ;;  %p360_p8 = scmp.lt.s32.totalorder %s4593_s8, 15 }
  0x18   : > { %s339_s19 = sadd.s32 %s4414_s15, %s4413_s18  ;;  %v598_v22 = vsel %vm4647_vm6, %v4651_v16, 0.0  ;;  %v599_v23 = vsel %vm4622_vm3, %v4651_v16, 0.0  ;;  %v600_v24 = vsel %vm4660_vm7, %v4651_v16, 0.0  ;;  %vm4684_vm13 = vmand %vm4667_vm10, %vm383_vm4  ;;  %v602_v27 = vsel %vm4667_vm10, %v4651_v16, 0.0  ;;  %s3731_s12 = sshll.u32 %s4617_s11, 5 }
  0x19   : > { %s3726_s20 = sshll.u32 %s339_s19, 2  ;;  %vm4697_vm15 = vmand %vm4667_vm10, %vm388_vm5  ;;  %vm435_vm3 = vcmp.lt.s32.totalorder %v419_v19, 17  ;;  %v601_v31 = vsel %vm4684_vm13, %v4651_v16, 0.0  ;;  %s5991_s22 = smov (!%p350_p7, %s5169_s22), 3 }
  0x1a   : > { %s4691_s30 = scalar_lea.vmem %s5907_s0, %s3726_s20  ;;  %v603_v32 = vsel %vm4697_vm15, %v4651_v16, 0.0  ;;  %vm4718_vm6 = vmand %vm426_vm14, %vm434_vm1  ;;  %vm895_vm14 = vsmask.f32 3328  ;;  %vm896_vm15 = vsmask.f32 7440  ;;  %vm1116_vm1 = vcmask 64512  }
  0x1b   : > { %v4008_v28 = vld [vmem:[%s4691_s30] sm:$0xff]   ;;  %v394_v29 = vld [vmem:[%s4691_s30 + $0x8] sm:$0x1]  ;;  %v395_v30 = vld [vmem:[%s4691_s30 + $0xc] sm:$0xff]   ;;  %v605_v17 = vsel %vm4718_vm6, %v4651_v16, 0.0  ;;  %s4415_s15 = smul.u32 24, %s5991_s22 }
  0x1c   : > { %v4009_v33 = vunpack.c.l.bf16 %v4008_v28  ;;  %v4010_v34 = vunpack.c.h.bf16 %v4008_v28  ;;  %v496_v35 = vunpack.c.l.bf16 %v394_v29  ;;  %v397_v36 = vld [vmem:[%s4691_s30 + $0x14] sm:$0x1]  ;;  %v497_v37 = vunpack.c.l.bf16 %v395_v30  ;;  %v4027_v38 = vld [vmem:[%s4691_s30 + $0x18] sm:$0xff]   ;;  %v400_v39 = vld [vmem:[%s4691_s30 + $0x20] sm:$0x1]  ;;  %s782_s19 = sadd.s32 8, %s4593_s8 }
  0x1d   : > { %v498_v40 = vunpack.c.h.bf16 %v395_v30  ;;  %v499_v41 = vunpack.c.l.bf16 %v397_v36  ;;  %v4013_v42 = vunpack.c.l.bf16 %v4027_v38  ;;  %v4014_v43 = vunpack.c.h.bf16 %v4027_v38  ;;  %vm4732_vm7 = vmand %vm4718_vm6, %vm383_vm4  ;;  %v401_v0 = vld [vmem:[%s4691_s30 + $0x24] sm:$0xff]   ;;  %v403_v9 = vld [vmem:[%s4691_s30 + $0x2c] sm:$0x1]  ;;  %s5259_s18 = scalar_lea.vmem %s5908_s1, %s4415_s15  ;;  %s5993_s8 = smov (!%p360_p8, %s4593_s8), 15 }
  0x1e   : > { %v522_v45 = vmul.f32 %v4009_v33, %v4665_v20  ;;  %v523_v46 = vmul.f32 %v4010_v34, %v4665_v20  ;;  %v524_v47 = vmul.f32 %v4665_v20, %v496_v35  ;;  %v525_v48 = vmul.f32 %v4665_v20, %v497_v37  ;;  %vm4739_vm8 = vmand %vm427_vm2, %vm435_vm3  ;;  %v4028_v28 = vld [vmem:[%s4691_s30 + $0x30] sm:$0xff]   ;;  %v406_v33 = vld [vmem:[%s4691_s30 + $0x38] sm:$0x1]  ;;  %s3730_s10 = sshll.u32 %s5993_s8, 1  ;;  %s3734_s17 = sshll.u32 %s5991_s22, 1 }
  0x1f   : > { %v526_v49 = vmul.f32 %v4665_v20, %v498_v40  ;;  %v527_v50 = vmul.f32 %v4665_v20, %v499_v41  ;;  %v502_v52 = vunpack.c.l.bf16 %v400_v39  ;;  %v528_v53 = vmul.f32 %v4013_v42, %v4665_v20  ;;  %vm4747_vm9 = vmand %vm4718_vm6, %vm388_vm5  ;;  %s364_s14 = sadd.s32 %s3731_s12, %s3730_s10  ;;  %s373_s20 = scalar_lea.vmem %s5913_s6, %s3734_s17 }
  0x20   : > { %v622_v54 = vadd.f32 %v598_v22, %v522_v45  ;;  %v623_v55 = vadd.f32 %v599_v23, %v523_v46  ;;  %v624_v56 = vadd.f32 %v600_v24, %v524_v47  ;;  %v625_v57 = vadd.f32 %v601_v31, %v525_v48  ;;  %vm4759_vm10 = vmand %vm4739_vm8, %vm383_vm4  ;;  %v4815_v47 = vld [vmem:[%s4691_s30 + $0x3c] sm:$0xff]   ;;  %s3732_s15 = sshll.u32 %s364_s14, 2 }
  0x21   : > { %v626_v59 = vadd.f32 %v602_v27, %v526_v49  ;;  %v627_v60 = vadd.f32 %v603_v32, %v527_v50  ;;  %v529_v62 = vmul.f32 %v4014_v43, %v4665_v20  ;;  %v530_v63 = vmul.f32 %v4665_v20, %v502_v52  ;;  %vm4780_vm13 = vmand %vm4739_vm8, %vm388_vm5  ;;  %s5803_s16 = scalar_lea.vmem %s5912_s5, %s3732_s15 }
  0x22   : > { %v3961_v1 = vpack.c.bf16 %v622_v54, %v622_v54  ;;  %v3962_v2 = vpack.c.bf16 %v623_v55, %v623_v55  ;;  %v3963_v3 = vpack.c.bf16 %v624_v56, %v624_v56  ;;  %v3964_v8 = vpack.c.bf16 %v625_v57, %v625_v57  ;;  %vm4855_vm2 = vmor %vm895_vm14, %vm896_vm15 }
  0x23   : > { %v3965_v12 = vpack.c.bf16 %v626_v59, %v626_v59  ;;  %v3966_v13 = vpack.c.bf16 %v627_v60, %v627_v60  ;;  %v604_v15 = vsel %vm4732_vm7, %v4651_v16, 0.0  ;;  %v606_v18 = vsel %vm4747_vm9, %v4651_v16, 0.0 }
  0x24   : > { %751 = vst.msk [vmem:[#allocation2] sm:$0xf] %vm750_vm11, %v3961_v1  ;;  %752 = vst.msk [vmem:[#allocation2 + $0x4] sm:$0xf] %vm750_vm11, %v3962_v2  ;;  %v628_v19 = vadd.f32 %v604_v15, %v528_v53  ;;  %v629_v21 = vadd.f32 %v605_v17, %v529_v62  ;;  %v503_v23 = vunpack.c.l.bf16 %v401_v0  ;;  %v630_v24 = vadd.f32 %v606_v18, %v530_v63  ;;  %v4847_v15 = vld [vmem:[%s4691_s30 + $0x44] sm:$0x1] }
  0x25   : > { %754 = vst.msk [vmem:[#allocation2 + $0x8] sm:$0x1] %vm753_vm12, %v3963_v3  ;;  %757 = vst.msk [vmem:[#allocation2 + $0x14] sm:$0x1] %vm753_vm12, %v3966_v13  ;;  %v504_v25 = vunpack.c.h.bf16 %v401_v0  ;;  %v505_v26 = vunpack.c.l.bf16 %v403_v9  ;;  %v607_v27 = vsel %vm4759_vm10, %v4651_v16, 0.0  ;;  %v608_v32 = vsel %vm4739_vm8, %v4651_v16, 0.0 }
  0x26   : > { %755 = vst.msk [vmem:[#allocation2 + $0xc] sm:$0xf] %vm750_vm11, %v3964_v8  ;;  %756 = vst.msk [vmem:[#allocation2 + $0x10] sm:$0xf] %vm750_vm11, %v3965_v12  ;;  %v3967_v29 = vpack.c.bf16 %v628_v19, %v628_v19  ;;  %v3968_v30 = vpack.c.bf16 %v629_v21, %v629_v21  ;;  %v531_v31 = vmul.f32 %v4665_v20, %v503_v23  ;;  %v609_v37 = vsel %vm4780_vm13, %v4651_v16, 0.0 }
  0x27   : > { %v3969_v34 = vpack.c.bf16 %v630_v24, %v630_v24  ;;  %v532_v35 = vmul.f32 %v4665_v20, %v504_v25  ;;  %v533_v36 = vmul.f32 %v4665_v20, %v505_v26  ;;  %v4802_v38 = vsel %vm1141_vm0, %v4614_v7, 0 }
  0x28   : > { %758 = vst.msk [vmem:[#allocation2 + $0x18] sm:$0xf] %vm750_vm11, %v3967_v29  ;;  %759 = vst.msk [vmem:[#allocation2 + $0x1c] sm:$0xf] %vm750_vm11, %v3968_v30  ;;  %v631_v39 = vadd.f32 %v607_v27, %v531_v31  ;;  %v4017_v40 = vunpack.c.l.bf16 %v4028_v28  ;;  %v4018_v43 = vunpack.c.h.bf16 %v4028_v28  ;;  %v508_v44 = vunpack.c.l.bf16 %v406_v33 }
  0x29   : > { %760 = vst.msk [vmem:[#allocation2 + $0x20] sm:$0x1] %vm753_vm12, %v3969_v34  ;;  %v632_v41 = vadd.f32 %v608_v32, %v532_v35  ;;  %v633_v42 = vadd.f32 %v609_v37, %v533_v36  ;;  %v4809_v45 = vsel %vm1141_vm0, %v4640_v14, 0  ;;  %v4812_v7 = vadd.s32 4, %v4604_v5 }
  0x2a   : > { %v3970_v46 = vpack.c.bf16 %v631_v39, %v631_v39  ;;  %v4818_v48 = vadd.s32 5, %v4604_v5  ;;  %v4825_v54 = vmul.f32 %v4017_v40, %v4665_v20  ;;  %v4839_v62 = vmul.f32 %v4018_v43, %v4665_v20 }
  0x2b   : > { %v4820_v49 = vld [vmem:[#allocation2] sm:$0xf]  ;;  %v4822_v50 = vld [vmem:[#allocation2 + $0x4] sm:$0xf]  ;;  %v3971_v52 = vpack.c.bf16 %v632_v41, %v632_v41  ;;  %v3972_v53 = vpack.c.bf16 %v633_v42, %v633_v42  ;;  %v4842_v63 = vmul.f32 %v4665_v20, %v508_v44  ;;  %v509_v0 = vunpack.c.l.bf16 %v4815_v47 }
  0x2c   : > { %v887_v51 = vld [vmem:[#allocation2 + $0x8] sm:$0x1]  ;;  %v899_v14 = vshrl.u32 %v4820_v49, 16  ;;  %v902_v55 = vshll.u32 %v4820_v49, 16  ;;  %v908_v56 = vshll.u32 %v4822_v50, 16  ;;  %v912_v57 = vshrl.u32 %v4822_v50, 16 }
  0x2d   : > { %v1854_v58 = vld [vmem:[#allocation2 + $0xc] sm:$0xf]  ;;  %761 = vst.msk [vmem:[#allocation2 + $0x24] sm:$0xf] %vm750_vm11, %v3970_v46  ;;  %v918_v59 = vshll.u32 %v887_v51, 16  ;;  %v510_v28 = vunpack.c.h.bf16 %v4815_v47  ;;  %v511_v32 = vunpack.c.l.bf16 %v4847_v15  ;;  %vm428_vm3 = vcmp.ge.s32.totalorder %v4812_v7, 1 }
  0x2e   : > { %v4832_v60 = vld [vmem:[#allocation2 + $0x10] sm:$0xf]  ;;  %v4834_v61 = vld [vmem:[#allocation2 + $0x14] sm:$0x1]  ;;  %762 = vst.msk [vmem:[#allocation2 + $0x28] sm:$0xf] %vm750_vm11, %v3971_v52 }
  0x2f   : > { %763 = vst.msk [vmem:[#allocation2 + $0x2c] sm:$0x1] %vm753_vm12, %v3972_v53  ;;  %v901_v1 = vrot.slane %v899_v14, 4  ;;  %v904_v2 = vrot.slane %v902_v55, 5  ;;  %v910_v3 = vrot.slane %v908_v56, 5  ;;  %v914_v8 = vrot.slane %v912_v57, 4 }
  0x30   : > { %v920_v9 = vrot.slane %v918_v59, 5  ;;  %v1879_v11 = vshrl.u32 %v1854_v58, 16  ;;  %v1882_v12 = vshll.u32 %v1854_v58, 16  ;;  %v1888_v13 = vshll.u32 %v4832_v60, 16  ;;  %v4851_v22 = vld [vmem:[#allocation2 + $0xc] sm:$0xf] }
  0x31   : > { %v905_v17 = vor.u32 %v904_v2, %v901_v1  ;;  %v915_v18 = vor.u32 %v914_v8, %v910_v3  ;;  %v1892_v19 = vshrl.u32 %v4832_v60, 16  ;;  %v1898_v21 = vshll.u32 %v4834_v61, 16  ;;  %v4859_v27 = vld [vmem:[#allocation2 + $0x10] sm:$0xf]  ;;  %v4863_v35 = vld [vmem:[#allocation2 + $0x14] sm:$0x1] }
  0x32   : > { %v1881_v24 = vrot.slane %v1879_v11, 4  ;;  %v1884_v25 = vrot.slane %v1882_v12, 5  ;;  %v1890_v26 = vrot.slane %v1888_v13, 5  ;;  %v923_v36 = vshrl.u32 %v4851_v22, 16  ;;  %v1857_v52 = vld [vmem:[#allocation2 + $0x18] sm:$0xf] }
  0x33   : > { %v906_v29 = vrot.slane %v905_v17, 4  ;;  %v916_v30 = vrot.slane %v915_v18, 4  ;;  %v1894_v31 = vrot.slane %v1892_v19, 4  ;;  %v1900_v34 = vrot.slane %v1898_v21, 5  ;;  %v4874_v57 = vld [vmem:[#allocation2 + $0x1c] sm:$0xf] }
  0x34   : > { %v1885_v33 = vor.u32 %v1884_v25, %v1881_v24  ;;  %v926_v37 = vshll.u32 %v4851_v22, 16  ;;  %v932_v42 = vshll.u32 %v4859_v27, 16  ;;  %v925_v46 = vrot.slane %v923_v36, 4  ;;  %v4888_v21 = vld [vmem:[#allocation2 + $0x18] sm:$0xf] }
  0x35   : > { %v911_v39 = vsel %vm4855_vm2, %v906_v29, %v910_v3  ;;  %v921_v40 = vsel %vm4855_vm2, %v916_v30, %v920_v9  ;;  %v1895_v41 = vor.u32 %v1894_v31, %v1890_v26  ;;  %v936_v55 = vshrl.u32 %v4859_v27, 16  ;;  %v4881_v3 = vld [vmem:[#allocation2 + $0x20] sm:$0x1]  ;;  %v4892_v30 = vld [vmem:[#allocation2 + $0x1c] sm:$0xf] }
  0x36   : > { %v3767_v43 = vcombine.low %v911_v39, %v921_v40  ;;  %v1886_v44 = vrot.slane %v1885_v33, 4  ;;  %v928_v51 = vrot.slane %v926_v37, 5  ;;  %v934_v14 = vrot.slane %v932_v42, 5  ;;  %v889_v37 = vld [vmem:[#allocation2 + $0x20] sm:$0x1] }
  0x37   : > { %v1896_v53 = vrot.slane %v1895_v41, 4  ;;  %v942_v56 = vshll.u32 %v4863_v35, 16  ;;  %v2270_v59 = vrot.slane %v4832_v60, 5  ;;  %v2273_v1 = vrot.slane %v4834_v61, 5 }
  0x38   : > { %4113 = vmatprep.mubr.msk.bf16.mxu1 %vm1116_vm1, %v3767_v43  ;;  %v1891_v58 = vsel %vm4855_vm2, %v1886_v44, %v1890_v26  ;;  %v929_v2 = vor.u32 %v928_v51, %v925_v46  ;;  %v938_v9 = vrot.slane %v936_v55, 4  ;;  %v1903_v12 = vshrl.u32 %v1857_v52, 16  ;;  %v1860_v43 = vld [vmem:[#allocation2 + $0x24] sm:$0xf] }
  0x39   : > { %v1901_v8 = vsel %vm4855_vm2, %v1896_v53, %v1900_v34  ;;  %v944_v11 = vrot.slane %v942_v56, 5  ;;  %vm436_vm6 = vcmp.lt.s32.totalorder %v4812_v7, 17  ;;  %v1906_v18 = vshll.u32 %v1857_v52, 16  ;;  %v4905_v53 = vld [vmem:[#allocation2 + $0x28] sm:$0xf] }
  0x3a   : > { %v3842_v13 = vcombine.low %v1891_v58, %v1901_v8  ;;  %v930_v17 = vrot.slane %v929_v2, 4  ;;  %v1912_v19 = vshll.u32 %v4874_v57, 16  ;;  %v939_v24 = vor.u32 %v938_v9, %v934_v14  ;;  %vm4933_vm9 = vmand %vm428_vm3, %vm436_vm6 }
  0x3b   : > { %v1905_v25 = vrot.slane %v1903_v12, 4  ;;  %v1916_v26 = vshrl.u32 %v4874_v57, 16  ;;  %v1922_v29 = vshll.u32 %v4881_v3, 16  ;;  %v1908_v33 = vrot.slane %v1906_v18, 5  ;;  %vm4962_vm13 = vmand %vm4933_vm9, %vm383_vm4 }
  0x3c   : > { %4185 = vmatprep.mubr.msk.bf16.mxu0 %vm1116_vm1, %v3842_v13  ;;  %v935_v31 = vsel %vm4855_vm2, %v930_v17, %v934_v14  ;;  %v1914_v34 = vrot.slane %v1912_v19, 5  ;;  %v2277_v36 = vrot.slane %v4874_v57, 5  ;;  %v940_v39 = vrot.slane %v939_v24, 4  ;;  %v4914_v24 = vld [vmem:[%s5909_s2 + $0x8] sm:$0xf]  ;;  %vm4970_vm14 = vmand %vm4933_vm9, %vm388_vm5 }
  0x3d   : > { %v1918_v40 = vrot.slane %v1916_v26, 4  ;;  %v1924_v41 = vrot.slane %v1922_v29, 5  ;;  %v2280_v42 = vrot.slane %v4881_v3, 5  ;;  %v1909_v44 = vor.u32 %v1908_v33, %v1905_v25  ;;  %v4919_v26 = vld [vmem:[#allocation2 + $0x2c] sm:$0x1] }
  0x3e   : > { %v4901_v46 = vrot.slane %v2277_v36, 4  ;;  %v947_v51 = vshrl.u32 %v4888_v21, 16  ;;  %v950_v52 = vshll.u32 %v4888_v21, 16  ;;  %v945_v14 = vsel %vm4855_vm2, %v940_v39, %v944_v11 }
  0x3f   : > { %v1919_v55 = vor.u32 %v1918_v40, %v1914_v34  ;;  %v956_v56 = vshll.u32 %v4892_v30, 16  ;;  %v960_v58 = vshrl.u32 %v4892_v30, 16  ;;  %v3768_v2 = vcombine.low %v935_v31, %v945_v14 }
  0x40   : > { %v1910_v8 = vrot.slane %v1909_v44, 4  ;;  %v949_v9 = vrot.slane %v947_v51, 4  ;;  %v952_v12 = vrot.slane %v950_v52, 5  ;;  %v966_v19 = vshll.u32 %v889_v37, 16  ;;  %v4925_v44 = vld [vmem:[#allocation2 + $0x24] sm:$0xf] }
  0x41   : > { %v1920_v13 = vrot.slane %v1919_v55, 4  ;;  %v958_v17 = vrot.slane %v956_v56, 5  ;;  %v962_v18 = vrot.slane %v960_v58, 4  ;;  %vm1430_vm7 = vcmask 1042432   ;;  %4114 = vmatmul.mubr.msk.bf16.vlgmr.msra.gmra.mrb[0].mxu1 %vm1116_vm1, %v3768_v2  ;;  %v4927_v55 = vld [vmem:[#allocation2 + $0x28] sm:$0xf] }
  0x42   : > { %vm1431_vm8 = vcmask 1046532   ;;  %v1915_v11 = vsel %vm4855_vm2, %v1910_v8, %v1914_v34  ;;  %v953_v25 = vor.u32 %v952_v12, %v949_v9  ;;  %v1927_v29 = vshrl.u32 %v1860_v43, 16  ;;  %4130 = vmatpush3.bf16.msra.mxu1 %v4802_v38  ;;  %v4944_v2 = vld [vmem:[%s5909_s2 + $0x18] sm:$0xf]  ;;  %v4949_v9 = vld [vmem:[#allocation2 + $0x2c] sm:$0x1] }
  0x43   : > { %v1930_v31 = vshll.u32 %v1860_v43, 16  ;;  %v1925_v33 = vsel %vm4855_vm2, %v1920_v13, %v1924_v41  ;;  %v963_v37 = vor.u32 %v962_v18, %v958_v17  ;;  %v968_v39 = vrot.slane %v966_v19, 5  ;;  %4405 = vmatprep.subr.msk.bf16.mxu1 %vm1141_vm0, %v4914_v24  ;;  %vm4995_vm15 = vmor %vm1430_vm7, %vm1431_vm8 }
  0x44   : > { %v1936_v40 = vshll.u32 %v4905_v53, 16  ;;  %v3843_v51 = vcombine.low %v1915_v11, %v1925_v33  ;;  %v954_v52 = vrot.slane %v953_v25, 4  ;;  %v1929_v14 = vrot.slane %v1927_v29, 4 }
  0x45   : > { %v1932_v34 = vrot.slane %v1930_v31, 5  ;;  %v964_v41 = vrot.slane %v963_v37, 4  ;;  %v1940_v56 = vshrl.u32 %v4905_v53, 16  ;;  %v1946_v58 = vshll.u32 %v4919_v26, 16 }
  0x46   : > { %v1938_v43 = vrot.slane %v1936_v40, 5  ;;  %4186 = vmatmul.mubr.msk.bf16.vlgmr.msra.gmra.mrb[0].mxu0 %vm1116_vm1, %v3843_v51  ;;  %v959_v7 = vsel %vm4855_vm2, %v954_v52, %v958_v17  ;;  %v971_v12 = vshrl.u32 %v4925_v44, 16  ;;  %v974_v13 = vshll.u32 %v4925_v44, 16 }
  0x47   : > { %v1933_v8 = vor.u32 %v1932_v34, %v1929_v14  ;;  %vm429_vm10 = vcmp.ge.s32.totalorder %v4818_v48, 1  ;;  %4202 = vmatpush3.bf16.msra.mxu0 %v4809_v45  ;;  %v969_v18 = vsel %vm4855_vm2, %v964_v41, %v968_v39  ;;  %v1942_v19 = vrot.slane %v1940_v56, 4  ;;  %v2236_v39 = vld [vmem:[#allocation2 + $0xc] sm:$0xe]  ;;  %v2237_v45 = vld [vmem:[#allocation2 + $0x18] sm:$0xe] }
  0x48   : > { %v1948_v11 = vrot.slane %v1946_v58, 5  ;;  %v980_v25 = vshll.u32 %v4927_v55, 16  ;;  %v3769_v29 = vcombine.low %v959_v7, %v969_v18  ;;  %v973_v33 = vrot.slane %v971_v12, 4  ;;  %4410 = vmatprep.subr.msk.bf16.mxu0 %vm1141_vm0, %v4944_v2 }
  0x49   : > { %v1934_v31 = vrot.slane %v1933_v8, 4  ;;  %v976_v37 = vrot.slane %v974_v13, 5  ;;  %v1943_v40 = vor.u32 %v1942_v19, %v1938_v43  ;;  %v984_v52 = vshrl.u32 %v4927_v55, 16 }
  0x4a   : > { %v982_v51 = vrot.slane %v980_v25, 5  ;;  %v990_v14 = vshll.u32 %v4949_v9, 16  ;;  %4117 = vmatprep.mubr.msk.bf16.mxu1 %vm1116_vm1, %v3769_v29  ;;  %v610_v56 = vsel %vm4962_vm13, %v4651_v16, 0.0  ;;  %v611_v58 = vsel %vm4933_vm9, %v4651_v16, 0.0 }
  0x4b   : > { %v1939_v34 = vsel %vm4855_vm2, %v1934_v31, %v1938_v43  ;;  %v977_v41 = vor.u32 %v976_v37, %v973_v33  ;;  %v1944_v7 = vrot.slane %v1943_v40, 4  ;;  %v986_v8 = vrot.slane %v984_v52, 4 }
  0x4c   : > { %v992_v12 = vrot.slane %v990_v14, 5  ;;  %v612_v13 = vsel %vm4970_vm14, %v4651_v16, 0.0  ;;  %v634_v19 = vadd.f32 %v610_v56, %v4825_v54  ;;  %v635_v43 = vadd.f32 %v611_v58, %v4839_v62 }
  0x4d   : > { %v978_v18 = vrot.slane %v977_v41, 4  ;;  %v636_v25 = vadd.f32 %v612_v13, %v4842_v63  ;;  %v1949_v17 = vsel %vm4855_vm2, %v1944_v7, %v1948_v11  ;;  %v987_v29 = vor.u32 %v986_v8, %v982_v51  ;;  %v5068_v8 = vld [vmem:[%s4691_s30 + $0x54] sm:$0xff]  }
  0x4e   : > { %v3858_v31 = vrot.slane %v2236_v39, 9  ;;  %v2272_v33 = vrot.slane %v2270_v59, 4  ;;  %v3844_v54 = vcombine.low %v1939_v34, %v1949_v17  ;;  %v3973_v37 = vpack.c.bf16 %v634_v19, %v634_v19  ;;  %v4029_v39 = vld [vmem:[%s4691_s30 + $0x48] sm:$0xff]  }
  0x4f   : > { %v983_v62 = vsel %vm4855_vm2, %v978_v18, %v982_v51  ;;  %v3974_v63 = vpack.c.bf16 %v635_v43, %v635_v43  ;;  %v988_v40 = vrot.slane %v987_v29, 4  ;;  %v3975_v52 = vpack.c.bf16 %v636_v25, %v636_v25  ;;  %v5077_v43 = vld [vmem:[%s4691_s30 + $0x5c] sm:$0x1] }
  0x50   : > { %v5009_v14 = vsel %vm4995_vm15, %v3858_v31, %v2270_v59  ;;  %v5015_v11 = vsel %vm4995_vm15, %v2272_v33, %v2273_v1  ;;  %4189 = vmatprep.mubr.msk.bf16.mxu0 %vm1116_vm1, %v3844_v54  ;;  %764 = vst.msk [vmem:[#allocation2 + $0x30] sm:$0xf] %vm750_vm11, %v3973_v37  ;;  %vm437_vm3 = vcmp.lt.s32.totalorder %v4818_v48, 17  ;;  %v537_v61 = vmul.f32 %v4665_v20, %v509_v0 }
  0x51   : > { %765 = vst.msk [vmem:[#allocation2 + $0x34] sm:$0xf] %vm750_vm11, %v3974_v63  ;;  %v538_v59 = vmul.f32 %v4665_v20, %v510_v28  ;;  %v993_v1 = vsel %vm4855_vm2, %v988_v40, %v992_v12  ;;  %vm445_vm6 = vmand %vm429_vm10, %vm437_vm3  ;;  %v539_v51 = vmul.f32 %v4665_v20, %v511_v32  ;;  %v3859_v34 = vrot.slane %v2237_v45, 9  ;;  %v412_v32 = vld [vmem:[%s4691_s30 + $0x50] sm:$0x1] }
  0x52   : > { %766 = vst.msk [vmem:[#allocation2 + $0x38] sm:$0x1] %vm753_vm12, %v3975_v52  ;;  %v5043_v47 = vsel %vm4995_vm15, %v4901_v46, %v2280_v42  ;;  %v3770_v0 = vcombine.low %v983_v62, %v993_v1  ;;  %vm485_vm7 = vmand %vm445_vm6, %vm383_vm4  ;;  %v614_v48 = vsel %vm445_vm6, %v4651_v16, 0.0  ;;  %v5050_v15 = vsel %vm1141_vm0, %v4944_v2, 0 }
  0x53   : > { %v4021_v28 = vunpack.c.l.bf16 %v4029_v39  ;;  %vm487_vm8 = vmand %vm445_vm6, %vm388_vm5  ;;  %v613_v3 = vsel %vm485_vm7, %v4651_v16, 0.0  ;;  %v638_v42 = vadd.f32 %v614_v48, %v538_v59  ;;  %v5060_v46 = vsel %vm4995_vm15, %v3859_v34, %v2277_v36 }
  0x54   : > { %v4022_v41 = vunpack.c.h.bf16 %v4029_v39  ;;  %4118 = vmatmul.mubr.msk.bf16.gmra.mrb[4].mxu1 %vm1116_vm1, %v3770_v0  ;;  %v615_v2 = vsel %vm487_vm8, %v4651_v16, 0.0  ;;  %v637_v56 = vadd.f32 %v613_v3, %v537_v61  ;;  %v422_v7 = vadd.s32 6, %v4604_v5 }
  0x55   : > { %v639_v12 = vadd.f32 %v615_v2, %v539_v51  ;;  %v3977_v57 = vpack.c.bf16 %v638_v42, %v638_v42  ;;  %v514_v13 = vunpack.c.l.bf16 %v412_v32  ;;  %v5071_v36 = vmul.f32 %v4021_v28, %v4665_v20 }
  0x56   : > { %v3976_v18 = vpack.c.bf16 %v637_v56, %v637_v56  ;;  %vm430_vm9 = vcmp.ge.s32.totalorder %v422_v7, 1  ;;  %vm438_vm10 = vcmp.lt.s32.totalorder %v422_v7, 17  ;;  %v5074_v19 = vmul.f32 %v4022_v41, %v4665_v20 }
  0x57   : > { %v1863_v25 = vld [vmem:[#allocation2 + $0x30] sm:$0xf]  ;;  %v3978_v31 = vpack.c.bf16 %v639_v12, %v639_v12  ;;  %768 = vst.msk [vmem:[#allocation2 + $0x40] sm:$0xf] %vm750_vm11, %v3977_v57  ;;  %v5085_v33 = vmul.f32 %v4665_v20, %v514_v13  ;;  %v515_v54 = vunpack.c.l.bf16 %v5068_v8  ;;  %vm5096_vm13 = vmand %vm430_vm9, %vm438_vm10 }
  0x58   : > { %v5079_v17 = vld [vmem:[#allocation2 + $0x34] sm:$0xf]  ;;  %v5081_v29 = vld [vmem:[#allocation2 + $0x30] sm:$0xf]  ;;  %v1951_v63 = vshrl.u32 %v1863_v25, 16  ;;  %v1954_v45 = vshll.u32 %v1863_v25, 16  ;;  %vm5115_vm14 = vmand %vm5096_vm13, %vm383_vm4 }
  0x59   : > { %v5089_v37 = vld [vmem:[#allocation2 + $0x38] sm:$0x1]  ;;  %v1960_v40 = vshll.u32 %v5079_v17, 16  ;;  %v1964_v52 = vshrl.u32 %v5079_v17, 16  ;;  %767 = vst.msk [vmem:[#allocation2 + $0x3c] sm:$0xf] %vm750_vm11, %v3976_v18  ;;  %v5109_v0 = vmul.f32 %v4665_v20, %v515_v54  ;;  %vm5127_vm3 = vmand %vm5096_vm13, %vm388_vm5 }
  0x5a   : > { %v1970_v61 = vshll.u32 %v5089_v37, 16  ;;  %v5101_v59 = vld [vmem:[#allocation2 + $0x34] sm:$0xf]  ;;  %v5103_v1 = vld [vmem:[#allocation2 + $0x38] sm:$0x1]  ;;  %v995_v51 = vshrl.u32 %v5081_v29, 16 }
  0x5b   : > { %769 = vst.msk [vmem:[#allocation2 + $0x44] sm:$0x1] %vm753_vm12, %v3978_v31  ;;  %v1953_v48 = vrot.slane %v1951_v63, 4  ;;  %v1956_v28 = vrot.slane %v1954_v45, 5  ;;  %v1962_v32 = vrot.slane %v1960_v40, 5  ;;  %v1966_v3 = vrot.slane %v1964_v52, 4 }
  0x5c   : > { %v1972_v41 = vrot.slane %v1970_v61, 5  ;;  %v997_v2 = vrot.slane %v995_v51, 4  ;;  %v998_v56 = vshll.u32 %v5081_v29, 16  ;;  %v1004_v7 = vshll.u32 %v5101_v59, 16 }
  0x5d   : > { %v1957_v12 = vor.u32 %v1956_v28, %v1953_v48  ;;  %v1967_v57 = vor.u32 %v1966_v3, %v1962_v32  ;;  %v1008_v13 = vshrl.u32 %v5101_v59, 16  ;;  %v1014_v18 = vshll.u32 %v5103_v1, 16 }
  0x5e   : > { %v1000_v31 = vrot.slane %v998_v56, 5  ;;  %v1006_v54 = vrot.slane %v1004_v7, 5  ;;  %v616_v63 = vsel %vm5115_vm14, %v4651_v16, 0.0  ;;  %v617_v45 = vsel %vm5096_vm13, %v4651_v16, 0.0  ;;  %v5137_v48 = vld [vmem:[#allocation2 + $0x40] sm:$0xf] }
  0x5f   : > { %v1958_v40 = vrot.slane %v1957_v12, 4  ;;  %v1968_v52 = vrot.slane %v1967_v57, 4  ;;  %v1010_v61 = vrot.slane %v1008_v13, 4  ;;  %v1016_v51 = vrot.slane %v1014_v18, 5 }
  0x60   : > { %v1001_v28 = vor.u32 %v1000_v31, %v997_v2  ;;  %v5139_v3 = vld [vmem:[#allocation2 + $0x3c] sm:$0xf]  ;;  %v1028_v56 = vshll.u32 %v5137_v48, 16  ;;  %v1032_v7 = vshrl.u32 %v5137_v48, 16  ;;  %v618_v42 = vsel %vm5127_vm3, %v4651_v16, 0.0 }
  0x61   : > { %v1963_v39 = vsel %vm4855_vm2, %v1958_v40, %v1962_v32  ;;  %v1973_v12 = vsel %vm4855_vm2, %v1968_v52, %v1972_v41  ;;  %v1011_v57 = vor.u32 %v1010_v61, %v1006_v54  ;;  %v1019_v2 = vshrl.u32 %v5139_v3, 16  ;;  %v2238_v32 = vld [vmem:[#allocation2 + $0x24] sm:$0xe] }
  0x62   : > { %v5150_v13 = vld [vmem:[#allocation2 + $0x44] sm:$0x1]  ;;  %v3845_v18 = vcombine.low %v1963_v39, %v1973_v12  ;;  %v1002_v31 = vrot.slane %v1001_v28, 4  ;;  %v1022_v58 = vshll.u32 %v5139_v3, 16  ;;  %v1030_v34 = vrot.slane %v1028_v56, 5 }
  0x63   : > { %v1012_v62 = vrot.slane %v1011_v57, 4  ;;  %v1021_v25 = vrot.slane %v1019_v2, 4  ;;  %v1034_v60 = vrot.slane %v1032_v7, 4  ;;  %v1038_v4 = vshll.u32 %v5150_v13, 16 }
  0x64   : > { %4190 = vmatmul.mubr.msk.bf16.gmra.mrb[4].mxu0 %vm1116_vm1, %v3845_v18  ;;  %v1007_v41 = vsel %vm4855_vm2, %v1002_v31, %v1006_v54  ;;  %v1024_v40 = vrot.slane %v1022_v58, 5  ;;  %v640_v52 = vadd.f32 %v616_v63, %v5071_v36  ;;  %v641_v61 = vadd.f32 %v617_v45, %v5074_v19  ;;  %v2239_v45 = vld [vmem:[#allocation2 + $0x30] sm:$0xe] }
  0x65   : > { %v1017_v28 = vsel %vm4855_vm2, %v1012_v62, %v1016_v51  ;;  %v5959_v56 = vcombine.low %v5009_v14, %v5015_v11  ;;  %v1035_v7 = vor.u32 %v1034_v60, %v1030_v34  ;;  %v1040_v39 = vrot.slane %v1038_v4, 5  ;;  %v5180_v51 = vld [vmem:[#allocation2 + $0x3c] sm:$0xe] }
  0x66   : > { %v642_v12 = vadd.f32 %v618_v42, %v5085_v33  ;;  %v3771_v57 = vcombine.low %v1007_v41, %v1017_v28  ;;  %v1025_v2 = vor.u32 %v1024_v40, %v1021_v25  ;;  %v3979_v54 = vpack.c.bf16 %v640_v52, %v640_v52 }
  0x67   : > { %4203 = vmatprep.mubr.msk.bf16.mxu0 %vm1116_vm1, %v5959_v56  ;;  %v3980_v58 = vpack.c.bf16 %v641_v61, %v641_v61  ;;  %v1036_v36 = vrot.slane %v1035_v7, 4  ;;  %v3860_v63 = vrot.slane %v2238_v32, 9  ;;  %v2284_v62 = vrot.slane %v4905_v53, 5  ;;  %v1868_v61 = vld [vmem:[#allocation2 + $0x44] sm:$0x1] }
  0x68   : > { %v3981_v19 = vpack.c.bf16 %v642_v12, %v642_v12  ;;  %4121 = vmatprep.mubr.msk.bf16.mxu1 %vm1116_vm1, %v3771_v57  ;;  %v1026_v14 = vrot.slane %v1025_v2, 4  ;;  %770 = vst.msk [vmem:[#allocation2 + $0x48] sm:$0xf] %vm750_vm11, %v3979_v54  ;;  %v2287_v4 = vrot.slane %v4919_v26, 5  ;;  %v423_v11 = vadd.s32 7, %v4604_v5 }
  0x69   : > { %771 = vst.msk [vmem:[#allocation2 + $0x4c] sm:$0xf] %vm750_vm11, %v3980_v58  ;;  %v5960_v60 = vunpack.c.h.bf16 %v5068_v8  ;;  %v1041_v53 = vsel %vm4855_vm2, %v1036_v36, %v1040_v39  ;;  %v2285_v42 = vsel %vm4995_vm15, %v3860_v63, %v2284_v62  ;;  %v2286_v18 = vrot.slane %v2284_v62, 4  ;;  %v5190_v5 = vld [vmem:[#allocation2 + $0x40] sm:$0xf] }
  0x6a   : > { %772 = vst.msk [vmem:[#allocation2 + $0x50] sm:$0x1] %vm753_vm12, %v3981_v19  ;;  %v5961_v31 = vunpack.c.l.bf16 %v5077_v43  ;;  %v5196_v8 = vld [vmem:[%s5909_s2 + $0x1c] sm:$0xf]  ;;  %v1031_v25 = vsel %vm4855_vm2, %v1026_v14, %v1030_v34  ;;  %vm431_vm6 = vcmp.ge.s32.totalorder %v423_v11, 1  ;;  %vm439_vm7 = vcmp.lt.s32.totalorder %v423_v11, 17 }
  0x6b   : > { %v544_v33 = vmul.f32 %v4665_v20, %v5960_v60  ;;  %v3861_v32 = vrot.slane %v2239_v45, 9  ;;  %v3772_v41 = vcombine.low %v1031_v25, %v1041_v53  ;;  %v2288_v43 = vsel %vm4995_vm15, %v2286_v18, %v2287_v4  ;;  %vm447_vm8 = vmand %vm431_vm6, %vm439_vm7 }
  0x6c   : > { %v545_v26 = vmul.f32 %v4665_v20, %v5961_v31  ;;  %v2291_v40 = vrot.slane %v5079_v17, 5  ;;  %v2294_v52 = vrot.slane %v5089_v37, 5  ;;  %v5962_v28 = vcombine.low %v5060_v46, %v5043_v47  ;;  %vm491_vm9 = vmand %vm447_vm8, %vm383_vm4 }
  0x6d   : > { %v3869_v34 = vcombine.low %v2285_v42, %v2288_v43  ;;  %v620_v56 = vsel %vm447_vm8, %v4651_v16, 0.0  ;;  %v3862_v7 = vrot.slane %v5180_v51, 9  ;;  %4122 = vmatmul.mubr.msk.bf16.gmra.mrb[8].mxu1 %vm1116_vm1, %v3772_v41  ;;  %vm493_vm10 = vmand %vm447_vm8, %vm388_vm5  ;;  %v619_v17 = vsel %vm491_vm9, %v4651_v16, 0.0 }
  0x6e   : > { %4204 = vmatmul.mubr.msk.bf16.vlgmr.msra.gmra.mrb[0].mxu0 %vm1116_vm1, %v5962_v28  ;;  %v644_v47 = vadd.f32 %v620_v56, %v544_v33  ;;  %v2292_v46 = vsel %vm4995_vm15, %v3861_v32, %v2291_v40  ;;  %v2293_v37 = vrot.slane %v2291_v40, 4  ;;  %v621_v39 = vsel %vm493_vm10, %v4651_v16, 0.0 }
  0x6f   : > { %4220 = vmatpush3.bf16.msra.mxu0 %v5050_v15  ;;  %4207 = vmatprep.mubr.msk.bf16.mxu0 %vm1116_vm1, %v3869_v34  ;;  %v643_v12 = vadd.f32 %v619_v17, %v5109_v0  ;;  %v2298_v15 = vrot.slane %v5190_v5, 5  ;;  %v2301_v57 = vrot.slane %v1868_v61, 5  ;;  %v5230_v2 = vld [vmem:[#allocation2 + $0x48] sm:$0xf]  ;;  %v645_v58 = vadd.f32 %v621_v39, %v545_v26 }
  0x70   : > { %4411 = vmatprep.subr.msk.bf16.mxu0 %vm1141_vm0, %v5196_v8  ;;  %v5232_v54 = vld [vmem:[#allocation2 + $0x4c] sm:$0xf]  ;;  %v3983_v36 = vpack.c.bf16 %v644_v47, %v644_v47  ;;  %v2295_v19 = vsel %vm4995_vm15, %v2293_v37, %v2294_v52  ;;  %v3784_v63 = vcombine.low %v4851_v22, %v4859_v27  ;;  %v1043_v62 = vshrl.u32 %v5230_v2, 16  ;;  %v2241_v42 = vld [vmem:[#allocation2 + $0x48] sm:$0xe] }
  0x71   : > { %v5238_v0 = vld [vmem:[#allocation2 + $0x50] sm:$0x1]  ;;  %v1046_v45 = vshll.u32 %v5230_v2, 16  ;;  %v1052_v14 = vshll.u32 %v5232_v54, 16  ;;  %v1056_v4 = vshrl.u32 %v5232_v54, 16  ;;  %v3982_v60 = vpack.c.bf16 %v643_v12, %v643_v12 }
  0x72   : > { %v1062_v11 = vshll.u32 %v5238_v0, 16  ;;  %v3984_v33 = vpack.c.bf16 %v645_v58, %v645_v58  ;;  %774 = vst.msk [vmem:[#allocation2 + $0x58] sm:$0xf] %vm750_vm11, %v3983_v36  ;;  %v3870_v51 = vcombine.low %v2292_v46, %v2295_v19  ;;  %v1870_v53 = vld [vmem:[#allocation2 + $0x4c] sm:$0xf]  ;;  %v1045_v18 = vrot.slane %v1043_v62, 4 }
  0x73   : > { %v1048_v31 = vrot.slane %v1046_v45, 5  ;;  %v1054_v26 = vrot.slane %v1052_v14, 5  ;;  %v1058_v25 = vrot.slane %v1056_v4, 4  ;;  %773 = vst.msk [vmem:[#allocation2 + $0x54] sm:$0xf] %vm750_vm11, %v3982_v60  ;;  %v2299_v41 = vsel %vm4995_vm15, %v3862_v7, %v2298_v15  ;;  %v4024_v45 = vld [vmem:[%s5259_s18] sm:$0xff]  }
  0x74   : > { %v1064_v32 = vrot.slane %v1062_v11, 5  ;;  %775 = vst.msk [vmem:[#allocation2 + $0x5c] sm:$0x1] %vm753_vm12, %v3984_v33  ;;  %v2300_v43 = vrot.slane %v2298_v15, 4  ;;  %v2008_v61 = vshll.u32 %v1870_v53, 16  ;;  %v2012_v28 = vshrl.u32 %v1870_v53, 16 }
  0x75   : > { %v1049_v40 = vor.u32 %v1048_v31, %v1045_v18  ;;  %v1059_v52 = vor.u32 %v1058_v25, %v1054_v26  ;;  %v5254_v56 = vld [vmem:[#allocation2 + $0x50] sm:$0x1]  ;;  %v3863_v17 = vrot.slane %v2241_v42, 9  ;;  %v2305_v47 = vrot.slane %v1870_v53, 5 }
  0x76   : > { %4208 = vmatmul.mubr.msk.bf16.gmra.mrb[4].mxu0 %vm1116_vm1, %v3870_v51  ;;  %v2302_v34 = vsel %vm4995_vm15, %v2300_v43, %v2301_v57  ;;  %v1442_v39 = vrot.slane %v4859_v27, 5  ;;  %v5262_v12 = vrot.slane %v2008_v61, 5  ;;  %v5272_v19 = vrot.slane %v2012_v28, 4 }
  0x77   : > { %v1050_v7 = vrot.slane %v1049_v40, 4  ;;  %v1060_v46 = vrot.slane %v1059_v52, 4  ;;  %v3871_v37 = vcombine.low %v2299_v41, %v2302_v34  ;;  %v2307_v15 = vrot.slane %v2305_v47, 4 }
  0x78   : > { %v2308_v62 = vrot.slane %v5254_v56, 5  ;;  %v2306_v60 = vsel %vm4995_vm15, %v3863_v17, %v2305_v47  ;;  %v4025_v31 = vunpack.c.l.bf16 %v4024_v45  ;;  %v4026_v34 = vunpack.c.h.bf16 %v4024_v45 }
  0x79   : > { %v1055_v57 = vsel %vm4855_vm2, %v1050_v7, %v1054_v26  ;;  %v1065_v58 = vsel %vm4855_vm2, %v1060_v46, %v1064_v32  ;;  %v5269_v36 = vld [vmem:[#allocation2 + $0x58] sm:$0xf]  ;;  %4211 = vmatprep.mubr.msk.bf16.mxu0 %vm1116_vm1, %v3871_v37  ;;  %v5290_v26 = vstv %s782_s19  ;;  %v778_v37 = vld [vmem:[%s5259_s18 + $0x8] sm:$0x1] }
  0x7a   : > { %v3773_v14 = vcombine.low %v1055_v57, %v1065_v58  ;;  %v1076_v4 = vshll.u32 %v5269_v36, 16  ;;  %v1080_v11 = vshrl.u32 %v5269_v36, 16  ;;  %v5280_v33 = vld [vmem:[#allocation2 + $0x58] sm:$0xf]  ;;  %v5282_v51 = vld [vmem:[#allocation2 + $0x54] sm:$0xf]  ;;  %v2309_v42 = vsel %vm4995_vm15, %v2307_v15, %v2308_v62 }
  0x7b   : > { %v5284_v53 = vld [vmem:[#allocation2 + $0x5c] sm:$0x1]  ;;  %v1067_v25 = vshrl.u32 %v5282_v51, 16  ;;  %v1070_v32 = vshll.u32 %v5282_v51, 16  ;;  %v2242_v40 = vld [vmem:[#allocation2 + $0x54] sm:$0xe]  ;;  %v3872_v61 = vcombine.low %v2306_v60, %v2309_v42  ;;  %v807_v60 = vmul.f32 %v4025_v31, %v4665_v20 }
  0x7c   : > { %v5288_v18 = vld [vmem:[#allocation2 + $0x5c] sm:$0x1]  ;;  %4125 = vmatprep.mubr.msk.bf16.mxu1 %vm1116_vm1, %v3773_v14  ;;  %v1078_v41 = vrot.slane %v1076_v4, 5  ;;  %v1082_v43 = vrot.slane %v1080_v11, 4  ;;  %v1086_v52 = vshll.u32 %v5284_v53, 16  ;;  %v3864_v28 = vrot.slane %v2242_v40, 9 }
  0x7d   : > { %v1069_v17 = vrot.slane %v1067_v25, 4  ;;  %v1072_v47 = vrot.slane %v1070_v32, 5  ;;  %v2312_v46 = vrot.slane %v5280_v33, 5  ;;  %v2315_v57 = vrot.slane %v5288_v18, 5 }
  0x7e   : > { %v1083_v7 = vor.u32 %v1082_v43, %v1078_v41  ;;  %v1088_v15 = vrot.slane %v1086_v52, 5  ;;  %4212 = vmatmul.mubr.msk.bf16.gmra.mrb[8].mxu0 %vm1116_vm1, %v3872_v61  ;;  %vm785_vm13 = vcmp.ge.s32.totalorder %v5290_v26, 1  ;;  %vm787_vm14 = vcmp.lt.s32.totalorder %v5290_v26, 17 }
  0x7f   : > { %v1073_v58 = vor.u32 %v1072_v47, %v1069_v17  ;;  %v2313_v45 = vsel %vm4995_vm15, %v3864_v28, %v2312_v46  ;;  %v2314_v14 = vrot.slane %v2312_v46, 4  ;;  %vm5304_vm3 = vmand %vm785_vm13, %vm787_vm14  ;;  %v803_v11 = vunpack.c.l.bf16 %v778_v37  ;;  %v1407_v46 = vld [vmem:[#allocation2 + $0xc] sm:$0xe] }
  0x80   : > { %v1084_v62 = vrot.slane %v1083_v7, 4  ;;  %vm795_vm6 = vmand %vm5304_vm3, %vm383_vm4  ;;  %v808_v42 = vmul.f32 %v4026_v34, %v4665_v20  ;;  %v826_v25 = vsel %vm5304_vm3, %v4651_v16, 0.0  ;;  %v3783_v47 = vcombine.low %v4820_v49, %v4822_v50 }
  0x81   : > { %v1074_v32 = vrot.slane %v1073_v58, 4  ;;  %v2316_v40 = vsel %vm4995_vm15, %v2314_v14, %v2315_v57  ;;  %vm797_vm7 = vmand %vm5304_vm3, %vm388_vm5  ;;  %v825_v31 = vsel %vm795_vm6, %v4651_v16, 0.0  ;;  %v809_v61 = vmul.f32 %v803_v11, %v4665_v20 }
  0x82   : > { %v1089_v43 = vsel %vm4855_vm2, %v1084_v62, %v1088_v15  ;;  %v3873_v52 = vcombine.low %v2313_v45, %v2316_v40  ;;  %v827_v28 = vsel %vm797_vm7, %v4651_v16, 0.0  ;;  %v831_v34 = vadd.f32 %v825_v31, %v807_v60  ;;  %v5369_v31 = vld [vmem:[%s5909_s2 + $0xc] sm:$0xf] }
  0x83   : > { %v1079_v17 = vsel %vm4855_vm2, %v1074_v32, %v1078_v41  ;;  %v832_v7 = vadd.f32 %v826_v25, %v808_v42  ;;  %v1445_v37 = vrot.slane %v4863_v35, 5  ;;  %v833_v57 = vadd.f32 %v827_v28, %v809_v61 }
  0x84   : > { %v3774_v15 = vcombine.low %v1079_v17, %v1089_v43  ;;  %4215 = vmatprep.mubr.msk.bf16.mxu0 %vm1116_vm1, %v3873_v52  ;;  %v3985_v58 = vpack.c.bf16 %v831_v34, %v831_v34  ;;  %v2018_v62 = vshll.u32 %v5254_v56, 16  ;;  %v2015_v41 = vor.u32 %v5272_v19, %v5262_v12  ;;  %v779_v19 = vld [vmem:[%s5259_s18 + $0xc] sm:$0xff]  }
  0x85   : > { %v3986_v45 = vpack.c.bf16 %v832_v7, %v832_v7  ;;  %v3987_v14 = vpack.c.bf16 %v833_v57, %v833_v57  ;;  %v3800_v49 = vrot.slane %v1407_v46, 9  ;;  %v1444_v50 = vrot.slane %v1442_v39, 4  ;;  %v1410_v43 = vld [vmem:[#allocation2 + $0x30] sm:$0xe] }
  0x86   : > { %4126 = vmatmul.mubr.msk.bf16.gmra.mrb[12].mxu1 %vm1116_vm1, %v3774_v15  ;;  %864 = vst.msk [vmem:[#allocation2 + $0x60] sm:$0xf] %vm750_vm11, %v3985_v58  ;;  %v5357_v11 = vrot.slane %v2015_v41, 4  ;;  %v5359_v60 = vrot.slane %v2018_v62, 5  ;;  %v784_v42 = vadd.s32 1, %v5290_v26  ;;  %v3785_v25 = vcombine.low %v4888_v21, %v4892_v30 }
  0x87   : > { %4131 = vmatprep.mubr.msk.bf16.mxu1 %vm1116_vm1, %v3783_v47  ;;  %865 = vst.msk [vmem:[#allocation2 + $0x64] sm:$0xf] %vm750_vm11, %v3986_v45  ;;  %v5348_v35 = vsel %vm4995_vm15, %v3800_v49, %v1442_v39  ;;  %v5352_v56 = vsel %vm4995_vm15, %v1444_v50, %v1445_v37  ;;  %v804_v32 = vunpack.c.l.bf16 %v779_v19  ;;  %v805_v39 = vunpack.c.h.bf16 %v779_v19  ;;  %v4456_v49 = vld [vmem:[#allocation2 + $0x18] sm:$0xff]  }
  0x88   : > { %866 = vst.msk [vmem:[#allocation2 + $0x68] sm:$0x1] %vm753_vm12, %v3987_v14  ;;  %v1540_v40 = vsel %vm1141_vm0, %v4914_v24, 0  ;;  %vm786_vm8 = vcmp.ge.s32.totalorder %v784_v42, 1  ;;  %vm788_vm9 = vcmp.lt.s32.totalorder %v784_v42, 17  ;;  %v3803_v28 = vrot.slane %v1410_v43, 9 }
  0x89   : > { %v811_v61 = vmul.f32 %v805_v39, %v4665_v20  ;;  %v810_v24 = vmul.f32 %v804_v32, %v4665_v20  ;;  %vm5387_vm10 = vmand %vm786_vm8, %vm788_vm9  ;;  %v1466_v46 = vrot.slane %v5103_v1, 5  ;;  %v3786_v62 = vcombine.low %v4925_v44, %v4927_v55  ;;  %v1411_v19 = vld [vmem:[#allocation2 + $0x3c] sm:$0xe]  ;;  %v1406_v32 = vld [vmem:[#allocation2] sm:$0xe] }
  0x8a   : > { %vm798_vm13 = vmand %vm5387_vm10, %vm383_vm4  ;;  %v829_v7 = vsel %vm5387_vm10, %v4651_v16, 0.0  ;;  %v3787_v1 = vcombine.low %v5081_v29, %v5101_v59  ;;  %v1408_v29 = vld [vmem:[#allocation2 + $0x18] sm:$0xe]  ;;  %v1470_v43 = vrot.slane %v5137_v48, 5 }
  0x8b   : > { %v828_v57 = vsel %vm798_vm13, %v4651_v16, 0.0  ;;  %v835_v58 = vadd.f32 %v829_v7, %v811_v61  ;;  %v3788_v7 = vcombine.low %v5139_v3, %v5137_v48  ;;  %v5450_v3 = vld [vmem:[%s5909_s2 + $0x20] sm:$0xf]  ;;  %vm5557_vm4 = vmand %vm5387_vm10, %vm388_vm5 }
  0x8c   : > { %v834_v6 = vadd.f32 %v828_v57, %v810_v24  ;;  %v4473_v24 = vld [vmem:[#allocation2 + $0x8] sm:$0x1] }
  0x8d   : > { %v2243_v52 = vld [vmem:[#allocation2 + $0x60] sm:$0xe]  ;;  %v3989_v50 = vpack.c.bf16 %v835_v58, %v835_v58  ;;  %v4457_v57 = vld [vmem:[#allocation2 + $0x24] sm:$0xff]   ;;  %v1449_v58 = vrot.slane %v4892_v30, 5 }
  0x8e   : > { %4132 = vmatmul.mubr.msk.bf16.vlgmr.msra.gmra.mrb[0].mxu1 %vm1116_vm1, %v3784_v63  ;;  %v5376_v21 = vld [vmem:[#allocation2 + $0x64] sm:$0xf]  ;;  %v3865_v26 = vrot.slane %v2243_v52, 9  ;;  %v1463_v63 = vrot.slane %v5101_v59, 5  ;;  %v3804_v59 = vrot.slane %v1411_v19, 9  ;;  %v3790_v19 = vcombine.low %v5282_v51, %v5269_v36 }
  0x8f   : > { %5965 = vst [vmem:[#allocation4_spill] sm:$0xff] %v5376_v21  ;;  %4148 = vmatpush3.bf16.msra.mxu1 %v1540_v40  ;;  %4135 = vmatprep.mubr.msk.bf16.mxu1 %vm1116_vm1, %v3785_v25  ;;  %v5384_v17 = vld [vmem:[#allocation2 + $0x68] sm:$0x1]  ;;  %v2319_v22 = vrot.slane %v5376_v21, 5  ;;  %v3988_v25 = vpack.c.bf16 %v834_v6, %v834_v6  ;;  %868 = vst.msk [vmem:[#allocation2 + $0x70] sm:$0xf] %vm750_vm11, %v3989_v50 }
  0x90   : > { %5966 = vst [vmem:[#allocation5_spill] sm:$0xff] %v5384_v17  ;;  %v2322_v47 = vrot.slane %v5384_v17, 5  ;;  %4406 = vmatprep.subr.msk.bf16.mxu1 %vm1141_vm0, %v5369_v31  ;;  %v5410_v45 = vsel %vm4995_vm15, %v3803_v28, %v1463_v63  ;;  %v1465_v41 = vrot.slane %v1463_v63, 4  ;;  %v1473_v40 = vrot.slane %v5150_v13, 5  ;;  %v4472_v52 = vld [vmem:[#allocation2 + $0x4] sm:$0xf] }
  0x91   : > { %v2320_v37 = vsel %vm4995_vm15, %v3865_v26, %v2319_v22  ;;  %v2321_v15 = vrot.slane %v2319_v22, 4  ;;  %867 = vst.msk [vmem:[#allocation2 + $0x6c] sm:$0xf] %vm750_vm11, %v3988_v25  ;;  %v1435_v61 = vrot.slane %v4472_v52, 5  ;;  %v2689_v26 = vld [vmem:[#allocation2 + $0x18] sm:$0xf]  ;;  %v5434_v63 = vsel %vm4995_vm15, %v3804_v59, %v1470_v43 }
  0x92   : > { %v5418_v44 = vsel %vm4995_vm15, %v1465_v41, %v1466_v46  ;;  %v1438_v28 = vrot.slane %v4473_v24, 5  ;;  %v5430_v22 = vld [vmem:[#allocation2 + $0x1c] sm:$0xf]  ;;  %v3789_v13 = vcombine.low %v5230_v2, %v5232_v54  ;;  %v3799_v46 = vrot.slane %v1406_v32, 9  ;;  %v2692_v30 = vld [vmem:[#allocation2 + $0x24] sm:$0xf] }
  0x93   : > { %v2323_v14 = vsel %vm4995_vm15, %v2321_v15, %v2322_v47  ;;  %v1472_v47 = vrot.slane %v1470_v43, 4  ;;  %v1412_v15 = vld [vmem:[#allocation2 + $0x48] sm:$0xe]  ;;  %v2717_v6 = vshll.u32 %v2689_v26, 16  ;;  %v2727_v48 = vshrl.u32 %v5430_v22, 16  ;;  %v4458_v50 = vld [vmem:[#allocation2 + $0x30] sm:$0xff]  }
  0x94   : > { %v3874_v42 = vcombine.low %v2320_v37, %v2323_v14  ;;  %v3801_v37 = vrot.slane %v1408_v29, 9  ;;  %v1437_v14 = vrot.slane %v1435_v61, 4  ;;  %v1477_v25 = vrot.slane %v5232_v54, 5  ;;  %v4474_v59 = vld [vmem:[#allocation2 + $0x20] sm:$0x1] }
  0x95   : > { %v5443_v41 = vsel %vm4995_vm15, %v1472_v47, %v1473_v40  ;;  %v1436_v32 = vsel %vm4995_vm15, %v3799_v46, %v1435_v61  ;;  %v1452_v43 = vrot.slane %v4474_v59, 5  ;;  %v5465_v40 = vld [vmem:[#allocation2 + $0x28] sm:$0xf]  ;;  %v5470_v51 = vld [vmem:[#allocation2 + $0x24] sm:$0xe]  ;;  %v2719_v52 = vrot.slane %v2717_v6, 5 }
  0x96   : > { %4136 = vmatmul.mubr.msk.bf16.gmra.mrb[4].mxu1 %vm1116_vm1, %v3786_v62  ;;  %4216 = vmatmul.mubr.msk.bf16.gmra.mrb[12].mxu0 %vm1116_vm1, %v3874_v42  ;;  %v2714_v62 = vshrl.u32 %v2689_v26, 16  ;;  %v3805_v42 = vrot.slane %v1412_v15, 9  ;;  %v5463_v29 = vsel %vm4995_vm15, %v3801_v37, %v1449_v58  ;;  %v1479_v26 = vrot.slane %v1477_v25, 4  ;;  %v1413_v46 = vld [vmem:[#allocation2 + $0x54] sm:$0xe]  ;;  %v4460_v59 = vld [vmem:[#allocation2 + $0x48] sm:$0xff]  }
  0x97   : > { %4139 = vmatprep.mubr.msk.bf16.mxu1 %vm1116_vm1, %v3787_v1  ;;  %4221 = vmatprep.mubr.msk.bf16.mxu0 %vm1116_vm1, %v4456_v49  ;;  %v2723_v1 = vshll.u32 %v5430_v22, 16  ;;  %v2956_v49 = vsel %vm1141_vm0, %v5196_v8, 0  ;;  %v1480_v8 = vrot.slane %v5238_v0, 5  ;;  %v1439_v24 = vsel %vm4995_vm15, %v1437_v14, %v1438_v28  ;;  %v5482_v37 = vld [vmem:[#allocation2 + $0x20] sm:$0x1] }
  0x98   : > { %v2716_v54 = vrot.slane %v2714_v62, 4  ;;  %v5474_v61 = vsel %vm4995_vm15, %v3805_v42, %v1477_v25  ;;  %v2729_v47 = vrot.slane %v2727_v48, 4  ;;  %v2741_v15 = vshll.u32 %v2692_v30, 16  ;;  %v4459_v48 = vld [vmem:[#allocation2 + $0x3c] sm:$0xff]   ;;  %v2695_v42 = vld [vmem:[#allocation2 + $0x30] sm:$0xf] }
  0x99   : > { %v5479_v0 = vrot.slane %v2723_v1, 5  ;;  %v5490_v28 = vsel %vm4995_vm15, %v1479_v26, %v1480_v8  ;;  %v1451_v62 = vrot.slane %v1449_v58, 4  ;;  %v3802_v6 = vrot.slane %v5470_v51, 9  ;;  %v5499_v58 = vld [vmem:[#allocation2 + $0x34] sm:$0xf]  ;;  %v4462_v39 = vld [vmem:[#allocation2 + $0x60] sm:$0xff]  }
  0x9a   : > { %v1456_v14 = vrot.slane %v4927_v55, 5  ;;  %v3806_v25 = vrot.slane %v1413_v46, 9  ;;  %v2733_v8 = vshll.u32 %v5482_v37, 16  ;;  %v1484_v51 = vrot.slane %v5269_v36, 5  ;;  %v781_v21 = vld [vmem:[%s5259_s18 + $0x14] sm:$0x1] }
  0x9b   : > { %v2730_v34 = vor.u32 %v2729_v47, %v5479_v0  ;;  %v1487_v55 = vrot.slane %v5284_v53, 5  ;;  %v2743_v1 = vrot.slane %v2741_v15, 5  ;;  %v1453_v36 = vsel %vm4995_vm15, %v1451_v62, %v1452_v43 }
  0x9c   : > { %v1486_v47 = vrot.slane %v1484_v51, 4  ;;  %v1458_v53 = vrot.slane %v1456_v14, 4  ;;  %v2775_v46 = vshrl.u32 %v5499_v58, 16  ;;  %v1739_v15 = vsel %vm1141_vm0, %v5369_v31, 0 }
  0x9e   : > { %4140 = vmatmul.mubr.msk.bf16.gmra.mrb[8].mxu1 %vm1116_vm1, %v3788_v7  ;;  %4222 = vmatmul.mubr.msk.bf16.vlgmr.msra.gmra.mrb[0].mxu0 %vm1116_vm1, %v4457_v57  ;;  %v2738_v7 = vshrl.u32 %v2692_v30, 16  ;;  %v2747_v57 = vshll.u32 %v5465_v40, 16  ;;  %v1459_v30 = vrot.slane %v4949_v9, 5  ;;  %v5505_v9 = vld [vmem:[#allocation2 + $0x2c] sm:$0x1] }
  0x9f   : > { %4238 = vmatpush3.bf16.msra.mxu0 %v2956_v49  ;;  %4143 = vmatprep.mubr.msk.bf16.mxu1 %vm1116_vm1, %v3789_v13  ;;  %v2751_v13 = vshrl.u32 %v5465_v40, 16  ;;  %v3808_v49 = vcombine.low %v1436_v32, %v1439_v24  ;;  %v5509_v24 = vsel %vm4995_vm15, %v3806_v25, %v1484_v51  ;;  %v2757_v62 = vshll.u32 %v5505_v9, 16  ;;  %v2698_v25 = vld [vmem:[#allocation2 + $0x3c] sm:$0xf] }
  0xa0   : > { %4225 = vmatprep.mubr.msk.bf16.mxu0 %vm1116_vm1, %v4458_v50  ;;  %4412 = vmatprep.subr.msk.bf16.mxu0 %vm1141_vm0, %v5450_v3  ;;  %v2720_v50 = vor.u32 %v2719_v52, %v2716_v54  ;;  %v2740_v26 = vrot.slane %v2738_v7, 4  ;;  %v5503_v2 = vrot.slane %v2747_v57, 5  ;;  %v2762_v54 = vshrl.u32 %v2695_v42, 16 }
  0xa1   : > { %v2753_v32 = vrot.slane %v2751_v13, 4  ;;  %v2765_v52 = vshll.u32 %v2695_v42, 16  ;;  %v2771_v7 = vshll.u32 %v5499_v58, 16  ;;  %v2735_v13 = vrot.slane %v2733_v8, 5  ;;  %v2701_v42 = vld [vmem:[#allocation2 + $0x48] sm:$0xf] }
  0xa2   : > { %v2721_v57 = vrot.slane %v2720_v50, 4  ;;  %v2744_v43 = vor.u32 %v2743_v1, %v2740_v26  ;;  %v5532_v50 = vld [vmem:[#allocation2 + $0x38] sm:$0x1]  ;;  %v2764_v8 = vrot.slane %v2762_v54, 4  ;;  %v5540_v1 = vsel %vm4995_vm15, %v1458_v53, %v1459_v30 }
  0xa3   : > { %v2754_v31 = vor.u32 %v2753_v32, %v5503_v2  ;;  %v2767_v51 = vrot.slane %v2765_v52, 5  ;;  %v5542_v26 = vrot.slane %v2771_v7, 5  ;;  %v2789_v32 = vshll.u32 %v2698_v25, 16  ;;  %v5546_v52 = vld [vmem:[#allocation2 + $0x4c] sm:$0xf] }
  0xa4   : > { %v2745_v30 = vrot.slane %v2744_v43, 4  ;;  %v2759_v53 = vrot.slane %v2757_v62, 5  ;;  %v2810_v4 = vshrl.u32 %v2701_v42, 16  ;;  %v2813_v17 = vshll.u32 %v2701_v42, 16 }
  0xa5   : > { %v2781_v27 = vshll.u32 %v5532_v50, 16  ;;  %v2791_v43 = vrot.slane %v2789_v32, 5  ;;  %v830_v42 = vsel %vm5557_vm4, %v4651_v16, 0.0  ;;  %v2704_v16 = vld [vmem:[#allocation2 + $0x54] sm:$0xf] }
  0xa6   : > { %4144 = vmatmul.mubr.msk.bf16.gmra.mrb[12].mxu1 %vm1116_vm1, %v3790_v19  ;;  %4226 = vmatmul.mubr.msk.bf16.gmra.mrb[4].mxu0 %vm1116_vm1, %v4459_v48  ;;  %v5523_v19 = vsel %vm4995_vm15, %v1486_v47, %v1487_v55  ;;  %v2731_v48 = vrot.slane %v2730_v34, 4  ;;  %v4461_v55 = vld [vmem:[#allocation2 + $0x54] sm:$0xff]   ;;  %v5536_v34 = vsel %vm4995_vm15, %v3802_v6, %v1456_v14  ;;  %v2777_v47 = vrot.slane %v2775_v46, 4 }
  0xa7   : > { %4149 = vmatprep.mubr.msk.bf16.mxu1 %vm1116_vm1, %v3808_v49  ;;  %4229 = vmatprep.mubr.msk.bf16.mxu0 %vm1116_vm1, %v4460_v59  ;;  %v5528_v49 = vld [vmem:[#allocation2 + $0x40] sm:$0xf]  ;;  %v3810_v59 = vcombine.low %v5463_v29, %v1453_v36  ;;  %v2786_v29 = vshrl.u32 %v2698_v25, 16  ;;  %v2726_v6 = vsel %vm4855_vm2, %v2721_v57, %v5479_v0  ;;  %v2755_v46 = vrot.slane %v2754_v31, 4 }
  0xa8   : > { %v2795_v36 = vshll.u32 %v5528_v49, 16  ;;  %v2799_v54 = vshrl.u32 %v5528_v49, 16  ;;  %v2736_v14 = vsel %vm4855_vm2, %v2731_v48, %v2735_v13  ;;  %v2768_v25 = vor.u32 %v2767_v51, %v2764_v8  ;;  %v5580_v8 = vld [vmem:[#allocation2 + $0x44] sm:$0x1] }
  0xa9   : > { %v5971_v0 = vcombine.low %v5348_v35, %v5352_v56  ;;  %v2778_v10 = vor.u32 %v2777_v47, %v5542_v26  ;;  %v2819_v57 = vshll.u32 %v5546_v52, 16  ;;  %v2823_v13 = vshrl.u32 %v5546_v52, 16  ;;  %v4463_v47 = vld [vmem:[#allocation2 + $0x6c] sm:$0xff]  }
  0xaa   : > { %v2788_v48 = vrot.slane %v2786_v29, 4  ;;  %v5572_v62 = vrot.slane %v2795_v36, 5  ;;  %v2801_v35 = vrot.slane %v2799_v54, 4  ;;  %v3811_v56 = vcombine.low %v5536_v34, %v5540_v1 }
  0xab   : > { %v3901_v31 = vcombine.low %v2726_v6, %v2736_v14  ;;  %v806_v51 = vunpack.c.l.bf16 %v781_v21  ;;  %v2812_v34 = vrot.slane %v2810_v4, 4  ;;  %v2815_v1 = vrot.slane %v2813_v17, 5 }
  0xac   : > { %v2760_v29 = vsel %vm4855_vm2, %v2755_v46, %v2759_v53  ;;  %v2783_v32 = vrot.slane %v2781_v27, 5  ;;  %v5593_v36 = vrot.slane %v2819_v57, 5  ;;  %v2825_v54 = vrot.slane %v2823_v13, 4  ;;  %v2707_v13 = vld [vmem:[#allocation2 + $0x60] sm:$0xf] }
  0xad   : > { %v2779_v6 = vrot.slane %v2778_v10, 4  ;;  %v2792_v14 = vor.u32 %v2791_v43, %v2788_v48  ;;  %v2802_v21 = vor.u32 %v2801_v35, %v5572_v62  ;;  %v2805_v7 = vshll.u32 %v5580_v8, 16  ;;  %v5609_v48 = vld [vmem:[#allocation2 + $0x64] sm:$0xf] }
  0xae   : > { %4150 = vmatmul.mubr.msk.bf16.vlgmr.msra.gmra.mrb[0].mxu1 %vm1116_vm1, %v5971_v0  ;;  %4230 = vmatmul.mubr.msk.bf16.gmra.mrb[8].mxu0 %vm1116_vm1, %v4461_v55  ;;  %v2769_v55 = vrot.slane %v2768_v25, 4  ;;  %v5597_v0 = vld [vmem:[#allocation2 + $0x58] sm:$0xf]  ;;  %v2834_v17 = vshrl.u32 %v2704_v16, 16  ;;  %v2816_v46 = vor.u32 %v2815_v1, %v2812_v34  ;;  %v2826_v10 = vor.u32 %v2825_v54, %v5593_v36  ;;  %v5625_v54 = vld [vmem:[#allocation2 + $0x5c] sm:$0x1] }
  0xaf   : > { %4166 = vmatpush3.bf16.msra.mxu1 %v1739_v15  ;;  %4153 = vmatprep.mubr.msk.bf16.mxu1 %vm1116_vm1, %v3810_v59  ;;  %v4475_v15 = vld [vmem:[%s5909_s2 + $0x10] sm:$0xf]  ;;  %v2843_v27 = vshll.u32 %v5597_v0, 16  ;;  %v2847_v57 = vshrl.u32 %v5597_v0, 16  ;;  %v5972_v43 = vcombine.low %v5410_v45, %v5418_v44  ;;  %v2793_v35 = vrot.slane %v2792_v14, 4 }
  0xb0   : > { %4233 = vmatprep.mubr.msk.bf16.mxu0 %vm1116_vm1, %v4462_v39  ;;  %4408 = vmatprep.subr.msk.bf16.mxu1 %vm1141_vm0, %v4475_v15  ;;  %v5586_v59 = vld [vmem:[#allocation2 + $0x50] sm:$0x1]  ;;  %v2750_v39 = vsel %vm4855_vm2, %v2745_v30, %v5503_v2  ;;  %v2837_v2 = vshll.u32 %v2704_v16, 16  ;;  %v812_v30 = vmul.f32 %v806_v51, %v4665_v20  ;;  %v2774_v53 = vsel %vm4855_vm2, %v2769_v55, %v5542_v26 }
  0xb1   : > { %v2829_v4 = vshll.u32 %v5586_v59, 16  ;;  %v3902_v25 = vcombine.low %v2750_v39, %v2760_v29  ;;  %v2784_v26 = vsel %vm4855_vm2, %v2779_v6, %v2783_v32  ;;  %v2807_v15 = vrot.slane %v2805_v7, 5 }
  0xb2   : > { %v836_v20 = vadd.f32 %v830_v42, %v812_v30  ;;  %v2836_v39 = vrot.slane %v2834_v17, 4  ;;  %v2839_v55 = vrot.slane %v2837_v2, 5  ;;  %v2858_v1 = vshrl.u32 %v2707_v13, 16  ;;  %v5632_v17 = vld [vmem:[#allocation2 + $0x70] sm:$0xf] }
  0xb3   : > { %v2831_v51 = vrot.slane %v2829_v4, 5  ;;  %v2861_v16 = vshll.u32 %v2707_v13, 16  ;;  %v2867_v42 = vshll.u32 %v5609_v48, 16  ;;  %v2871_v45 = vshrl.u32 %v5609_v48, 16  ;;  %v2710_v4 = vld [vmem:[#allocation2 + $0x6c] sm:$0xf] }
  0xb4   : > { %v3990_v34 = vpack.c.bf16 %v836_v20, %v836_v20  ;;  %v2817_v44 = vrot.slane %v2816_v46, 4  ;;  %v5620_v29 = vrot.slane %v2843_v27, 5  ;;  %v3210_v32 = vsel %vm1141_vm0, %v5450_v3, 0  ;;  %v5646_v13 = vld [vmem:[#allocation2 + $0x68] sm:$0x1] }
  0xb5   : > { %v3903_v6 = vcombine.low %v2774_v53, %v2784_v26  ;;  %v2798_v14 = vsel %vm4855_vm2, %v2793_v35, %v5572_v62  ;;  %v2840_v7 = vor.u32 %v2839_v55, %v2836_v39  ;;  %v2860_v2 = vrot.slane %v2858_v1, 4 }
  0xb6   : > { %4154 = vmatmul.mubr.msk.bf16.gmra.mrb[4].mxu1 %vm1116_vm1, %v3811_v56  ;;  %4234 = vmatmul.mubr.msk.bf16.gmra.mrb[12].mxu0 %vm1116_vm1, %v4463_v47  ;;  %v2803_v56 = vrot.slane %v2802_v21, 4  ;;  %v2827_v47 = vrot.slane %v2826_v10, 4  ;;  %869 = vst.msk [vmem:[#allocation2 + $0x74] sm:$0x1] %vm753_vm12, %v3990_v34  ;;  %v2863_v30 = vrot.slane %v2861_v16, 5  ;;  %v2869_v46 = vrot.slane %v2867_v42, 5 }
  0xb7   : > { %4157 = vmatprep.mubr.msk.bf16.mxu1 %vm1116_vm1, %v5972_v43  ;;  %4239 = vmatprep.mubr.msk.bf16.mxu0 %vm1116_vm1, %v3901_v31  ;;  %v2849_v31 = vrot.slane %v2847_v57, 4  ;;  %v2873_v10 = vrot.slane %v2871_v45, 4  ;;  %v5973_v3 = vcombine.low %v5434_v63, %v5443_v41  ;;  %v2822_v62 = vsel %vm4855_vm2, %v2817_v44, %v5593_v36  ;;  %v1869_v42 = vld [vmem:[#allocation2 + $0x48] sm:$0xf] }
  0xb8   : > { %v2808_v21 = vsel %vm4855_vm2, %v2803_v56, %v2807_v15  ;;  %v2832_v53 = vsel %vm4855_vm2, %v2827_v47, %v2831_v51  ;;  %v2853_v57 = vshll.u32 %v5625_v54, 16  ;;  %v5974_v63 = vcombine.low %v5474_v61, %v5490_v28  ;;  %v4464_v15 = vld [vmem:[#allocation2 + $0xc] sm:$0xff]  }
  0xb9   : > { %v2850_v27 = vor.u32 %v2849_v31, %v5620_v29  ;;  %v2882_v41 = vshrl.u32 %v2710_v4, 16  ;;  %v2891_v20 = vshll.u32 %v5632_v17, 16  ;;  %v2895_v36 = vshrl.u32 %v5632_v17, 16 }
  0xba   : > { %v3904_v43 = vcombine.low %v2798_v14, %v2808_v21  ;;  %v2864_v26 = vor.u32 %v2863_v30, %v2860_v2  ;;  %v2874_v35 = vor.u32 %v2873_v10, %v2869_v46  ;;  %v2877_v56 = vshll.u32 %v5646_v13, 16 }
  0xbb   : > { %v3905_v51 = vcombine.low %v2822_v62, %v2832_v53  ;;  %v2841_v39 = vrot.slane %v2840_v7, 4  ;;  %v2851_v55 = vrot.slane %v2850_v27, 4  ;;  %v2855_v61 = vrot.slane %v2853_v57, 5  ;;  %v1866_v62 = vld [vmem:[#allocation2 + $0x3c] sm:$0xf] }
  0xbc   : > { %v2884_v28 = vrot.slane %v2882_v41, 4  ;;  %v5656_v1 = vrot.slane %v2891_v20, 5  ;;  %v2897_v16 = vrot.slane %v2895_v36, 4  ;;  %v2865_v44 = vrot.slane %v2864_v26, 4  ;;  %v4465_v53 = vld [vmem:[#allocation2 + $0x18] sm:$0xff]   ;;  %v4466_v41 = vld [vmem:[#allocation2 + $0x24] sm:$0xff]  }
  0xbd   : > { %v5658_v45 = vld [vmem:[#allocation2 + $0x74] sm:$0x1]  ;;  %v2875_v47 = vrot.slane %v2874_v35, 4  ;;  %v2879_v31 = vrot.slane %v2877_v56, 5  ;;  %v1999_v14 = vshrl.u32 %v1869_v42, 16  ;;  %v2856_v21 = vsel %vm4855_vm2, %v2851_v55, %v2855_v61 }
  0xbe   : > { %4158 = vmatmul.mubr.msk.bf16.gmra.mrb[8].mxu1 %vm1116_vm1, %v5973_v3  ;;  %4240 = vmatmul.mubr.msk.bf16.vlgmr.msra.gmra.mrb[0].mxu0 %vm1116_vm1, %v3902_v25  ;;  %v2885_v25 = vshll.u32 %v2710_v4, 16  ;;  %v2898_v4 = vor.u32 %v2897_v16, %v5656_v1  ;;  %v3105_v2 = vrot.slane %v5430_v22, 5  ;;  %v2002_v10 = vshll.u32 %v1869_v42, 16  ;;  %v3072_v35 = vld [vmem:[#allocation2 + $0x24] sm:$0xe] }
  0xbf   : > { %4256 = vmatpush3.bf16.msra.mxu0 %v3210_v32  ;;  %4161 = vmatprep.mubr.msk.bf16.mxu1 %vm1116_vm1, %v5974_v63  ;;  %v5975_v32 = vcombine.low %v5509_v24, %v5523_v19  ;;  %v2901_v24 = vshll.u32 %v5658_v45, 16  ;;  %v3071_v19 = vld [vmem:[#allocation2 + $0x18] sm:$0xe]  ;;  %v2001_v30 = vrot.slane %v1999_v14, 4  ;;  %v2880_v3 = vsel %vm4855_vm2, %v2875_v47, %v2879_v31  ;;  %v3073_v42 = vld [vmem:[#allocation2 + $0x30] sm:$0xe] }
  0xc0   : > { %4243 = vmatprep.mubr.msk.bf16.mxu0 %vm1116_vm1, %v3903_v6  ;;  %v2887_v34 = vrot.slane %v2885_v25, 5  ;;  %v2846_v6 = vsel %vm4855_vm2, %v2841_v39, %v5620_v29  ;;  %v2870_v29 = vsel %vm4855_vm2, %v2865_v44, %v2869_v46  ;;  %v3917_v57 = vrot.slane %v3071_v19, 9  ;;  %v4468_v19 = vld [vmem:[#allocation2 + $0x3c] sm:$0xff]  }
  0xc1   : > { %v3906_v27 = vcombine.low %v2846_v6, %v2856_v21  ;;  %v2004_v63 = vrot.slane %v2002_v10, 5  ;;  %v2899_v20 = vrot.slane %v2898_v4, 4  ;;  %v2903_v36 = vrot.slane %v2901_v24, 5 }
  0xc2   : > { %v2888_v7 = vor.u32 %v2887_v34, %v2884_v28  ;;  %v3907_v22 = vcombine.low %v2870_v29, %v2880_v3  ;;  %v3107_v26 = vrot.slane %v3105_v2, 4  ;;  %v1975_v56 = vshrl.u32 %v1866_v62, 16  ;;  %v5976_v28 = vld [vmem:[#allocation3_spill] sm:$0xff] }
  0xc3   : > { %v1978_v46 = vshll.u32 %v1866_v62, 16  ;;  %v1988_v39 = vshrl.u32 %v5190_v5, 16  ;;  %v3112_v55 = vrot.slane %v5465_v40, 5  ;;  %v2904_v34 = vsel %vm4855_vm2, %v2899_v20, %v2903_v36  ;;  %v3074_v3 = vld [vmem:[#allocation2 + $0x3c] sm:$0xe] }
  0xc4   : > { %v2889_v25 = vrot.slane %v2888_v7, 4  ;;  %v3918_v16 = vrot.slane %v3072_v35, 9  ;;  %v3119_v44 = vrot.slane %v5499_v58, 5  ;;  %v1977_v47 = vrot.slane %v1975_v56, 4  ;;  %v4467_v7 = vld [vmem:[#allocation2 + $0x30] sm:$0xff]  }
  0xc5   : > { %v1980_v31 = vrot.slane %v1978_v46, 5  ;;  %v1990_v6 = vrot.slane %v1988_v39, 4  ;;  %v5977_v14 = vsel %vm4855_vm2, %v5357_v11, %v5359_v60  ;;  %v3114_v24 = vrot.slane %v3112_v55, 4  ;;  %v4469_v39 = vld [vmem:[#allocation2 + $0x48] sm:$0xff]  }
  0xc6   : > { %4162 = vmatmul.mubr.msk.bf16.gmra.mrb[12].mxu1 %vm1116_vm1, %v5975_v32  ;;  %4244 = vmatmul.mubr.msk.bf16.gmra.mrb[4].mxu0 %vm1116_vm1, %v3904_v43  ;;  %v3108_v43 = vrot.slane %v5482_v37, 5  ;;  %v2894_v37 = vsel %vm4855_vm2, %v2889_v25, %v5656_v1  ;;  %v3115_v58 = vrot.slane %v5505_v9, 5  ;;  %v3121_v10 = vrot.slane %v3119_v44, 4 }
  0xc7   : > { %4167 = vmatprep.mubr.msk.bf16.mxu1 %vm1116_vm1, %v4464_v15  ;;  %4247 = vmatprep.mubr.msk.bf16.mxu0 %vm1116_vm1, %v3905_v51  ;;  %v2005_v15 = vor.u32 %v2004_v63, %v2001_v30  ;;  %v1984_v51 = vshll.u32 %v5190_v5, 16  ;;  %v3106_v5 = vsel %vm4995_vm15, %v3917_v57, %v3105_v2  ;;  %v3908_v4 = vcombine.low %v2894_v37, %v2904_v34  ;;  %v3075_v63 = vld [vmem:[#allocation2 + $0x48] sm:$0xe]  ;;  %v4470_v34 = vld [vmem:[#allocation2 + $0x54] sm:$0xff]  }
  0xc8   : > { %v3109_v40 = vsel %vm4995_vm15, %v3107_v26, %v3108_v43  ;;  %v3919_v30 = vrot.slane %v3073_v42, 9  ;;  %v3122_v29 = vrot.slane %v5532_v50, 5  ;;  %v3126_v62 = vrot.slane %v5528_v49, 5 }
  0xc9   : > { %v2006_v61 = vrot.slane %v2005_v15, 4  ;;  %v5701_v32 = vrot.slane %v1984_v51, 5  ;;  %v3926_v2 = vcombine.low %v3106_v5, %v3109_v40  ;;  %v3113_v11 = vsel %vm4995_vm15, %v3918_v16, %v3112_v55  ;;  %v1875_v40 = vld [vmem:[#allocation2 + $0x60] sm:$0xf] }
  0xca   : > { %v1981_v60 = vor.u32 %v1980_v31, %v1977_v47  ;;  %v3116_v9 = vsel %vm4995_vm15, %v3114_v24, %v3115_v58  ;;  %v3133_v50 = vrot.slane %v5546_v52, 5  ;;  %v3120_v25 = vsel %vm4995_vm15, %v3919_v30, %v3119_v44 }
  0xcb   : > { %v2011_v1 = vsel %vm4855_vm2, %v2006_v61, %v5262_v12  ;;  %v1872_v12 = vld [vmem:[#allocation2 + $0x54] sm:$0xf]  ;;  %v3920_v20 = vrot.slane %v3074_v3, 9  ;;  %v2032_v36 = vshll.u32 %v5280_v33, 16  ;;  %v2036_v43 = vshrl.u32 %v5280_v33, 16 }
  0xcc   : > { %v5708_v21 = vcombine.low %v2011_v1, %v5977_v14  ;;  %v2026_v49 = vshll.u32 %v1872_v12, 16  ;;  %v3128_v26 = vrot.slane %v3126_v62, 4  ;;  %v3129_v52 = vrot.slane %v5580_v8, 5  ;;  %v3076_v1 = vld [vmem:[#allocation2 + $0x54] sm:$0xe] }
  0xcd   : > { %v3921_v35 = vrot.slane %v3075_v63, 9  ;;  %v3927_v56 = vcombine.low %v3113_v11, %v3116_v9  ;;  %v1982_v15 = vrot.slane %v1981_v60, 4  ;;  %v3135_v55 = vrot.slane %v3133_v50, 4 }
  0xce   : > { %4168 = vmatmul.mubr.msk.bf16.vlgmr.msra.gmra.mrb[0].mxu1 %vm1116_vm1, %v4465_v53  ;;  %4248 = vmatmul.mubr.msk.bf16.gmra.mrb[8].mxu0 %vm1116_vm1, %v3906_v27  ;;  %v1991_v53 = vor.u32 %v1990_v6, %v5701_v32  ;;  %v4476_v27 = vld [vmem:[#allocation2 + $0x44] sm:$0x1]  ;;  %v3136_v61 = vrot.slane %v5586_v59, 5  ;;  %v2028_v37 = vrot.slane %v2026_v49, 5  ;;  %v2034_v33 = vrot.slane %v2032_v36, 5 }
  0xcf   : > { %4274 = vmatpush3.bf16.msra.mxu1 %v5976_v28  ;;  %4171 = vmatprep.mubr.msk.bf16.mxu1 %vm1116_vm1, %v4466_v41  ;;  %v1994_v57 = vshll.u32 %v4476_v27, 16  ;;  %v2023_v41 = vshrl.u32 %v1872_v12, 16  ;;  %v2038_v16 = vrot.slane %v2036_v43, 4  ;;  %v3127_v42 = vsel %vm4995_vm15, %v3920_v20, %v3126_v62  ;;  %v5979_v43 = vld [vmem:[#allocation5_spill] sm:$0xff] }
  0xd0   : > { %4251 = vmatprep.mubr.msk.bf16.mxu0 %vm1116_vm1, %v3907_v22  ;;  %v3123_v22 = vsel %vm4995_vm15, %v3121_v10, %v3122_v29  ;;  %v1992_v46 = vrot.slane %v1991_v53, 4  ;;  %v3130_v8 = vsel %vm4995_vm15, %v3128_v26, %v3129_v52  ;;  %v3134_v44 = vsel %vm4995_vm15, %v3921_v35, %v3133_v50  ;;  %v4471_v53 = vld [vmem:[#allocation2 + $0x60] sm:$0xff]  }
  0xd1   : > { %v1996_v51 = vrot.slane %v1994_v57, 5  ;;  %v2025_v28 = vrot.slane %v2023_v41, 4  ;;  %v3928_v5 = vcombine.low %v3120_v25, %v3123_v22  ;;  %v1987_v59 = vsel %vm4855_vm2, %v1982_v15, %v5701_v32  ;;  %v3078_v15 = vld [vmem:[#allocation2 + $0x6c] sm:$0xe] }
  0xd2   : > { %v3140_v31 = vrot.slane %v5597_v0, 5  ;;  %v2042_v6 = vshll.u32 %v5288_v18, 16  ;;  %v3137_v14 = vsel %vm4995_vm15, %v3135_v55, %v3136_v61  ;;  %v2047_v24 = vshrl.u32 %v1875_v40, 16 }
  0xd3   : > { %v1997_v47 = vsel %vm4855_vm2, %v1992_v46, %v1996_v51  ;;  %v2050_v58 = vshll.u32 %v1875_v40, 16  ;;  %v2039_v32 = vor.u32 %v2038_v16, %v2034_v33  ;;  %v3147_v0 = vrot.slane %v5609_v48, 5 }
  0xd4   : > { %v3929_v30 = vcombine.low %v3127_v42, %v3130_v8  ;;  %v3846_v12 = vcombine.low %v1987_v59, %v1997_v47  ;;  %v3922_v10 = vrot.slane %v3076_v1, 9  ;;  %v3143_v29 = vrot.slane %v5625_v54, 5 }
  0xd5   : > { %v3930_v3 = vcombine.low %v3134_v44, %v3137_v14  ;;  %v3142_v62 = vrot.slane %v3140_v31, 4  ;;  %v2044_v11 = vrot.slane %v2042_v6, 5  ;;  %v3150_v57 = vrot.slane %v5646_v13, 5  ;;  %v5795_v6 = vld [vmem:[%s5910_s3] ss:$0 sm:$0xff] }
  0xd6   : > { %4172 = vmatmul.mubr.msk.bf16.gmra.mrb[4].mxu1 %vm1116_vm1, %v4467_v7  ;;  %4252 = vmatmul.mubr.msk.bf16.gmra.mrb[12].mxu0 %vm1116_vm1, %v3908_v4  ;;  %v2029_v7 = vor.u32 %v2028_v37, %v2025_v28  ;;  %v3077_v4 = vld [vmem:[#allocation2 + $0x60] sm:$0xe]  ;;  %v2049_v63 = vrot.slane %v2047_v24, 4  ;;  %v2052_v9 = vrot.slane %v2050_v58, 5  ;;  %v2040_v48 = vrot.slane %v2039_v32, 4 }
  0xd7   : > { %4175 = vmatprep.mubr.msk.bf16.mxu1 %vm1116_vm1, %v4468_v19  ;;  %4257 = vmatprep.mubr.msk.bf16.mxu0 %vm1116_vm1, %v3926_v2  ;;  %v5978_v19 = vld [vmem:[#allocation4_spill] sm:$0xff]  ;;  %v3923_v60 = vrot.slane %v3077_v4, 9  ;;  %v3149_v50 = vrot.slane %v3147_v0, 4  ;;  %v3141_v25 = vsel %vm4995_vm15, %v3922_v10, %v3140_v31  ;;  %v3144_v54 = vsel %vm4995_vm15, %v3142_v62, %v3143_v29 }
  0xd8   : > { %v2056_v18 = vshll.u32 %v5978_v19, 16  ;;  %v2060_v2 = vshrl.u32 %v5978_v19, 16  ;;  %v2030_v27 = vrot.slane %v2029_v7, 4  ;;  %v2053_v36 = vor.u32 %v2052_v9, %v2049_v63 }
  0xd9   : > { %v3148_v13 = vsel %vm4995_vm15, %v3923_v60, %v3147_v0  ;;  %v2066_v22 = vshll.u32 %v5979_v43, 16  ;;  %v2045_v26 = vsel %vm4855_vm2, %v2040_v48, %v2044_v11  ;;  %v3151_v52 = vsel %vm4995_vm15, %v3149_v50, %v3150_v57 }
  0xda   : > { %v2058_v41 = vrot.slane %v2056_v18, 5  ;;  %v2062_v49 = vrot.slane %v2060_v2, 4  ;;  %v2035_v20 = vsel %vm4855_vm2, %v2030_v27, %v2034_v33  ;;  %v3931_v46 = vcombine.low %v3141_v25, %v3144_v54 }
  0xdb   : > { %v3848_v51 = vcombine.low %v2035_v20, %v2045_v26  ;;  %v2054_v55 = vrot.slane %v2053_v36, 4  ;;  %v2068_v61 = vrot.slane %v2066_v22, 5  ;;  %v3924_v37 = vrot.slane %v3078_v15, 9 }
  0xdc   : > { %v2063_v35 = vor.u32 %v2062_v49, %v2058_v41 }
  0xde   : > { %4176 = vmatmul.mubr.msk.bf16.gmra.mrb[8].mxu1 %vm1116_vm1, %v4469_v39  ;;  %4258 = vmatmul.mubr.msk.bf16.vlgmr.msra.gmra.mrb[0].mxu0 %vm1116_vm1, %v3927_v56  ;;  %v3154_v56 = vrot.slane %v5632_v17, 5  ;;  %v3932_v39 = vcombine.low %v3148_v13, %v3151_v52  ;;  %v2064_v28 = vrot.slane %v2063_v35, 4  ;;  %v2059_v17 = vsel %vm4855_vm2, %v2054_v55, %v2058_v41 }
  0xdf   : > { %4179 = vmatprep.mubr.msk.bf16.mxu1 %vm1116_vm1, %v4470_v34  ;;  %4261 = vmatprep.mubr.msk.bf16.mxu0 %vm1116_vm1, %v3928_v5  ;;  %v3157_v5 = vrot.slane %v5658_v45, 5 }
  0xe0   : > { %v3156_v34 = vrot.slane %v3154_v56, 4  ;;  %v2069_v33 = vsel %vm4855_vm2, %v2064_v28, %v2068_v61  ;;  %v3155_v45 = vsel %vm4995_vm15, %v3924_v37, %v3154_v56 }
  0xe1   : > { %v3849_v16 = vcombine.low %v2059_v17, %v2069_v33 }
  0xe6   : > { %4180 = vmatmul.mubr.msk.bf16.gmra.mrb[12].mxu1 %vm1116_vm1, %v4471_v53  ;;  %4262 = vmatmul.mubr.msk.bf16.gmra.mrb[4].mxu0 %vm1116_vm1, %v3929_v30 }
  0xe7   : > { %4193 = vmatprep.mubr.msk.bf16.mxu1 %vm1116_vm1, %v3846_v12  ;;  %4265 = vmatprep.mubr.msk.bf16.mxu0 %vm1116_vm1, %v3930_v3 }
  0xee   : > { %4194 = vmatmul.mubr.msk.bf16.vlgmr.msra.gmra.mrb[8].mxu1 %vm1116_vm1, %v5708_v21  ;;  %4266 = vmatmul.mubr.msk.bf16.gmra.mrb[8].mxu0 %vm1116_vm1, %v3931_v46  ;;  %v3158_v21 = vsel %vm4995_vm15, %v3156_v34, %v3157_v5 }
  0xef   : > { %4197 = vmatprep.mubr.msk.bf16.mxu1 %vm1116_vm1, %v3848_v51  ;;  %4269 = vmatprep.mubr.msk.bf16.mxu0 %vm1116_vm1, %v3932_v39  ;;  %v3933_v40 = vcombine.low %v3155_v45, %v3158_v21 }
  0xf6   : > { %4198 = vmatmul.mubr.msk.bf16.gmra.mrb[12].mxu1 %vm1116_vm1, %v3849_v16  ;;  %4270 = vmatmul.mubr.msk.bf16.gmra.mrb[12].mxu0 %vm1116_vm1, %v3933_v40 }
 0x1a1   : > { %v4169_v42 = vpop.f32.mrb[0].mxu1 }
 0x1a2   : > { %v1775_v8 = vpop.f32.mrb[1].mxu1 }
 0x1a3   : > { %v4170_v44 = vpop.f32.mrb[2].mxu1 }
 0x1a4   : > { %v1778_v59 = vpop.f32.mrb[3].mxu1 }
 0x1a9   : > { %v4173_v23 = vpop.f32.mrb[4].mxu1 }
 0x1aa   : > { %v1791_v47 = vpop.f32.mrb[5].mxu1 }
 0x1ab   : > { %v4174_v1 = vpop.f32.mrb[6].mxu1 }
 0x1ac   : > { %v1794_v31 = vpop.f32.mrb[7].mxu1 }
 0x1b1   : > { %v4259_v38 = vpop.f32.mrb[0].mxu0 }
 0x1b2   : > { %v4275_v14 = vadd.f32 %v4259_v38, %v4169_v42  ;;  %v3246_v7 = vpop.f32.mrb[1].mxu0 }
 0x1b3   : > { %v4276_v4 = vadd.f32 %v3246_v7, %v1775_v8  ;;  %v4260_v24 = vpop.f32.mrb[2].mxu0 }
 0x1b4   : > { %v3334_v58 = vadd.f32 %v4275_v14, %v5795_v6  ;;  %v4277_v32 = vadd.f32 %v4260_v24, %v4170_v44  ;;  %v3249_v0 = vpop.f32.mrb[3].mxu0 }
 0x1b5   : > { %v3332_v19 = vadd.f32 %v4276_v4, %v5795_v6  ;;  %v4278_v18 = vadd.f32 %v3249_v0, %v1778_v59 }
 0x1b6   : > { %vm3350_vm0 = vcmp.ge.f32.partialorder %v3334_v58, 0.0  ;;  %v3366_v2 = vmul.f32 0.01, %v3334_v58  ;;  %v3335_v30 = vadd.f32 %v4277_v32, %v5795_v6 }
 0x1b7   : > { %vm3348_vm5 = vcmp.ge.f32.partialorder %v3332_v19, 0.0  ;;  %v3364_v12 = vmul.f32 0.01, %v3332_v19  ;;  %v3333_v3 = vadd.f32 %v4278_v18, %v5795_v6 }
 0x1b8   : > { %v3382_v10 = vsel %vm3350_vm0, %v3334_v58, %v3366_v2  ;;  %vm3351_vm2 = vcmp.ge.f32.partialorder %v3335_v30, 0.0  ;;  %v3367_v29 = vmul.f32 0.01, %v3335_v30 }
 0x1b9   : > { %v3993_v62 = vpack.c.bf16 %v3382_v10, %v3382_v10  ;;  %v3380_v11 = vsel %vm3348_vm5, %v3332_v19, %v3364_v12  ;;  %v4263_v60 = vpop.f32.mrb[4].mxu0  ;;  %v3479_v9 = vsel %vm1116_vm1, %v3382_v10, 0.0  ;;  %v3516_v41 = vmul.f32 %v3382_v10, %v3382_v10 }
 0x1ba   : > { %v3991_v53 = vpack.c.bf16 %v3380_v11, %v3380_v11  ;;  %v3514_v27 = vmul.f32 %v3380_v11, %v3380_v11  ;;  %v3383_v57 = vsel %vm3351_vm2, %v3335_v30, %v3367_v29  ;;  %v3262_v63 = vpop.f32.mrb[5].mxu0  ;;  %vm3349_vm15 = vcmp.ge.f32.partialorder %v3333_v3, 0.0 }
 0x1bb   : > { %3462 = vst.msk [vmem:[%s5803_s16 + $0x8] sm:$0xf] %vm750_vm11, %v3993_v62  ;;  %v3994_v48 = vpack.c.bf16 %v3383_v57, %v3383_v57  ;;  %v4264_v50 = vpop.f32.mrb[6].mxu0  ;;  %v3365_v49 = vmul.f32 0.01, %v3333_v3  ;;  %v4279_v25 = vadd.f32 %v4263_v60, %v4173_v23  ;;  %v3476_v20 = vsel %vm1116_vm1, %v3380_v11, 0.0 }
 0x1bc   : > { %3460 = vst.msk [vmem:[%s5803_s16] sm:$0xf] %vm750_vm11, %v3991_v53  ;;  %v3265_v54 = vpop.f32.mrb[7].mxu0  ;;  %v4280_v13 = vadd.f32 %v3262_v63, %v1791_v47  ;;  %v4281_v36 = vadd.f32 %v4264_v50, %v4174_v1  ;;  %v3530_v22 = vsel %vm1116_vm1, %v3514_v27, 0.0  ;;  %v3517_v26 = vmul.f32 %v3383_v57, %v3383_v57 }
 0x1bd   : > { %3463 = vst.msk [vmem:[%s5803_s16 + $0xc] sm:$0xf] %vm750_vm11, %v3994_v48  ;;  %v4282_v43 = vadd.f32 %v3265_v54, %v1794_v31  ;;  %v3381_v52 = vsel %vm3349_vm15, %v3333_v3, %v3365_v49  ;;  %v3338_v35 = vadd.f32 %v4279_v25, %v5795_v6  ;;  %v3533_v33 = vsel %vm1116_vm1, %v3516_v41, 0.0 }
 0x1be   : > { %v3992_v56 = vpack.c.bf16 %v3381_v52, %v3381_v52  ;;  %v3477_v15 = vsel %vm1116_vm1, %v3381_v52, 0.0  ;;  %v3515_v46 = vmul.f32 %v3381_v52, %v3381_v52  ;;  %v3336_v51 = vadd.f32 %v4280_v13, %v5795_v6 }
 0x1bf   : > { %v3478_v39 = vadd.f32 %v3477_v15, %v3476_v20  ;;  %vm3354_vm14 = vcmp.ge.f32.partialorder %v3338_v35, 0.0  ;;  %v3370_v55 = vmul.f32 0.01, %v3338_v35  ;;  %v3339_v61 = vadd.f32 %v4281_v36, %v5795_v6 }
 0x1c0   : > { %3461 = vst.msk [vmem:[%s5803_s16 + $0x4] sm:$0xf] %vm750_vm11, %v3992_v56  ;;  %v3531_v28 = vsel %vm1116_vm1, %v3515_v46, 0.0  ;;  %vm3352_vm3 = vcmp.ge.f32.partialorder %v3336_v51, 0.0  ;;  %v3368_v37 = vmul.f32 0.01, %v3336_v51  ;;  %v3337_v34 = vadd.f32 %v4282_v43, %v5795_v6 }
 0x1c1   : > { %v4195_v5 = vpop.f32.mrb[8].mxu1  ;;  %v4267_v17 = vpop.f32.mrb[8].mxu0  ;;  %v3480_v45 = vadd.f32 %v3479_v9, %v3478_v39  ;;  %v3532_v21 = vadd.f32 %v3531_v28, %v3530_v22  ;;  %v3386_v16 = vsel %vm3354_vm14, %v3338_v35, %v3370_v55  ;;  %v3481_v8 = vsel %vm1116_vm1, %v3383_v57, 0.0 }
 0x1c2   : > { %v2189_v40 = vpop.f32.mrb[9].mxu1  ;;  %v3278_v42 = vpop.f32.mrb[9].mxu0  ;;  %v3997_v44 = vpack.c.bf16 %v3386_v16, %v3386_v16  ;;  %v3384_v59 = vsel %vm3352_vm3, %v3336_v51, %v3368_v37  ;;  %vm3355_vm6 = vcmp.ge.f32.partialorder %v3339_v61, 0.0  ;;  %v3535_v24 = vsel %vm1116_vm1, %v3517_v26, 0.0 }
 0x1c3   : > { %v4196_v23 = vpop.f32.mrb[10].mxu1  ;;  %v4268_v47 = vpop.f32.mrb[10].mxu0  ;;  %v3534_v1 = vadd.f32 %v3533_v33, %v3532_v21  ;;  %v3995_v31 = vpack.c.bf16 %v3384_v59, %v3384_v59  ;;  %v3482_v38 = vadd.f32 %v3481_v8, %v3480_v45  ;;  %v3483_v14 = vsel %vm1116_vm1, %v3384_v59, 0.0 }
 0x1c4   : > { %v2192_v7 = vpop.f32.mrb[11].mxu1  ;;  %v3281_v4 = vpop.f32.mrb[11].mxu0  ;;  %3466 = vst.msk [vmem:[%s5803_s16 + $0x18] sm:$0xf] %vm750_vm11, %v3997_v44  ;;  %v3518_v58 = vmul.f32 %v3384_v59, %v3384_v59  ;;  %v3371_v32 = vmul.f32 0.01, %v3339_v61  ;;  %v4283_v2 = vadd.f32 %v4267_v17, %v4195_v5  ;;  %v4284_v10 = vadd.f32 %v3278_v42, %v2189_v40 }
 0x1c5   : > { %vm3353_vm7 = vcmp.ge.f32.partialorder %v3337_v34, 0.0  ;;  %3464 = vst.msk [vmem:[%s5803_s16 + $0x10] sm:$0xf] %vm750_vm11, %v3995_v31  ;;  %v3484_v0 = vadd.f32 %v3483_v14, %v3482_v38  ;;  %v3536_v19 = vadd.f32 %v3535_v24, %v3534_v1  ;;  %v3369_v18 = vmul.f32 0.01, %v3337_v34 }
 0x1c6   : > { %v3537_v30 = vsel %vm1116_vm1, %v3518_v58, 0.0  ;;  %v3387_v12 = vsel %vm3355_vm6, %v3339_v61, %v3371_v32  ;;  %v4285_v29 = vadd.f32 %v4268_v47, %v4196_v23  ;;  %v3487_v3 = vsel %vm1116_vm1, %v3386_v16, 0.0 }
 0x1c7   : > { %v3520_v62 = vmul.f32 %v3386_v16, %v3386_v16  ;;  %v3538_v11 = vadd.f32 %v3537_v30, %v3536_v19  ;;  %v3998_v60 = vpack.c.bf16 %v3387_v12, %v3387_v12  ;;  %v3385_v53 = vsel %vm3353_vm7, %v3337_v34, %v3369_v18 }
 0x1c8   : > { %v3342_v27 = vadd.f32 %v4283_v2, %v5795_v6  ;;  %v3340_v57 = vadd.f32 %v4284_v10, %v5795_v6  ;;  %v3343_v63 = vadd.f32 %v4285_v29, %v5795_v6  ;;  %v3521_v50 = vmul.f32 %v3387_v12, %v3387_v12 }
 0x1c9   : > { %v4199_v9 = vpop.f32.mrb[12].mxu1  ;;  %v4271_v48 = vpop.f32.mrb[12].mxu0  ;;  %3467 = vst.msk [vmem:[%s5803_s16 + $0x1c] sm:$0xf] %vm750_vm11, %v3998_v60  ;;  %v3996_v41 = vpack.c.bf16 %v3385_v53, %v3385_v53  ;;  %v3485_v49 = vsel %vm1116_vm1, %v3385_v53, 0.0  ;;  %v3519_v25 = vmul.f32 %v3385_v53, %v3385_v53  ;;  %v4286_v51 = vadd.f32 %v3281_v4, %v2192_v7 }
 0x1ca   : > { %v2205_v54 = vpop.f32.mrb[13].mxu1  ;;  %v3294_v20 = vpop.f32.mrb[13].mxu0  ;;  %v3486_v13 = vadd.f32 %v3485_v49, %v3484_v0  ;;  %vm3358_vm8 = vcmp.ge.f32.partialorder %v3342_v27, 0.0  ;;  %v3374_v36 = vmul.f32 0.01, %v3342_v27  ;;  %vm3356_vm9 = vcmp.ge.f32.partialorder %v3340_v57, 0.0 }
 0x1cb   : > { %v4200_v43 = vpop.f32.mrb[14].mxu1  ;;  %v4272_v22 = vpop.f32.mrb[14].mxu0  ;;  %3465 = vst.msk [vmem:[%s5803_s16 + $0x14] sm:$0xf] %vm750_vm11, %v3996_v41  ;;  %v3539_v26 = vsel %vm1116_vm1, %v3519_v25, 0.0  ;;  %vm3359_vm10 = vcmp.ge.f32.partialorder %v3343_v63, 0.0  ;;  %v3341_v42 = vadd.f32 %v4286_v51, %v5795_v6  ;;  %v4287_v31 = vadd.f32 %v4271_v48, %v4199_v9 }
 0x1cc   : > { %v3372_v52 = vmul.f32 0.01, %v3340_v57  ;;  %v3375_v35 = vmul.f32 0.01, %v3343_v63  ;;  %v3488_v56 = vadd.f32 %v3487_v3, %v3486_v13  ;;  %v3540_v15 = vadd.f32 %v3539_v26, %v3538_v11  ;;  %v2208_v39 = vpop.f32.mrb[15].mxu1  ;;  %v3297_v55 = vpop.f32.mrb[15].mxu0 }
 0x1cd   : > { %v3390_v46 = vsel %vm3358_vm8, %v3342_v27, %v3374_v36  ;;  %v3541_v61 = vsel %vm1116_vm1, %v3520_v62, 0.0  ;;  %v3489_v28 = vsel %vm1116_vm1, %v3387_v12, 0.0  ;;  %v3543_v21 = vsel %vm1116_vm1, %v3521_v50, 0.0 }
 0x1ce   : > { %v4001_v37 = vpack.c.bf16 %v3390_v46, %v3390_v46  ;;  %v3388_v34 = vsel %vm3356_vm9, %v3340_v57, %v3372_v52  ;;  %v3542_v5 = vadd.f32 %v3541_v61, %v3540_v15  ;;  %v3490_v33 = vadd.f32 %v3489_v28, %v3488_v56 }
 0x1cf   : > { %v3999_v17 = vpack.c.bf16 %v3388_v34, %v3388_v34  ;;  %v3491_v45 = vsel %vm1116_vm1, %v3388_v34, 0.0  ;;  %v3522_v16 = vmul.f32 %v3388_v34, %v3388_v34  ;;  %v3391_v40 = vsel %vm3359_vm10, %v3343_v63, %v3375_v35 }
 0x1d0   : > { %3470 = vst.msk [vmem:[%s5803_s16 + $0x28] sm:$0xf] %vm750_vm11, %v4001_v37  ;;  %v3492_v8 = vadd.f32 %v3491_v45, %v3490_v33  ;;  %v3544_v44 = vadd.f32 %v3543_v21, %v3542_v5  ;;  %v4002_v59 = vpack.c.bf16 %v3391_v40, %v3391_v40  ;;  %vm3357_vm13 = vcmp.ge.f32.partialorder %v3341_v42, 0.0 }
 0x1d1   : > { %3468 = vst.msk [vmem:[%s5803_s16 + $0x20] sm:$0xf] %vm750_vm11, %v3999_v17  ;;  %v3545_v23 = vsel %vm1116_vm1, %v3522_v16, 0.0  ;;  %v3373_v47 = vmul.f32 0.01, %v3341_v42  ;;  %v4288_v38 = vadd.f32 %v3294_v20, %v2205_v54  ;;  %v4289_v14 = vadd.f32 %v4272_v22, %v4200_v43 }
 0x1d2   : > { %v3546_v1 = vadd.f32 %v3545_v23, %v3544_v44  ;;  %3471 = vst.msk [vmem:[%s5803_s16 + $0x2c] sm:$0xf] %vm750_vm11, %v4002_v59  ;;  %v3495_v7 = vsel %vm1116_vm1, %v3390_v46, 0.0  ;;  %v3524_v4 = vmul.f32 %v3390_v46, %v3390_v46  ;;  %v4290_v58 = vadd.f32 %v3297_v55, %v2208_v39 }
 0x1d3   : > { %v3389_v24 = vsel %vm3357_vm13, %v3341_v42, %v3373_v47  ;;  %v3346_v18 = vadd.f32 %v4287_v31, %v5795_v6  ;;  %v3344_v30 = vadd.f32 %v4288_v38, %v5795_v6  ;;  %v3347_v12 = vadd.f32 %v4289_v14, %v5795_v6 }
 0x1d4   : > { %v4000_v32 = vpack.c.bf16 %v3389_v24, %v3389_v24  ;;  %v3493_v0 = vsel %vm1116_vm1, %v3389_v24, 0.0  ;;  %v3523_v19 = vmul.f32 %v3389_v24, %v3389_v24  ;;  %v3345_v10 = vadd.f32 %v4290_v58, %v5795_v6 }
 0x1d5   : > { %v3494_v2 = vadd.f32 %v3493_v0, %v3492_v8  ;;  %v3525_v29 = vmul.f32 %v3391_v40, %v3391_v40  ;;  %vm3362_vm4 = vcmp.ge.f32.partialorder %v3346_v18, 0.0  ;;  %v3378_v62 = vmul.f32 0.01, %v3346_v18 }
 0x1d6   : > { %3469 = vst.msk [vmem:[%s5803_s16 + $0x24] sm:$0xf] %vm750_vm11, %v4000_v32  ;;  %v3547_v3 = vsel %vm1116_vm1, %v3523_v19, 0.0  ;;  %vm3360_vm0 = vcmp.ge.f32.partialorder %v3344_v30, 0.0  ;;  %v3376_v53 = vmul.f32 0.01, %v3344_v30 }
 0x1d7   : > { %v3496_v11 = vadd.f32 %v3495_v7, %v3494_v2  ;;  %v3548_v60 = vadd.f32 %v3547_v3, %v3546_v1  ;;  %v3549_v27 = vsel %vm1116_vm1, %v3524_v4, 0.0  ;;  %v3394_v57 = vsel %vm3362_vm4, %v3346_v18, %v3378_v62 }
 0x1d8   : > { %vm3363_vm5 = vcmp.ge.f32.partialorder %v3347_v12, 0.0  ;;  %v3379_v63 = vmul.f32 0.01, %v3347_v12  ;;  %v3497_v9 = vsel %vm1116_vm1, %v3391_v40, 0.0  ;;  %v4005_v48 = vpack.c.bf16 %v3394_v57, %v3394_v57 }
 0x1d9   : > { %v3550_v6 = vadd.f32 %v3549_v27, %v3548_v60  ;;  %vm3361_vm2 = vcmp.ge.f32.partialorder %v3345_v10, 0.0  ;;  %v3392_v50 = vsel %vm3360_vm0, %v3344_v30, %v3376_v53  ;;  %v3498_v41 = vadd.f32 %v3497_v9, %v3496_v11 }
 0x1da   : > { %v3395_v49 = vsel %vm3363_vm5, %v3347_v12, %v3379_v63  ;;  %v3377_v25 = vmul.f32 0.01, %v3345_v10  ;;  %v3551_v54 = vsel %vm1116_vm1, %v3525_v29, 0.0  ;;  %3474 = vst.msk [vmem:[%s5803_s16 + $0x38] sm:$0xf] %vm750_vm11, %v4005_v48  ;;  %v4003_v20 = vpack.c.bf16 %v3392_v50, %v3392_v50 }
 0x1db   : > { %v3499_v13 = vsel %vm1116_vm1, %v3392_v50, 0.0  ;;  %v3526_v36 = vmul.f32 %v3392_v50, %v3392_v50  ;;  %v3552_v22 = vadd.f32 %v3551_v54, %v3550_v6  ;;  %v4006_v26 = vpack.c.bf16 %v3395_v49, %v3395_v49 }
 0x1dc   : > { %v3500_v43 = vadd.f32 %v3499_v13, %v3498_v41  ;;  %v3528_v52 = vmul.f32 %v3394_v57, %v3394_v57  ;;  %3472 = vst.msk [vmem:[%s5803_s16 + $0x30] sm:$0xf] %vm750_vm11, %v4003_v20  ;;  %v3393_v56 = vsel %vm3361_vm2, %v3345_v10, %v3377_v25  ;;  %v3503_v61 = vsel %vm1116_vm1, %v3394_v57, 0.0 }
 0x1dd   : > { %v3553_v35 = vsel %vm1116_vm1, %v3526_v36, 0.0  ;;  %3475 = vst.msk [vmem:[%s5803_s16 + $0x3c] sm:$0xf] %vm750_vm11, %v4006_v26  ;;  %v4004_v46 = vpack.c.bf16 %v3393_v56, %v3393_v56  ;;  %v3501_v51 = vsel %vm1116_vm1, %v3393_v56, 0.0  ;;  %v3527_v39 = vmul.f32 %v3393_v56, %v3393_v56 }
 0x1de   : > { %v3554_v15 = vadd.f32 %v3553_v35, %v3552_v22  ;;  %v3502_v55 = vadd.f32 %v3501_v51, %v3500_v43  ;;  %v3529_v28 = vmul.f32 %v3395_v49, %v3395_v49  ;;  %v3557_v17 = vsel %vm1116_vm1, %v3528_v52, 0.0 }
 0x1df   : > { %3473 = vst.msk [vmem:[%s5803_s16 + $0x34] sm:$0xf] %vm750_vm11, %v4004_v46  ;;  %v3555_v37 = vsel %vm1116_vm1, %v3527_v39, 0.0  ;;  %v3505_v33 = vsel %vm1116_vm1, %v3395_v49, 0.0 }
 0x1e0   : > { %v3504_v34 = vadd.f32 %v3503_v61, %v3502_v55  ;;  %v3556_v5 = vadd.f32 %v3555_v37, %v3554_v15  ;;  %v3559_v16 = vsel %vm1116_vm1, %v3529_v28, 0.0 }
 0x1e2   : > { %v3506_v45 = vadd.f32 %v3505_v33, %v3504_v34  ;;  %v3558_v21 = vadd.f32 %v3557_v17, %v3556_v5 }
 0x1e4   : > { %v3507_v40 = vrot.slane %v3506_v45, 4  ;;  %v3560_v42 = vadd.f32 %v3559_v16, %v3558_v21 }
 0x1e6   : > { %v3508_v8 = vadd.f32 %v3507_v40, %v3506_v45  ;;  %v3561_v44 = vrot.slane %v3560_v42, 4 }
 0x1e8   : > { %v3509_v59 = vrot.slane %v3508_v8, 2  ;;  %v3562_v23 = vadd.f32 %v3561_v44, %v3560_v42 }
 0x1ea   : > { %v3510_v47 = vadd.f32 %v3509_v59, %v3508_v8  ;;  %v3563_v1 = vrot.slane %v3562_v23, 2 }
 0x1ec   : > { %v3511_v31 = vrot.slane %v3510_v47, 1  ;;  %v3564_v38 = vadd.f32 %v3563_v1, %v3562_v23 }
 0x1ee   : > { %v3512_v14 = vadd.f32 %v3511_v31, %v3510_v47  ;;  %v3565_v7 = vrot.slane %v3564_v38, 1 }
 0x1f0   : > { %3513 = vst.msk [vmem:[%s373_s20] sm:$0x1] %vm753_vm12, %v3512_v14  ;;  %v3566_v4 = vadd.f32 %v3565_v7, %v3564_v38 }
 0x1f2   : > { %3567 = vst.msk [vmem:[%s373_s20 + $0x1] sm:$0x1] %vm753_vm12, %v3566_v4 }
 0x1f3 PF: > { %s17_s25 = sadd.s32 1, %s4515_s25   ;;  %s5980_s21 = smov %s4507_s23 }
 0x1f4   : > { %p14_p9 = scmp.ge.s32.totalorder %s17_s25, 6   ;;  %s5981_s22 = smov %s4511_s24 }
 0x1f5   : > { %s5982_s23 = smov %s5985_s26  ;;  %s5983_s24 = smov %s5989_s27 }
 0x1f6   :  { %16 = sbr.rel (!%p14_p9) target bundleno = 3 (0x3), region = 96 }

// kernel: double_conv_bn_forward.3
= control target key start
LH: loop header
LB: loop body
LE: loop exit
PB: predicated region body
PF: predicated region fallthrough
CT: control target
= control target key end

     0   :  { %s4227_s21 = smov 0   ;;  %s4229_s22 = smov 0   ;;  %s5213_s0 = inlined_call_operand.vmem [shape: f32[2,18,18,4], index: 0, kind: input, shape index: {}]   ;;  %s5214_s1 = inlined_call_operand.vmem [shape: f32[4,2,18,4], index: 1, kind: input, shape index: {}]   ;;  %s5215_s2 = inlined_call_operand.vmem [shape: bf16[9,4,8], index: 2, kind: input, shape index: {}]   ;;  %s5216_s3 = inlined_call_operand.vmem [shape: f32[1,8], index: 3, kind: input, shape index: {}]   ;;  %s5217_s4 = inlined_call_operand.vmem [shape: f32[2,4], index: 4, kind: input, shape index: {}]   ;;  %s5218_s5 = inlined_call_operand.vmem [shape: bf16[2,16,16,8], index: 5, kind: output, shape index: {0}]   ;;  %s5219_s6 = inlined_call_operand.vmem [shape: f32[4,2,8], index: 6, kind: output, shape index: {1}]  }
   0x1   :  { %s4231_s23 = smov 0   ;;  %s4233_s24 = smov 0  }
   0x2   :  { %s4235_s25 = smov 0  }
   0x3 LB: > { %s26_s4 = sadd.s32 1, %s4182_s23  ;;  %s29_s26 = sadd.s32 1, %s4186_s24  ;;  %s4190_s25 = sphi %s4235_s25, %s17_s25   ;;  %s4186_s24 = sphi %s4233_s24, %s5248_s24   ;;  %s4182_s23 = sphi %s4231_s23, %s5247_s23   ;;  %s4178_s22 = sphi %s4229_s22, %s5246_s22   ;;  %s4174_s21 = sphi %s4227_s21, %s5245_s21  }
   0x4   : > { %p27_p0 = scmp.ge.s32.totalorder %s26_s4, 2  ;;  %p3427_p1 = scmp.ge.s32.totalorder %s4190_s25, 1 }
   0x5   : > { %p269_p2 = scmp.lt.s32.totalorder %s4190_s25, 5 }
   0x6   : > { %s5250_s4 = smov (%p27_p0, %s26_s4), 0  ;;  %s5252_s26 = smov (!%p27_p0, %s29_s26), %s4186_s24 }
   0x7   : > { %p270_p3 = pnand %p3427_p1, %p269_p2  ;;  %p31_p4 = scmp.ge.s32.totalorder %s5252_s26, 2 }
   0x9   : > { %s5254_s26 = smov (%p31_p4, %s5252_s26), 0  ;;  %273 = sbr.rel (%p270_p3) target bundleno = 472 (0x1d8), region = 40 }
  0x10   : > { %v3468_v0 = vld [vmem:[%s5215_s2 + $0x2] sm:$0x3]  ;;  %vm841_vm0 = vcmask 1041408   ;;  %v3543_v1 = vld [vmem:[%s5215_s2 + $0x8] sm:$0x3]  ;;  %s4268_s7 = sshll.u32 %s4174_s21, 3 }
  0x11   : > { %4082 = vmatprep.subr.msk.bf16.mxu1 %vm841_vm0, %v3468_v0  ;;  %4086 = vmatprep.subr.msk.bf16.mxu0 %vm841_vm0, %v3543_v1  ;;  %v843_v2 = vsel %vm841_vm0, %v3468_v0, 0  ;;  %v4274_v3 = vsel %vm841_vm0, %v3543_v1, 0  ;;  %p333_p5 = scmp.lt.s32.totalorder %s4178_s22, 1  ;;  %p335_p6 = scmp.lt.s32.totalorder %s4268_s7, 17  ;;  %v4285_v4 = vld [vmem:[%s5215_s2] sm:$0x3] }
  0x12   : > { %3791 = vmatpush3.bf16.msra.mxu1 %v843_v2  ;;  %3863 = vmatpush3.bf16.msra.mxu0 %v4274_v3  ;;  %v4290_v5 = vld [vmem:[%s5215_s2 + $0xa] sm:$0x3]  ;;  %s3430_s15 = sshll.u32 %s4178_s22, 1  ;;  %vm505_vm1 = vcmask 27648   ;;  %vm508_vm2 = vcmask 24576   ;;  %vm816_vm5 = vcmask 31744  }
  0x13   : > { %s4280_s8 = scalar_select %p333_p5, %s4178_s22, 1  ;;  %4083 = vmatprep.subr.msk.bf16.mxu1 %vm841_vm0, %v4285_v4  ;;  %4088 = vmatprep.subr.msk.bf16.mxu0 %vm841_vm0, %v4290_v5  ;;  %vm595_vm3 = vsmask.f32 3328  ;;  %vm596_vm4 = vsmask.f32 7440  ;;  %vm1130_vm7 = vcmask 1042432  }
  0x14   : > { %s336_s13 = scalar_select %p335_p6, %s4268_s7, 17  ;;  %vm4404_vm6 = vmor %vm595_vm3, %vm596_vm4  ;;  %vm1131_vm8 = vcmask 1046532   ;;  %vm3160_vm11 = vcmask 60416   ;;  %vm3177_vm12 = vcmask 64512  }
  0x15   : > { %s4093_s14 = smul.u32 54, %s4280_s8  ;;  %s349_s17 = sadd.s32 %s4174_s21, %s3430_s15  ;;  %vm4538_vm9 = vmor %vm1130_vm7, %vm1131_vm8 }
  0x16   : > { %s4092_s16 = smul.u32 3, %s336_s13  ;;  %p350_p7 = scmp.lt.s32.totalorder %s349_s17, 3 }
  0x17   : > { %p360_p8 = scmp.lt.s32.totalorder %s4268_s7, 15 }
  0x18   : > { %s339_s18 = sadd.s32 %s4093_s14, %s4092_s16  ;;  %s5256_s17 = smov (!%p350_p7, %s349_s17), 3 }
  0x19   : > { %s3429_s19 = sshll.u32 %s339_s18, 3  ;;  %s4094_s21 = smul.u32 48, %s5256_s17 }
  0x1a   : > { %s4303_s28 = scalar_lea.vmem %s5213_s0, %s3429_s19  ;;  %s5258_s7 = smov (!%p360_p8, %s4268_s7), 15 }
  0x1b   : > { %v377_v6 = vld [vmem:[%s4303_s28] sm:$0xff]  ;;  %v378_v7 = vld [vmem:[%s4303_s28 + $0x8] sm:$0xff]  ;;  %v379_v8 = vld [vmem:[%s4303_s28 + $0x10] sm:$0x3]  ;;  %s4338_s30 = scalar_lea.vmem %s5214_s1, %s4094_s21  ;;  %s3434_s21 = sshll.u32 %s4280_s8, 5 }
  0x1c   : > { %v3663_v9 = vpack.c.bf16 %v377_v6, %v377_v6  ;;  %v3664_v10 = vpack.c.bf16 %v378_v7, %v378_v7  ;;  %v3665_v11 = vpack.c.bf16 %v379_v8, %v379_v8  ;;  %v380_v12 = vld [vmem:[%s4303_s28 + $0x18] sm:$0xff]  ;;  %v381_v13 = vld [vmem:[%s4303_s28 + $0x20] sm:$0xff]  ;;  %v382_v14 = vld [vmem:[%s4303_s28 + $0x28] sm:$0x3]  ;;  %s3437_s11 = sshll.u32 %s5256_s17, 1 }
  0x1d   : > { %v3666_v15 = vpack.c.bf16 %v380_v12, %v380_v12  ;;  %v3667_v16 = vpack.c.bf16 %v381_v13, %v381_v13  ;;  %v3668_v17 = vpack.c.bf16 %v382_v14, %v382_v14  ;;  %v383_v18 = vld [vmem:[%s4303_s28 + $0x30] sm:$0xff]  ;;  %v384_v19 = vld [vmem:[%s4303_s28 + $0x38] sm:$0xff]  ;;  %v385_v20 = vld [vmem:[%s4303_s28 + $0x40] sm:$0x3]  ;;  %s373_s14 = scalar_lea.vmem %s5219_s6, %s3437_s11 }
  0x1e   : > { %506 = vst.msk [vmem:[#allocation2] sm:$0xf] %vm505_vm1, %v3663_v9  ;;  %507 = vst.msk [vmem:[#allocation2 + $0x4] sm:$0xf] %vm505_vm1, %v3664_v10  ;;  %v3669_v21 = vpack.c.bf16 %v383_v18, %v383_v18  ;;  %v3670_v22 = vpack.c.bf16 %v384_v19, %v384_v19  ;;  %v3671_v23 = vpack.c.bf16 %v385_v20, %v385_v20  ;;  %v386_v24 = vld [vmem:[%s4303_s28 + $0x48] sm:$0xff]  ;;  %v387_v25 = vld [vmem:[%s4303_s28 + $0x50] sm:$0xff] }
  0x1f   : > { %509 = vst.msk [vmem:[#allocation2 + $0x8] sm:$0x1] %vm508_vm2, %v3665_v11  ;;  %v388_v26 = vld [vmem:[%s4303_s28 + $0x58] sm:$0x3]  ;;  %512 = vst.msk [vmem:[#allocation2 + $0x14] sm:$0x1] %vm508_vm2, %v3668_v17  ;;  %v3672_v27 = vpack.c.bf16 %v386_v24, %v386_v24  ;;  %v3673_v28 = vpack.c.bf16 %v387_v25, %v387_v25 }
  0x20   : > { %510 = vst.msk [vmem:[#allocation2 + $0xc] sm:$0xf] %vm505_vm1, %v3666_v15  ;;  %511 = vst.msk [vmem:[#allocation2 + $0x10] sm:$0xf] %vm505_vm1, %v3667_v16  ;;  %v3674_v29 = vpack.c.bf16 %v388_v26, %v388_v26  ;;  %v389_v30 = vld [vmem:[%s4303_s28 + $0x60] sm:$0xff]  ;;  %v390_v31 = vld [vmem:[%s4303_s28 + $0x68] sm:$0xff] }
  0x21   : > { %v391_v32 = vld [vmem:[%s4303_s28 + $0x70] sm:$0x3]  ;;  %513 = vst.msk [vmem:[#allocation2 + $0x18] sm:$0xf] %vm505_vm1, %v3669_v21  ;;  %514 = vst.msk [vmem:[#allocation2 + $0x1c] sm:$0xf] %vm505_vm1, %v3670_v22  ;;  %v3675_v33 = vpack.c.bf16 %v389_v30, %v389_v30  ;;  %v3676_v34 = vpack.c.bf16 %v390_v31, %v390_v31 }
  0x22   : > { %515 = vst.msk [vmem:[#allocation2 + $0x20] sm:$0x1] %vm508_vm2, %v3671_v23  ;;  %v3677_v35 = vpack.c.bf16 %v391_v32, %v391_v32  ;;  %v392_v36 = vld [vmem:[%s4303_s28 + $0x78] sm:$0xff]  ;;  %v393_v37 = vld [vmem:[%s4303_s28 + $0x80] sm:$0xff]  ;;  %v394_v38 = vld [vmem:[%s4303_s28 + $0x88] sm:$0x3] }
  0x23   : > { %516 = vst.msk [vmem:[#allocation2 + $0x24] sm:$0xf] %vm505_vm1, %v3672_v27  ;;  %517 = vst.msk [vmem:[#allocation2 + $0x28] sm:$0xf] %vm505_vm1, %v3673_v28  ;;  %v3678_v39 = vpack.c.bf16 %v392_v36, %v392_v36  ;;  %v3679_v40 = vpack.c.bf16 %v393_v37, %v393_v37  ;;  %v3680_v41 = vpack.c.bf16 %v394_v38, %v394_v38  ;;  %v395_v42 = vld [vmem:[%s4303_s28 + $0x90] sm:$0xff]  ;;  %v396_v43 = vld [vmem:[%s4303_s28 + $0x98] sm:$0xff] }
  0x24   : > { %518 = vst.msk [vmem:[#allocation2 + $0x2c] sm:$0x1] %vm508_vm2, %v3674_v29  ;;  %v397_v44 = vld [vmem:[%s4303_s28 + $0xa0] sm:$0x3]  ;;  %521 = vst.msk [vmem:[#allocation2 + $0x38] sm:$0x1] %vm508_vm2, %v3677_v35  ;;  %v3681_v45 = vpack.c.bf16 %v395_v42, %v395_v42  ;;  %v3682_v46 = vpack.c.bf16 %v396_v43, %v396_v43 }
  0x25   : > { %519 = vst.msk [vmem:[#allocation2 + $0x30] sm:$0xf] %vm505_vm1, %v3675_v33  ;;  %520 = vst.msk [vmem:[#allocation2 + $0x34] sm:$0xf] %vm505_vm1, %v3676_v34  ;;  %v3683_v47 = vpack.c.bf16 %v397_v44, %v397_v44  ;;  %v398_v48 = vld [vmem:[%s4303_s28 + $0xa8] sm:$0xff]  ;;  %v399_v49 = vld [vmem:[%s4303_s28 + $0xb0] sm:$0xff] }
  0x26   : > { %v400_v50 = vld [vmem:[%s4303_s28 + $0xb8] sm:$0x3]  ;;  %522 = vst.msk [vmem:[#allocation2 + $0x3c] sm:$0xf] %vm505_vm1, %v3678_v39  ;;  %523 = vst.msk [vmem:[#allocation2 + $0x40] sm:$0xf] %vm505_vm1, %v3679_v40  ;;  %v3684_v51 = vpack.c.bf16 %v398_v48, %v398_v48  ;;  %v3685_v52 = vpack.c.bf16 %v399_v49, %v399_v49 }
  0x27   : > { %524 = vst.msk [vmem:[#allocation2 + $0x44] sm:$0x1] %vm508_vm2, %v3680_v41  ;;  %v3686_v53 = vpack.c.bf16 %v400_v50, %v400_v50  ;;  %v531_v54 = vld [vmem:[%s4338_s30] sm:$0xff]  ;;  %v532_v55 = vld [vmem:[%s4338_s30 + $0x8] sm:$0xff]  ;;  %v533_v56 = vld [vmem:[%s4338_s30 + $0x10] sm:$0x3] }
  0x28   : > { %525 = vst.msk [vmem:[#allocation2 + $0x48] sm:$0xf] %vm505_vm1, %v3681_v45  ;;  %526 = vst.msk [vmem:[#allocation2 + $0x4c] sm:$0xf] %vm505_vm1, %v3682_v46  ;;  %v3687_v57 = vpack.c.bf16 %v531_v54, %v531_v54  ;;  %v3688_v58 = vpack.c.bf16 %v532_v55, %v532_v55  ;;  %v3689_v59 = vpack.c.bf16 %v533_v56, %v533_v56  ;;  %v534_v60 = vld [vmem:[%s4338_s30 + $0x18] sm:$0xff]  ;;  %v535_v61 = vld [vmem:[%s4338_s30 + $0x20] sm:$0xff] }
  0x29   : > { %527 = vst.msk [vmem:[#allocation2 + $0x50] sm:$0x1] %vm508_vm2, %v3683_v47  ;;  %v536_v62 = vld [vmem:[%s4338_s30 + $0x28] sm:$0x3]  ;;  %v4364_v63 = vld [vmem:[#allocation2] sm:$0xf]  ;;  %v3690_v2 = vpack.c.bf16 %v534_v60, %v534_v60  ;;  %v3691_v6 = vpack.c.bf16 %v535_v61, %v535_v61 }
  0x2a   : > { %v4366_v0 = vld [vmem:[#allocation2 + $0x4] sm:$0xf]  ;;  %v4368_v1 = vld [vmem:[#allocation2 + $0x8] sm:$0x1]  ;;  %528 = vst.msk [vmem:[#allocation2 + $0x54] sm:$0xf] %vm505_vm1, %v3684_v51  ;;  %v3692_v7 = vpack.c.bf16 %v536_v62, %v536_v62 }
  0x2b   : > { %529 = vst.msk [vmem:[#allocation2 + $0x58] sm:$0xf] %vm505_vm1, %v3685_v52  ;;  %v599_v8 = vshrl.u32 %v4364_v63, 16  ;;  %v602_v9 = vshll.u32 %v4364_v63, 16  ;;  %v608_v10 = vshll.u32 %v4366_v0, 16  ;;  %v612_v11 = vshrl.u32 %v4366_v0, 16 }
  0x2c   : > { %530 = vst.msk [vmem:[#allocation2 + $0x5c] sm:$0x1] %vm508_vm2, %v3686_v53  ;;  %v1554_v12 = vld [vmem:[#allocation2 + $0xc] sm:$0xf]  ;;  %566 = vst.msk [vmem:[#allocation2 + $0x68] sm:$0x1] %vm508_vm2, %v3689_v59 }
  0x2d   : > { %564 = vst.msk [vmem:[#allocation2 + $0x60] sm:$0xf] %vm505_vm1, %v3687_v57  ;;  %565 = vst.msk [vmem:[#allocation2 + $0x64] sm:$0xf] %vm505_vm1, %v3688_v58  ;;  %v618_v13 = vshll.u32 %v4368_v1, 16  ;;  %v4387_v16 = vsel %vm841_vm0, %v4285_v4, 0 }
  0x2e   : > { %v4381_v14 = vld [vmem:[#allocation2 + $0x10] sm:$0xf]  ;;  %v4383_v15 = vld [vmem:[#allocation2 + $0x14] sm:$0x1]  ;;  %567 = vst.msk [vmem:[#allocation2 + $0x6c] sm:$0xf] %vm505_vm1, %v3690_v2 }
  0x2f   : > { %568 = vst.msk [vmem:[#allocation2 + $0x70] sm:$0xf] %vm505_vm1, %v3691_v6  ;;  %v601_v17 = vrot.slane %v599_v8, 4  ;;  %v604_v18 = vrot.slane %v602_v9, 5  ;;  %v610_v19 = vrot.slane %v608_v10, 5  ;;  %v614_v20 = vrot.slane %v612_v11, 4 }
  0x30   : > { %569 = vst.msk [vmem:[#allocation2 + $0x74] sm:$0x1] %vm508_vm2, %v3692_v7  ;;  %v620_v21 = vrot.slane %v618_v13, 5  ;;  %v1579_v22 = vshrl.u32 %v1554_v12, 16  ;;  %v1582_v23 = vshll.u32 %v1554_v12, 16  ;;  %v1588_v24 = vshll.u32 %v4381_v14, 16 }
  0x31   : > { %v4396_v4 = vld [vmem:[%s5215_s2 + $0xc] sm:$0x3]  ;;  %v605_v25 = vor.u32 %v604_v18, %v601_v17  ;;  %v615_v26 = vor.u32 %v614_v20, %v610_v19  ;;  %v1592_v27 = vshrl.u32 %v4381_v14, 16  ;;  %v1598_v28 = vshll.u32 %v4383_v15, 16  ;;  %v4408_v34 = vld [vmem:[#allocation2 + $0x10] sm:$0xf] }
  0x32   : > { %v4400_v29 = vld [vmem:[#allocation2 + $0xc] sm:$0xf]  ;;  %v1581_v31 = vrot.slane %v1579_v22, 4  ;;  %v1584_v32 = vrot.slane %v1582_v23, 5  ;;  %v1590_v33 = vrot.slane %v1588_v24, 5  ;;  %v4412_v35 = vsel %vm841_vm0, %v4290_v5, 0 }
  0x33   : > { %v606_v36 = vrot.slane %v605_v25, 4  ;;  %v616_v37 = vrot.slane %v615_v26, 4  ;;  %v1594_v38 = vrot.slane %v1592_v27, 4  ;;  %v4416_v39 = vsel %vm841_vm0, %v4396_v4, 0  ;;  %v4418_v42 = vld [vmem:[#allocation2 + $0x14] sm:$0x1] }
  0x34   : > { %v1585_v40 = vor.u32 %v1584_v32, %v1581_v31  ;;  %v1600_v41 = vrot.slane %v1598_v28, 5  ;;  %v623_v43 = vshrl.u32 %v4400_v29, 16  ;;  %v626_v44 = vshll.u32 %v4400_v29, 16  ;;  %v1557_v52 = vld [vmem:[#allocation2 + $0x18] sm:$0xf]  ;;  %s3433_s28 = sshll.u32 %s5258_s7, 1 }
  0x35   : > { %v611_v45 = vsel %vm4404_vm6, %v606_v36, %v610_v19  ;;  %v621_v5 = vsel %vm4404_vm6, %v616_v37, %v620_v21  ;;  %v1595_v46 = vor.u32 %v1594_v38, %v1590_v33  ;;  %v632_v47 = vshll.u32 %v4408_v34, 16  ;;  %v4429_v57 = vld [vmem:[#allocation2 + $0x1c] sm:$0xf]  ;;  %v4436_v62 = vld [vmem:[#allocation2 + $0x20] sm:$0x1]  ;;  %s364_s30 = sadd.s32 %s3434_s21, %s3433_s28 }
  0x36   : > { %v3469_v48 = vcombine.low %v611_v45, %v621_v5  ;;  %v1586_v49 = vrot.slane %v1585_v40, 4  ;;  %v625_v50 = vrot.slane %v623_v43, 4  ;;  %v628_v51 = vrot.slane %v626_v44, 5  ;;  %v4443_v20 = vld [vmem:[#allocation2 + $0x18] sm:$0xf]  ;;  %s3435_s9 = sshll.u32 %s364_s30, 2 }
  0x37   : > { %v1596_v53 = vrot.slane %v1595_v46, 4  ;;  %v634_v54 = vrot.slane %v632_v47, 5  ;;  %v636_v55 = vshrl.u32 %v4408_v34, 16  ;;  %v642_v56 = vshll.u32 %v4418_v42, 16  ;;  %v4449_v25 = vld [vmem:[#allocation2 + $0x1c] sm:$0xf]  ;;  %s5111_s10 = scalar_lea.vmem %s5218_s5, %s3435_s9 }
  0x38   : > { %3792 = vmatprep.mubr.msk.bf16.mxu1 %vm816_vm5, %v3469_v48  ;;  %v1591_v58 = vsel %vm4404_vm6, %v1586_v49, %v1590_v33  ;;  %v1970_v59 = vrot.slane %v4381_v14, 5  ;;  %v1973_v60 = vrot.slane %v4383_v15, 5  ;;  %v629_v61 = vor.u32 %v628_v51, %v625_v50  ;;  %v4456_v36 = vld [vmem:[#allocation2 + $0x20] sm:$0x1]  ;;  %v1560_v45 = vld [vmem:[#allocation2 + $0x24] sm:$0xf] }
  0x39   : > { %v1601_v2 = vsel %vm4404_vm6, %v1596_v53, %v1600_v41  ;;  %v638_v6 = vrot.slane %v636_v55, 4  ;;  %v644_v7 = vrot.slane %v642_v56, 5  ;;  %v1603_v8 = vshrl.u32 %v1557_v52, 16  ;;  %v4464_v49 = vld [vmem:[#allocation2 + $0x28] sm:$0xf] }
  0x3a   : > { %v3544_v9 = vcombine.low %v1591_v58, %v1601_v2  ;;  %v630_v10 = vrot.slane %v629_v61, 4  ;;  %v1606_v11 = vshll.u32 %v1557_v52, 16  ;;  %v1612_v12 = vshll.u32 %v4429_v57, 16  ;;  %v4475_v58 = vld [vmem:[#allocation2 + $0x2c] sm:$0x1] }
  0x3b   : > { %v639_v13 = vor.u32 %v638_v6, %v634_v54  ;;  %v1605_v17 = vrot.slane %v1603_v8, 4  ;;  %v1616_v18 = vshrl.u32 %v4429_v57, 16  ;;  %v1622_v19 = vshll.u32 %v4436_v62, 16 }
  0x3c   : > { %3864 = vmatprep.mubr.msk.bf16.mxu0 %vm816_vm5, %v3544_v9  ;;  %v635_v21 = vsel %vm4404_vm6, %v630_v10, %v634_v54  ;;  %v1608_v22 = vrot.slane %v1606_v11, 5  ;;  %v1614_v23 = vrot.slane %v1612_v12, 5  ;;  %v1977_v24 = vrot.slane %v4429_v57, 5  ;;  %v4470_v54 = vld [vmem:[%s5215_s2 + $0x4] sm:$0x3] }
  0x3d   : > { %v640_v26 = vrot.slane %v639_v13, 4  ;;  %v1618_v27 = vrot.slane %v1616_v18, 4  ;;  %v1624_v28 = vrot.slane %v1622_v19, 5  ;;  %v1980_v31 = vrot.slane %v4436_v62, 5  ;;  %v4481_v10 = vld [vmem:[#allocation2 + $0x24] sm:$0xf] }
  0x3e   : > { %v1609_v32 = vor.u32 %v1608_v22, %v1605_v17  ;;  %v4454_v33 = vrot.slane %v1977_v24, 4  ;;  %v647_v37 = vshrl.u32 %v4443_v20, 16  ;;  %v650_v38 = vshll.u32 %v4443_v20, 16  ;;  %v4483_v18 = vld [vmem:[#allocation2 + $0x28] sm:$0xf] }
  0x3f   : > { %v645_v40 = vsel %vm4404_vm6, %v640_v26, %v644_v7  ;;  %v1619_v41 = vor.u32 %v1618_v27, %v1614_v23  ;;  %v656_v43 = vshll.u32 %v4449_v25, 16  ;;  %v660_v44 = vshrl.u32 %v4449_v25, 16  ;;  %v4492_v27 = vld [vmem:[#allocation2 + $0x2c] sm:$0x1] }
  0x40   : > { %v3470_v5 = vcombine.low %v635_v21, %v645_v40  ;;  %v1610_v46 = vrot.slane %v1609_v32, 4  ;;  %v649_v47 = vrot.slane %v647_v37, 4  ;;  %v652_v48 = vrot.slane %v650_v38, 5 }
  0x41   : > { %v1620_v50 = vrot.slane %v1619_v41, 4  ;;  %v658_v51 = vrot.slane %v656_v43, 5  ;;  %v662_v52 = vrot.slane %v660_v44, 4  ;;  %v666_v53 = vshll.u32 %v4456_v36, 16  ;;  %v1563_v43 = vld [vmem:[#allocation2 + $0x30] sm:$0xf] }
  0x42   : > { %3793 = vmatmul.mubr.msk.bf16.vlgmr.msra.gmra.mrb[0].mxu1 %vm816_vm5, %v3470_v5  ;;  %v1615_v55 = vsel %vm4404_vm6, %v1610_v46, %v1614_v23  ;;  %v653_v56 = vor.u32 %v652_v48, %v649_v47  ;;  %v1627_v61 = vshrl.u32 %v1560_v45, 16  ;;  %v1630_v2 = vshll.u32 %v1560_v45, 16  ;;  %v4500_v47 = vld [vmem:[#allocation2 + $0x34] sm:$0xf] }
  0x43   : > { %3809 = vmatpush3.bf16.msra.mxu1 %v4387_v16  ;;  %v1625_v6 = vsel %vm4404_vm6, %v1620_v50, %v1624_v28  ;;  %v663_v7 = vor.u32 %v662_v52, %v658_v51  ;;  %v668_v8 = vrot.slane %v666_v53, 5  ;;  %v1636_v9 = vshll.u32 %v4464_v49, 16 }
  0x44   : > { %v3545_v11 = vcombine.low %v1615_v55, %v1625_v6  ;;  %v654_v12 = vrot.slane %v653_v56, 4  ;;  %v1629_v13 = vrot.slane %v1627_v61, 4  ;;  %v1632_v17 = vrot.slane %v1630_v2, 5  ;;  %4084 = vmatprep.subr.msk.bf16.mxu1 %vm841_vm0, %v4470_v54  ;;  %v4509_v55 = vld [vmem:[#allocation2 + $0x38] sm:$0x1] }
  0x45   : > { %v664_v19 = vrot.slane %v663_v7, 4  ;;  %v1638_v16 = vrot.slane %v1636_v9, 5  ;;  %v1640_v21 = vshrl.u32 %v4464_v49, 16  ;;  %v1646_v22 = vshll.u32 %v4475_v58, 16 }
  0x46   : > { %3865 = vmatmul.mubr.msk.bf16.vlgmr.msra.gmra.mrb[0].mxu0 %vm816_vm5, %v3545_v11  ;;  %v659_v23 = vsel %vm4404_vm6, %v654_v12, %v658_v51  ;;  %v1633_v26 = vor.u32 %v1632_v17, %v1629_v13  ;;  %v671_v28 = vshrl.u32 %v4481_v10, 16  ;;  %v674_v32 = vshll.u32 %v4481_v10, 16  ;;  %v4513_v13 = vld [vmem:[#allocation2 + $0x30] sm:$0xf] }
  0x47   : > { %3881 = vmatpush3.bf16.msra.mxu0 %v4412_v35  ;;  %v669_v37 = vsel %vm4404_vm6, %v664_v19, %v668_v8  ;;  %v1642_v38 = vrot.slane %v1640_v21, 4  ;;  %v1648_v40 = vrot.slane %v1646_v22, 5  ;;  %v680_v41 = vshll.u32 %v4483_v18, 16  ;;  %v4518_v22 = vld [vmem:[#allocation2 + $0x34] sm:$0xf] }
  0x48   : > { %v3471_v44 = vcombine.low %v659_v23, %v669_v37  ;;  %v1634_v45 = vrot.slane %v1633_v26, 4  ;;  %v673_v5 = vrot.slane %v671_v28, 4  ;;  %v676_v46 = vrot.slane %v674_v32, 5  ;;  %4089 = vmatprep.subr.msk.bf16.mxu0 %vm841_vm0, %v4396_v4  ;;  %v4522_v37 = vld [vmem:[#allocation2 + $0x38] sm:$0x1] }
  0x49   : > { %v1643_v35 = vor.u32 %v1642_v38, %v1638_v16  ;;  %v682_v48 = vrot.slane %v680_v41, 5  ;;  %v684_v50 = vshrl.u32 %v4483_v18, 16  ;;  %v690_v51 = vshll.u32 %v4492_v27, 16 }
  0x4a   : > { %3796 = vmatprep.mubr.msk.bf16.mxu1 %vm816_vm5, %v3471_v44  ;;  %v1639_v52 = vsel %vm4404_vm6, %v1634_v45, %v1638_v16  ;;  %v677_v53 = vor.u32 %v676_v46, %v673_v5  ;;  %v1651_v56 = vshrl.u32 %v1563_v43, 16  ;;  %v1654_v61 = vshll.u32 %v1563_v43, 16 }
  0x4b   : > { %v1644_v2 = vrot.slane %v1643_v35, 4  ;;  %v686_v6 = vrot.slane %v684_v50, 4  ;;  %v692_v7 = vrot.slane %v690_v51, 5  ;;  %v1660_v4 = vshll.u32 %v4500_v47, 16  ;;  %v1936_v35 = vld [vmem:[#allocation2 + $0xc] sm:$0xe] }
  0x4c   : > { %v678_v8 = vrot.slane %v677_v53, 4  ;;  %v1653_v9 = vrot.slane %v1651_v56, 4  ;;  %v1656_v11 = vrot.slane %v1654_v61, 5  ;;  %v1664_v12 = vshrl.u32 %v4500_v47, 16  ;;  %v4532_v53 = vld [vmem:[#allocation2 + $0x3c] sm:$0xf] }
  0x4d   : > { %v1649_v17 = vsel %vm4404_vm6, %v1644_v2, %v1648_v40  ;;  %v687_v19 = vor.u32 %v686_v6, %v682_v48  ;;  %v1662_v16 = vrot.slane %v1660_v4, 5  ;;  %v1670_v21 = vshll.u32 %v4509_v55, 16 }
  0x4e   : > { %v3546_v23 = vcombine.low %v1639_v52, %v1649_v17  ;;  %v683_v26 = vsel %vm4404_vm6, %v678_v8, %v682_v48  ;;  %v1657_v28 = vor.u32 %v1656_v11, %v1653_v9  ;;  %v1666_v32 = vrot.slane %v1664_v12, 4  ;;  %v4542_v8 = vld [vmem:[#allocation2 + $0x40] sm:$0xf]  ;;  %v4544_v17 = vld [vmem:[#allocation2 + $0x44] sm:$0x1] }
  0x4f   : > { %v688_v38 = vrot.slane %v687_v19, 4  ;;  %v1672_v41 = vrot.slane %v1670_v21, 5  ;;  %v695_v43 = vshrl.u32 %v4513_v13, 16  ;;  %v698_v40 = vshll.u32 %v4513_v13, 16  ;;  %v1937_v19 = vld [vmem:[#allocation2 + $0x18] sm:$0xe] }
  0x50   : > { %3868 = vmatprep.mubr.msk.bf16.mxu0 %vm816_vm5, %v3546_v23  ;;  %v1658_v44 = vrot.slane %v1657_v28, 4  ;;  %v1667_v45 = vor.u32 %v1666_v32, %v1662_v16  ;;  %v704_v5 = vshll.u32 %v4518_v22, 16  ;;  %v708_v46 = vshrl.u32 %v4518_v22, 16  ;;  %v4553_v28 = vld [vmem:[#allocation2 + $0x48] sm:$0xf] }
  0x51   : > { %v693_v48 = vsel %vm4404_vm6, %v688_v38, %v692_v7  ;;  %v697_v50 = vrot.slane %v695_v43, 4  ;;  %v700_v51 = vrot.slane %v698_v40, 5  ;;  %v714_v52 = vshll.u32 %v4522_v37, 16 }
  0x52   : > { %v3472_v56 = vcombine.low %v683_v26, %v693_v48  ;;  %v1663_v61 = vsel %vm4404_vm6, %v1658_v44, %v1662_v16  ;;  %v1668_v2 = vrot.slane %v1667_v45, 4  ;;  %v706_v6 = vrot.slane %v704_v5, 5 }
  0x53   : > { %v701_v7 = vor.u32 %v700_v51, %v697_v50  ;;  %v710_v9 = vrot.slane %v708_v46, 4  ;;  %v716_v11 = vrot.slane %v714_v52, 5  ;;  %v3560_v12 = vrot.slane %v1936_v35, 9  ;;  %v4568_v50 = vld [vmem:[#allocation2 + $0x4c] sm:$0xf] }
  0x54   : > { %3797 = vmatmul.mubr.msk.bf16.gmra.mrb[4].mxu1 %vm816_vm5, %v3472_v56  ;;  %v1673_v16 = vsel %vm4404_vm6, %v1668_v2, %v1672_v41  ;;  %v1972_v21 = vrot.slane %v1970_v59, 4  ;;  %v719_v23 = vshrl.u32 %v4532_v53, 16  ;;  %v722_v26 = vshll.u32 %v4532_v53, 16  ;;  %v4571_v52 = vld [vmem:[#allocation2 + $0x50] sm:$0x1] }
  0x55   : > { %v3547_v32 = vcombine.low %v1663_v61, %v1673_v16  ;;  %v702_v38 = vrot.slane %v701_v7, 4  ;;  %v711_v43 = vor.u32 %v710_v9, %v706_v6  ;;  %v1971_v40 = vsel %vm4538_vm9, %v3560_v12, %v1970_v59 }
  0x56   : > { %v1974_v41 = vsel %vm4538_vm9, %v1972_v21, %v1973_v60  ;;  %v721_v44 = vrot.slane %v719_v23, 4  ;;  %v724_v45 = vrot.slane %v722_v26, 5  ;;  %v728_v5 = vshll.u32 %v4542_v8, 16  ;;  %v4587_v26 = vld [vmem:[#allocation2 + $0x54] sm:$0xf] }
  0x57   : > { %3869 = vmatmul.mubr.msk.bf16.gmra.mrb[4].mxu0 %vm816_vm5, %v3547_v32  ;;  %v707_v46 = vsel %vm4404_vm6, %v702_v38, %v706_v6  ;;  %v712_v35 = vrot.slane %v711_v43, 4  ;;  %v3569_v48 = vcombine.low %v1971_v40, %v1974_v41  ;;  %v732_v14 = vshrl.u32 %v4542_v8, 16 }
  0x58   : > { %v725_v59 = vor.u32 %v724_v45, %v721_v44  ;;  %v730_v15 = vrot.slane %v728_v5, 5  ;;  %v738_v51 = vshll.u32 %v4544_v17, 16  ;;  %v3561_v60 = vrot.slane %v1937_v19, 9 }
  0x59   : > { %v717_v56 = vsel %vm4404_vm6, %v712_v35, %v716_v11  ;;  %3882 = vmatprep.mubr.msk.bf16.mxu0 %vm816_vm5, %v3569_v48  ;;  %v734_v61 = vrot.slane %v732_v14, 4  ;;  %v1981_v2 = vsel %vm4538_vm9, %v4454_v33, %v1980_v31  ;;  %v743_v6 = vshrl.u32 %v4553_v28, 16  ;;  %v1938_v11 = vld [vmem:[#allocation2 + $0x24] sm:$0xe]  ;;  %v4602_v35 = vld [vmem:[#allocation2 + $0x58] sm:$0xf] }
  0x5a   : > { %v3473_v7 = vcombine.low %v707_v46, %v717_v56  ;;  %v726_v9 = vrot.slane %v725_v59, 4  ;;  %v740_v12 = vrot.slane %v738_v51, 5  ;;  %v1978_v19 = vsel %vm4538_vm9, %v3561_v60, %v1977_v24  ;;  %v4598_v24 = vld [vmem:[%s5215_s2 + $0xe] sm:$0x3]  ;;  %v4610_v60 = vld [vmem:[#allocation2 + $0x5c] sm:$0x1] }
  0x5b   : > { %v735_v16 = vor.u32 %v734_v61, %v730_v15  ;;  %v3570_v21 = vcombine.low %v1978_v19, %v1981_v2  ;;  %v745_v23 = vrot.slane %v743_v6, 4  ;;  %v746_v62 = vshll.u32 %v4553_v28, 16 }
  0x5c   : > { %3800 = vmatprep.mubr.msk.bf16.mxu1 %vm816_vm5, %v3473_v7  ;;  %v731_v31 = vsel %vm4404_vm6, %v726_v9, %v730_v15  ;;  %v752_v33 = vshll.u32 %v4568_v50, 16  ;;  %v756_v57 = vshrl.u32 %v4568_v50, 16  ;;  %v762_v32 = vshll.u32 %v4571_v52, 16  ;;  %v1939_v9 = vld [vmem:[#allocation2 + $0x30] sm:$0xe] }
  0x5d   : > { %v736_v38 = vrot.slane %v735_v16, 4  ;;  %v748_v43 = vrot.slane %v746_v62, 5  ;;  %v3562_v40 = vrot.slane %v1938_v11, 9  ;;  %v1984_v41 = vrot.slane %v4464_v49, 5 }
  0x5e   : > { %v754_v44 = vrot.slane %v752_v33, 5  ;;  %v758_v45 = vrot.slane %v756_v57, 4  ;;  %v764_v5 = vrot.slane %v762_v32, 5  ;;  %v1987_v46 = vrot.slane %v4475_v58, 5 }
  0x5f   : > { %v741_v48 = vsel %vm4404_vm6, %v736_v38, %v740_v12  ;;  %3883 = vmatmul.mubr.msk.bf16.vlgmr.msra.gmra.mrb[0].mxu0 %vm816_vm5, %v3570_v21  ;;  %v749_v14 = vor.u32 %v748_v43, %v745_v23  ;;  %v1985_v59 = vsel %vm4538_vm9, %v3562_v40, %v1984_v41  ;;  %v1986_v15 = vrot.slane %v1984_v41, 4  ;;  %v4628_v43 = vld [vmem:[#allocation2 + $0x40] sm:$0xf]  ;;  %v4630_v40 = vld [vmem:[#allocation2 + $0x44] sm:$0x1] }
  0x60   : > { %v3474_v51 = vcombine.low %v731_v31, %v741_v48  ;;  %3899 = vmatpush3.bf16.msra.mxu0 %v4416_v39  ;;  %v759_v49 = vor.u32 %v758_v45, %v754_v44  ;;  %v767_v58 = vshrl.u32 %v4587_v26, 16  ;;  %v770_v56 = vshll.u32 %v4587_v26, 16  ;;  %v1940_v31 = vld [vmem:[#allocation2 + $0x3c] sm:$0xe] }
  0x61   : > { %v750_v61 = vrot.slane %v749_v14, 4  ;;  %v1988_v2 = vsel %vm4538_vm9, %v1986_v15, %v1987_v46  ;;  %v776_v6 = vshll.u32 %v4602_v35, 16  ;;  %v780_v7 = vshrl.u32 %v4602_v35, 16  ;;  %4090 = vmatprep.subr.msk.bf16.mxu0 %vm841_vm0, %v4598_v24 }
  0x62   : > { %3801 = vmatmul.mubr.msk.bf16.gmra.mrb[8].mxu1 %vm816_vm5, %v3474_v51  ;;  %v760_v39 = vrot.slane %v759_v49, 4  ;;  %v3571_v12 = vcombine.low %v1985_v59, %v1988_v2  ;;  %v769_v19 = vrot.slane %v767_v58, 4  ;;  %v772_v11 = vrot.slane %v770_v56, 5  ;;  %v4644_v56 = vld [vmem:[#allocation2 + $0x4c] sm:$0xf] }
  0x63   : > { %v755_v16 = vsel %vm4404_vm6, %v750_v61, %v754_v44  ;;  %v778_v21 = vrot.slane %v776_v6, 5  ;;  %v782_v23 = vrot.slane %v780_v7, 4  ;;  %v786_v62 = vshll.u32 %v4610_v60, 16  ;;  %v4646_v61 = vld [vmem:[#allocation2 + $0x50] sm:$0x1] }
  0x64   : > { %v765_v33 = vsel %vm4404_vm6, %v760_v39, %v764_v5  ;;  %3886 = vmatprep.mubr.msk.bf16.mxu0 %vm816_vm5, %v3571_v12  ;;  %v773_v57 = vor.u32 %v772_v11, %v769_v19  ;;  %v3563_v32 = vrot.slane %v1939_v9, 9  ;;  %v1991_v38 = vrot.slane %v4500_v47, 5  ;;  %v1941_v2 = vld [vmem:[#allocation2 + $0x48] sm:$0xe]  ;;  %v4652_v19 = vld [vmem:[#allocation2 + $0x58] sm:$0xf] }
  0x65   : > { %v3475_v41 = vcombine.low %v755_v16, %v765_v33  ;;  %v783_v44 = vor.u32 %v782_v23, %v778_v21  ;;  %v788_v45 = vrot.slane %v786_v62, 5  ;;  %v1994_v46 = vrot.slane %v4509_v55, 5  ;;  %v4654_v11 = vld [vmem:[#allocation2 + $0x5c] sm:$0x1]  ;;  %v1942_v16 = vld [vmem:[#allocation2 + $0x54] sm:$0xe] }
  0x66   : > { %v774_v48 = vrot.slane %v773_v57, 4  ;;  %v1992_v14 = vsel %vm4538_vm9, %v3563_v32, %v1991_v38  ;;  %v1993_v5 = vrot.slane %v1991_v38, 4  ;;  %v3564_v59 = vrot.slane %v1940_v31, 9  ;;  %5230 = vst [vmem:[#allocation3_spill] sm:$0xff] %v4654_v11  ;;  %v4662_v33 = vld [vmem:[#allocation2 + $0x64] sm:$0xf] }
  0x67   : > { %3804 = vmatprep.mubr.msk.bf16.mxu1 %vm816_vm5, %v3475_v41  ;;  %v784_v15 = vrot.slane %v783_v44, 4  ;;  %v1998_v47 = vrot.slane %v4628_v43, 5  ;;  %v2001_v51 = vrot.slane %v4630_v40, 5  ;;  %v3485_v55 = vcombine.low %v4364_v63, %v4366_v0  ;;  %5231 = vst [vmem:[#allocation4_spill] sm:$0xff] %v4662_v33  ;;  %v4664_v57 = vld [vmem:[#allocation2 + $0x68] sm:$0x1] }
  0x68   : > { %v779_v49 = vsel %vm4404_vm6, %v774_v48, %v778_v21  ;;  %v1995_v58 = vsel %vm4538_vm9, %v1993_v5, %v1994_v46  ;;  %v3565_v21 = vrot.slane %v1941_v2, 9  ;;  %v2005_v23 = vrot.slane %v4644_v56, 5  ;;  %5232 = vst [vmem:[#allocation5_spill] sm:$0xff] %v4664_v57  ;;  %v1108_v2 = vld [vmem:[#allocation2 + $0x18] sm:$0xe] }
  0x69   : > { %v789_v6 = vsel %vm4404_vm6, %v784_v15, %v788_v45  ;;  %v3572_v7 = vcombine.low %v1992_v14, %v1995_v58  ;;  %v1999_v9 = vsel %vm4538_vm9, %v3564_v59, %v1998_v47  ;;  %v2000_v39 = vrot.slane %v1998_v47, 4  ;;  %v1943_v45 = vld [vmem:[#allocation2 + $0x60] sm:$0xe] }
  0x6a   : > { %v3476_v12 = vcombine.low %v779_v49, %v789_v6  ;;  %v2008_v62 = vrot.slane %v4646_v61, 5  ;;  %v2006_v32 = vsel %vm4538_vm9, %v3565_v21, %v2005_v23  ;;  %v2007_v38 = vrot.slane %v2005_v23, 4 }
  0x6b   : > { %3887 = vmatmul.mubr.msk.bf16.gmra.mrb[4].mxu0 %vm816_vm5, %v3572_v7  ;;  %v2002_v63 = vsel %vm4538_vm9, %v2000_v39, %v2001_v51  ;;  %v3566_v41 = vrot.slane %v1942_v16, 9  ;;  %v2012_v44 = vrot.slane %v4652_v19, 5  ;;  %v1142_v46 = vrot.slane %v4408_v34, 5 }
  0x6c   : > { %3805 = vmatmul.mubr.msk.bf16.gmra.mrb[12].mxu1 %vm816_vm5, %v3476_v12  ;;  %v3573_v31 = vcombine.low %v1999_v9, %v2002_v63  ;;  %v2015_v48 = vrot.slane %v4654_v11, 5  ;;  %v2009_v14 = vsel %vm4538_vm9, %v2007_v38, %v2008_v62  ;;  %v2019_v15 = vrot.slane %v4662_v33, 5  ;;  %v1110_v62 = vld [vmem:[#allocation2 + $0x30] sm:$0xe] }
  0x6d   : > { %3810 = vmatprep.mubr.msk.bf16.mxu1 %vm816_vm5, %v3485_v55  ;;  %v2013_v5 = vsel %vm4538_vm9, %v3566_v41, %v2012_v44  ;;  %v2014_v59 = vrot.slane %v2012_v44, 4  ;;  %v3486_v47 = vcombine.low %v4400_v29, %v4408_v34  ;;  %v3574_v51 = vcombine.low %v2006_v32, %v2009_v14  ;;  %v1107_v55 = vld [vmem:[#allocation2 + $0xc] sm:$0xe]  ;;  %v1109_v29 = vld [vmem:[#allocation2 + $0x24] sm:$0xe] }
  0x6e   : > { %3890 = vmatprep.mubr.msk.bf16.mxu0 %vm816_vm5, %v3573_v31  ;;  %v3567_v49 = vrot.slane %v1943_v45, 9  ;;  %v2022_v58 = vrot.slane %v4664_v57, 5  ;;  %v1145_v6 = vrot.slane %v4418_v42, 5  ;;  %v3487_v7 = vcombine.low %v4443_v20, %v4449_v25  ;;  %v4692_v34 = vld [vmem:[%s5215_s2 + $0x6] sm:$0x3] }
  0x6f   : > { %v2016_v9 = vsel %vm4538_vm9, %v2014_v59, %v2015_v48  ;;  %v2021_v39 = vrot.slane %v2019_v15, 4  ;;  %v1240_v12 = vsel %vm841_vm0, %v4470_v54, 0  ;;  %v3502_v42 = vrot.slane %v1107_v55, 9  ;;  %v4135_v59 = vld [vmem:[#allocation2 + $0x18] sm:$0xff]   ;;  %v4906_v57 = vld [vmem:[#allocation2 + $0x64] sm:$0xf] }
  0x70   : > { %v3575_v16 = vcombine.low %v2013_v5, %v2016_v9  ;;  %v1144_v63 = vrot.slane %v1142_v46, 4  ;;  %v3503_v21 = vrot.slane %v1108_v2, 9  ;;  %v2020_v20 = vsel %vm4538_vm9, %v3567_v49, %v2019_v15  ;;  %5234 = vst [vmem:[#allocation7_spill] sm:$0xff] %v4906_v57  ;;  %v4931_v11 = vld [vmem:[#allocation2 + $0x70] sm:$0xf] }
  0x71   : > { %v2023_v54 = vsel %vm4538_vm9, %v2021_v39, %v2022_v58  ;;  %v1149_v23 = vrot.slane %v4449_v25, 5  ;;  %v4704_v31 = vsel %vm4538_vm9, %v3502_v42, %v1142_v46  ;;  %v1152_v38 = vrot.slane %v4456_v36, 5 }
  0x72   : > { %v4708_v32 = vsel %vm4538_vm9, %v1144_v63, %v1145_v6  ;;  %v3504_v41 = vrot.slane %v1109_v29, 9  ;;  %v3576_v46 = vcombine.low %v2020_v20, %v2023_v54  ;;  %v1156_v48 = vrot.slane %v4483_v18, 5  ;;  %v4136_v54 = vld [vmem:[#allocation2 + $0x24] sm:$0xff]  }
  0x73   : > { %3891 = vmatmul.mubr.msk.bf16.gmra.mrb[8].mxu0 %vm816_vm5, %v3574_v51  ;;  %v3511_v25 = vcombine.low %v4704_v31, %v4708_v32  ;;  %v4717_v44 = vsel %vm4538_vm9, %v3503_v21, %v1149_v23  ;;  %v1151_v45 = vrot.slane %v1149_v23, 4  ;;  %v1159_v14 = vrot.slane %v4492_v27, 5  ;;  %v4877_v32 = vld [vmem:[#allocation2 + $0x58] sm:$0xf] }
  0x74   : > { %3811 = vmatmul.mubr.msk.bf16.vlgmr.msra.gmra.mrb[0].mxu1 %vm816_vm5, %v3486_v47  ;;  %3894 = vmatprep.mubr.msk.bf16.mxu0 %vm816_vm5, %v3575_v16  ;;  %v3505_v5 = vrot.slane %v1110_v62, 9  ;;  %v3488_v36 = vcombine.low %v4481_v10, %v4483_v18  ;;  %v1163_v47 = vrot.slane %v4518_v22, 5  ;;  %v1166_v51 = vrot.slane %v4522_v37, 5  ;;  %v1111_v18 = vld [vmem:[#allocation2 + $0x3c] sm:$0xe]  ;;  %5233 = vst [vmem:[#allocation6_spill] sm:$0xff] %v4877_v32 }
  0x75   : > { %3827 = vmatpush3.bf16.msra.mxu1 %v1240_v12  ;;  %3814 = vmatprep.mubr.msk.bf16.mxu1 %vm816_vm5, %v3487_v7  ;;  %v4725_v15 = vsel %vm4538_vm9, %v1151_v45, %v1152_v38  ;;  %v3489_v49 = vcombine.low %v4513_v13, %v4518_v22  ;;  %v4735_v27 = vsel %vm4538_vm9, %v3504_v41, %v1156_v48  ;;  %v1158_v10 = vrot.slane %v1156_v48, 4  ;;  %v1106_v37 = vld [vmem:[#allocation2] sm:$0xe]  ;;  %v2389_v22 = vld [vmem:[#allocation2 + $0x18] sm:$0xf] }
  0x76   : > { %4085 = vmatprep.subr.msk.bf16.mxu1 %vm841_vm0, %v4692_v34  ;;  %v3512_v58 = vcombine.low %v4717_v44, %v4725_v15  ;;  %v1135_v55 = vrot.slane %v4366_v0, 5  ;;  %v4740_v2 = vsel %vm4538_vm9, %v3505_v5, %v1163_v47  ;;  %v1165_v6 = vrot.slane %v1163_v47, 4  ;;  %v4759_v16 = vld [vmem:[#allocation2 + $0x1c] sm:$0xf]  ;;  %v4782_v5 = vld [vmem:[%s5215_s2 + $0x10] sm:$0x3] }
  0x77   : > { %v4745_v13 = vsel %vm4538_vm9, %v1158_v10, %v1159_v14  ;;  %v3506_v9 = vrot.slane %v1111_v18, 9  ;;  %v1138_v39 = vrot.slane %v4368_v1, 5  ;;  %v3501_v29 = vrot.slane %v1106_v37, 9  ;;  %v1112_v1 = vld [vmem:[#allocation2 + $0x48] sm:$0xe] }
  0x78   : > { %v4753_v7 = vsel %vm4538_vm9, %v1165_v6, %v1166_v51  ;;  %v1137_v42 = vrot.slane %v1135_v55, 4  ;;  %v1170_v63 = vrot.slane %v4542_v8, 5  ;;  %v1173_v21 = vrot.slane %v4544_v17, 5  ;;  %v4800_v37 = vld [vmem:[#allocation2 + $0x28] sm:$0xf] }
  0x79   : > { %v3490_v20 = vcombine.low %v4532_v53, %v4542_v8  ;;  %v2414_v23 = vshrl.u32 %v2389_v22, 16  ;;  %v2417_v62 = vshll.u32 %v2389_v22, 16  ;;  %v2423_v38 = vshll.u32 %v4759_v16, 16  ;;  %v4137_v53 = vld [vmem:[#allocation2 + $0x30] sm:$0xff]   ;;  %v4885_v44 = vld [vmem:[#allocation2 + $0x44] sm:$0x1] }
  0x7a   : > { %v2427_v41 = vshrl.u32 %v4759_v16, 16  ;;  %v4769_v45 = vsel %vm4538_vm9, %v3506_v9, %v1170_v63  ;;  %v2656_v48 = vsel %vm841_vm0, %v4598_v24, 0  ;;  %v3491_v17 = vcombine.low %v4553_v28, %v4568_v50  ;;  %v4789_v28 = vld [vmem:[#allocation2 + $0x20] sm:$0x1] }
  0x7b   : > { %3895 = vmatmul.mubr.msk.bf16.gmra.mrb[12].mxu0 %vm816_vm5, %v3576_v46  ;;  %v1172_v46 = vrot.slane %v1170_v63, 4  ;;  %v1136_v8 = vsel %vm4538_vm9, %v3501_v29, %v1135_v55  ;;  %v1139_v14 = vsel %vm4538_vm9, %v1137_v42, %v1138_v39  ;;  %v3507_v24 = vrot.slane %v1112_v1, 9  ;;  %v2392_v55 = vld [vmem:[#allocation2 + $0x24] sm:$0xf]  ;;  %v1113_v42 = vld [vmem:[#allocation2 + $0x54] sm:$0xe] }
  0x7c   : > { %3815 = vmatmul.mubr.msk.bf16.gmra.mrb[4].mxu1 %vm816_vm5, %v3488_v36  ;;  %3900 = vmatprep.mubr.msk.bf16.mxu0 %vm816_vm5, %v4135_v59  ;;  %v2416_v59 = vrot.slane %v2414_v23, 4  ;;  %v2419_v47 = vrot.slane %v2417_v62, 5  ;;  %v4795_v10 = vrot.slane %v2423_v38, 5  ;;  %v2429_v18 = vrot.slane %v2427_v41, 4  ;;  %v4138_v63 = vld [vmem:[#allocation2 + $0x3c] sm:$0xff]   ;;  %v4139_v1 = vld [vmem:[#allocation2 + $0x48] sm:$0xff]  }
  0x7d   : > { %3818 = vmatprep.mubr.msk.bf16.mxu1 %vm816_vm5, %v3489_v49  ;;  %v4786_v36 = vsel %vm4538_vm9, %v1172_v46, %v1173_v21  ;;  %v1177_v49 = vrot.slane %v4568_v50, 5  ;;  %v1180_v6 = vrot.slane %v4571_v52, 5  ;;  %v3492_v9 = vcombine.low %v4587_v26, %v4602_v35  ;;  %v2395_v52 = vld [vmem:[#allocation2 + $0x30] sm:$0xf]  ;;  %v4815_v62 = vld [vmem:[#allocation2 + $0x34] sm:$0xf] }
  0x7e   : > { %v3510_v39 = vcombine.low %v1136_v8, %v1139_v14  ;;  %v2433_v29 = vshll.u32 %v4789_v28, 16  ;;  %v2420_v21 = vor.u32 %v2419_v47, %v2416_v59  ;;  %v2430_v26 = vor.u32 %v2429_v18, %v4795_v10  ;;  %v2407_v0 = vld [vmem:[#allocation2 + $0x60] sm:$0xf] }
  0x7f   : > { %v4804_v22 = vsel %vm4538_vm9, %v3507_v24, %v1177_v49  ;;  %v1179_v50 = vrot.slane %v1177_v49, 4  ;;  %v2447_v38 = vshll.u32 %v4800_v37, 16  ;;  %v2451_v41 = vshrl.u32 %v4800_v37, 16 }
  0x80   : > { %v1184_v8 = vrot.slane %v4602_v35, 5  ;;  %v2471_v14 = vshll.u32 %v4815_v62, 16  ;;  %v2475_v24 = vshrl.u32 %v4815_v62, 16  ;;  %v1187_v59 = vrot.slane %v4610_v60, 5  ;;  %v4836_v60 = vld [vmem:[#allocation2 + $0x2c] sm:$0x1] }
  0x81   : > { %v4813_v23 = vsel %vm4538_vm9, %v1179_v50, %v1180_v6  ;;  %v2421_v47 = vrot.slane %v2420_v21, 4  ;;  %v2435_v49 = vrot.slane %v2433_v29, 5  ;;  %v2431_v35 = vrot.slane %v2430_v26, 4  ;;  %v4140_v26 = vld [vmem:[#allocation2 + $0x54] sm:$0xff]  }
  0x83   : > { %3901 = vmatmul.mubr.msk.bf16.vlgmr.msra.gmra.mrb[0].mxu0 %vm816_vm5, %v4136_v54  ;;  %v2441_v54 = vshll.u32 %v2392_v55, 16 }
  0x84   : > { %3819 = vmatmul.mubr.msk.bf16.gmra.mrb[8].mxu1 %vm816_vm5, %v3490_v20  ;;  %3917 = vmatpush3.bf16.msra.mxu0 %v2656_v48  ;;  %v2438_v20 = vshrl.u32 %v2392_v55, 16  ;;  %v2462_v48 = vshrl.u32 %v2395_v52, 16  ;;  %v1186_v55 = vrot.slane %v1184_v8, 4 }
  0x85   : > { %3822 = vmatprep.mubr.msk.bf16.mxu1 %vm816_vm5, %v3491_v17  ;;  %3904 = vmatprep.mubr.msk.bf16.mxu0 %vm816_vm5, %v4137_v53  ;;  %v2465_v17 = vshll.u32 %v2395_v52, 16  ;;  %v3508_v53 = vrot.slane %v1113_v42, 9  ;;  %v2443_v50 = vrot.slane %v2441_v54, 5  ;;  %v4833_v52 = vrot.slane %v2447_v38, 5  ;;  %v2398_v54 = vld [vmem:[#allocation2 + $0x3c] sm:$0xf] }
  0x86   : > { %4091 = vmatprep.subr.msk.bf16.mxu0 %vm841_vm0, %v4782_v5  ;;  %v2440_v6 = vrot.slane %v2438_v20, 4  ;;  %v2453_v42 = vrot.slane %v2451_v41, 4  ;;  %v2464_v29 = vrot.slane %v2462_v48, 4  ;;  %v4840_v21 = vsel %vm4538_vm9, %v1186_v55, %v1187_v59  ;;  %v4850_v38 = vld [vmem:[#allocation2 + $0x40] sm:$0xf] }
  0x87   : > { %v4829_v18 = vsel %vm4538_vm9, %v3508_v53, %v1184_v8  ;;  %v4842_v53 = vld [vmem:[#allocation2 + $0x38] sm:$0x1]  ;;  %v4141_v41 = vld [vmem:[#allocation2 + $0x60] sm:$0xff]   ;;  %v2426_v48 = vsel %vm4404_vm6, %v2421_v47, %v4795_v10  ;;  %v4858_v59 = vld [vmem:[#allocation2 + $0x4c] sm:$0xf]  ;;  %v2486_v46 = vshrl.u32 %v2398_v54, 16 }
  0x88   : > { %v2444_v8 = vor.u32 %v2443_v50, %v2440_v6  ;;  %v2454_v55 = vor.u32 %v2453_v42, %v4833_v52  ;;  %v2481_v20 = vshll.u32 %v4842_v53, 16  ;;  %v2489_v12 = vshll.u32 %v2398_v54, 16 }
  0x89   : > { %v2495_v10 = vshll.u32 %v4850_v38, 16  ;;  %v2499_v47 = vshrl.u32 %v4850_v38, 16  ;;  %v2519_v6 = vshll.u32 %v4858_v59, 16  ;;  %v2488_v31 = vrot.slane %v2486_v46, 4 }
  0x8a   : > { %v2445_v42 = vrot.slane %v2444_v8, 4  ;;  %v2455_v54 = vrot.slane %v2454_v55, 4  ;;  %v2543_v55 = vshll.u32 %v4877_v32, 16 }
  0x8b   : > { %3905 = vmatmul.mubr.msk.bf16.gmra.mrb[4].mxu0 %vm816_vm5, %v4138_v63  ;;  %v2467_v63 = vrot.slane %v2465_v17, 5  ;;  %v2436_v17 = vsel %vm4404_vm6, %v2431_v35, %v2435_v49  ;;  %v2501_v8 = vrot.slane %v2499_v47, 4 }
  0x8c   : > { %3823 = vmatmul.mubr.msk.bf16.gmra.mrb[12].mxu1 %vm816_vm5, %v3492_v9  ;;  %3908 = vmatprep.mubr.msk.bf16.mxu0 %vm816_vm5, %v4139_v1  ;;  %v4844_v9 = vrot.slane %v2471_v14, 5  ;;  %v2477_v1 = vrot.slane %v2475_v24, 4  ;;  %v2457_v14 = vshll.u32 %v4836_v60, 16  ;;  %v2401_v24 = vld [vmem:[#allocation2 + $0x48] sm:$0xf]  ;;  %v3603_v50 = vcombine.low %v2426_v48, %v2436_v17 }
  0x8d   : > { %3828 = vmatprep.mubr.msk.bf16.mxu1 %vm816_vm5, %v3510_v39  ;;  %v1439_v39 = vsel %vm841_vm0, %v4692_v34, 0  ;;  %v2468_v34 = vor.u32 %v2467_v63, %v2464_v29  ;;  %v2510_v49 = vshrl.u32 %v2401_v24, 16  ;;  %v2513_v35 = vshll.u32 %v2401_v24, 16 }
  0x8e   : > { %v2478_v51 = vor.u32 %v2477_v1, %v4844_v9  ;;  %v2459_v29 = vrot.slane %v2457_v14, 5  ;;  %v2523_v63 = vshrl.u32 %v4858_v59, 16  ;;  %v2404_v1 = vld [vmem:[#allocation2 + $0x54] sm:$0xf]  ;;  %v2483_v24 = vrot.slane %v2481_v20, 5 }
  0x8f   : > { %v2491_v48 = vrot.slane %v2489_v12, 5  ;;  %v4879_v17 = vrot.slane %v2495_v10, 5  ;;  %v2512_v15 = vrot.slane %v2510_v49, 4  ;;  %v4887_v20 = vrot.slane %v2519_v6, 5  ;;  %v4889_v14 = vld [vmem:[#allocation2 + $0x50] sm:$0x1] }
  0x90   : > { %v2534_v46 = vshrl.u32 %v2404_v1, 16  ;;  %v2537_v12 = vshll.u32 %v2404_v1, 16  ;;  %v1708_v10 = vshll.u32 %v4644_v56, 16  ;;  %v2450_v47 = vsel %vm4404_vm6, %v2445_v42, %v4833_v52 }
  0x91   : > { %v2460_v49 = vsel %vm4404_vm6, %v2455_v54, %v2459_v29  ;;  %v2502_v1 = vor.u32 %v2501_v8, %v4879_v17  ;;  %v2561_v8 = vshll.u32 %v2407_v0, 16 }
  0x92   : > { %v2536_v29 = vrot.slane %v2534_v46, 4 }
  0x93   : > { %3909 = vmatmul.mubr.msk.bf16.gmra.mrb[8].mxu0 %vm816_vm5, %v4140_v26  ;;  %v2469_v26 = vrot.slane %v2468_v34, 4  ;;  %v2547_v34 = vshrl.u32 %v4877_v32, 16 }
  0x94   : > { %3829 = vmatmul.mubr.msk.bf16.vlgmr.msra.gmra.mrb[0].mxu1 %vm816_vm5, %v3511_v25  ;;  %3912 = vmatprep.mubr.msk.bf16.mxu0 %vm816_vm5, %v4141_v41  ;;  %v4142_v25 = vld [vmem:[#allocation2 + $0x6c] sm:$0xff]   ;;  %v2479_v41 = vrot.slane %v2478_v51, 4  ;;  %v2525_v51 = vrot.slane %v2523_v63, 4  ;;  %v2492_v63 = vor.u32 %v2491_v48, %v2488_v31  ;;  %v4918_v31 = vrot.slane %v2543_v55, 5 }
  0x95   : > { %3845 = vmatpush3.bf16.msra.mxu1 %v1439_v39  ;;  %3832 = vmatprep.mubr.msk.bf16.mxu1 %vm816_vm5, %v3512_v58  ;;  %v4151_v39 = vld [vmem:[%s5215_s2 + $0x8] sm:$0x3]  ;;  %v2515_v58 = vrot.slane %v2513_v35, 5  ;;  %v2910_v35 = vsel %vm841_vm0, %v4782_v5, 0  ;;  %v2474_v6 = vsel %vm4404_vm6, %v2469_v26, %v4844_v9  ;;  %v2529_v5 = vshll.u32 %v4889_v14, 16 }
  0x96   : > { %4087 = vmatprep.subr.msk.bf16.mxu1 %vm841_vm0, %v4151_v39  ;;  %v2505_v39 = vshll.u32 %v4885_v44, 16  ;;  %v2484_v52 = vsel %vm4404_vm6, %v2479_v41, %v2483_v24  ;;  %v5235_v9 = vcombine.low %v4735_v27, %v4745_v13  ;;  %v2526_v54 = vor.u32 %v2525_v51, %v4887_v20  ;;  %v4924_v41 = vld [vmem:[#allocation2 + $0x5c] sm:$0x1] }
  0x97   : > { %v2516_v42 = vor.u32 %v2515_v58, %v2512_v15  ;;  %v2539_v26 = vrot.slane %v2537_v12, 5  ;;  %v5236_v24 = vcombine.low %v4740_v2, %v4753_v7  ;;  %v2558_v48 = vshrl.u32 %v2407_v0, 16  ;;  %v2410_v0 = vld [vmem:[#allocation2 + $0x6c] sm:$0xf] }
  0x98   : > { %v2567_v27 = vshll.u32 %v4906_v57, 16  ;;  %v2571_v13 = vshrl.u32 %v4906_v57, 16  ;;  %v2493_v15 = vrot.slane %v2492_v63, 4  ;;  %v2503_v58 = vrot.slane %v2502_v1, 4  ;;  %v4942_v1 = vld [vmem:[#allocation2 + $0x68] sm:$0x1] }
  0x99   : > { %v2507_v46 = vrot.slane %v2505_v39, 5  ;;  %v3604_v51 = vcombine.low %v2450_v47, %v2460_v49  ;;  %v3605_v12 = vcombine.low %v2474_v6, %v2484_v52  ;;  %v2517_v55 = vrot.slane %v2516_v42, 4 }
  0x9a   : > { %v2527_v2 = vrot.slane %v2526_v54, 4  ;;  %v2540_v7 = vor.u32 %v2539_v26, %v2536_v29  ;;  %v2560_v33 = vrot.slane %v2558_v48, 4  ;;  %v2563_v57 = vrot.slane %v2561_v8, 5 }
  0x9b   : > { %3913 = vmatmul.mubr.msk.bf16.gmra.mrb[12].mxu0 %vm816_vm5, %v4142_v25  ;;  %v2549_v25 = vrot.slane %v2547_v34, 4  ;;  %v2531_v34 = vrot.slane %v2529_v5, 5  ;;  %v4933_v32 = vrot.slane %v2567_v27, 5  ;;  %v4935_v63 = vrot.slane %v1708_v10, 5 }
  0x9c   : > { %3833 = vmatmul.mubr.msk.bf16.gmra.mrb[4].mxu1 %vm816_vm5, %v5235_v9  ;;  %3918 = vmatprep.mubr.msk.bf16.mxu0 %vm816_vm5, %v3603_v50  ;;  %v1712_v50 = vshrl.u32 %v4644_v56, 16  ;;  %v2573_v56 = vrot.slane %v2571_v13, 4  ;;  %v2498_v49 = vsel %vm4404_vm6, %v2493_v15, %v4879_v17  ;;  %v2508_v6 = vsel %vm4404_vm6, %v2503_v58, %v2507_v46 }
  0x9d   : > { %3836 = vmatprep.mubr.msk.bf16.mxu1 %vm816_vm5, %v5236_v24  ;;  %v2550_v9 = vor.u32 %v2549_v25, %v4918_v31  ;;  %v2553_v24 = vshll.u32 %v4924_v41, 16  ;;  %v2582_v39 = vshrl.u32 %v2410_v0, 16  ;;  %v2585_v52 = vshll.u32 %v2410_v0, 16  ;;  %v2771_v0 = vld [vmem:[#allocation2 + $0x18] sm:$0xe] }
  0x9e   : > { %v1714_v47 = vrot.slane %v1712_v50, 4  ;;  %v2591_v42 = vshll.u32 %v4931_v11, 16  ;;  %v2595_v5 = vshrl.u32 %v4931_v11, 16  ;;  %v5237_v10 = vcombine.low %v4769_v45, %v4786_v36 }
  0x9f   : > { %v2522_v17 = vsel %vm4404_vm6, %v2517_v55, %v4887_v20  ;;  %v2532_v29 = vsel %vm4404_vm6, %v2527_v2, %v2531_v34  ;;  %v2541_v54 = vrot.slane %v2540_v7, 4  ;;  %v2555_v26 = vrot.slane %v2553_v24, 5  ;;  %v1569_v7 = vld [vmem:[#allocation2 + $0x48] sm:$0xf] }
  0xa0   : > { %v5238_v25 = vcombine.low %v4804_v22, %v4813_v23  ;;  %v2551_v45 = vrot.slane %v2550_v9, 4  ;;  %v2564_v36 = vor.u32 %v2563_v57, %v2560_v33  ;;  %v2577_v48 = vshll.u32 %v4942_v1, 16  ;;  %v4970_v33 = vld [vmem:[#allocation2 + $0x74] sm:$0x1]  ;;  %v4143_v57 = vld [vmem:[#allocation2 + $0xc] sm:$0xff]  }
  0xa1   : > { %v1715_v20 = vor.u32 %v1714_v47, %v4935_v63  ;;  %v1718_v8 = vshll.u32 %v4646_v61, 16  ;;  %v3606_v27 = vcombine.low %v2498_v49, %v2508_v6  ;;  %v2584_v13 = vrot.slane %v2582_v39, 4 }
  0xa2   : > { %v2587_v50 = vrot.slane %v2585_v52, 5  ;;  %v4965_v15 = vrot.slane %v2591_v42, 5  ;;  %v2597_v22 = vrot.slane %v2595_v5, 4  ;;  %v3607_v23 = vcombine.low %v2522_v17, %v2532_v29 }
  0xa3   : > { %3919 = vmatmul.mubr.msk.bf16.vlgmr.msra.gmra.mrb[0].mxu0 %vm816_vm5, %v3604_v51  ;;  %v2546_v58 = vsel %vm4404_vm6, %v2541_v54, %v4918_v31  ;;  %v2556_v46 = vsel %vm4404_vm6, %v2551_v45, %v2555_v26  ;;  %v2565_v51 = vrot.slane %v2564_v36, 4  ;;  %v2579_v61 = vrot.slane %v2577_v48, 5  ;;  %v4144_v54 = vld [vmem:[#allocation2 + $0x18] sm:$0xff]   ;;  %v4145_v45 = vld [vmem:[#allocation2 + $0x24] sm:$0xff]  }
  0xa4   : > { %3837 = vmatmul.mubr.msk.bf16.gmra.mrb[8].mxu1 %vm816_vm5, %v5237_v10  ;;  %3935 = vmatpush3.bf16.msra.mxu0 %v2910_v35  ;;  %v2574_v35 = vor.u32 %v2573_v56, %v4933_v32  ;;  %v1716_v55 = vrot.slane %v1715_v20, 4  ;;  %v1720_v34 = vrot.slane %v1718_v8, 5  ;;  %v2805_v2 = vrot.slane %v4759_v16, 5  ;;  %v2772_v48 = vld [vmem:[#allocation2 + $0x24] sm:$0xe] }
  0xa5   : > { %3840 = vmatprep.mubr.msk.bf16.mxu1 %vm816_vm5, %v5238_v25  ;;  %3922 = vmatprep.mubr.msk.bf16.mxu0 %vm816_vm5, %v3605_v12  ;;  %v2588_v9 = vor.u32 %v2587_v50, %v2584_v13  ;;  %v2598_v24 = vor.u32 %v2597_v22, %v4965_v15  ;;  %v2601_v31 = vshll.u32 %v4970_v33, 16  ;;  %v5239_v56 = vcombine.low %v4829_v18, %v4840_v21  ;;  %v1566_v25 = vld [vmem:[#allocation2 + $0x3c] sm:$0xf]  ;;  %v2773_v13 = vld [vmem:[#allocation2 + $0x30] sm:$0xe] }
  0xa6   : > { %v2575_v12 = vrot.slane %v2574_v35, 4  ;;  %v3608_v47 = vcombine.low %v2546_v58, %v2556_v46  ;;  %v2570_v16 = vsel %vm4404_vm6, %v2565_v51, %v4933_v32  ;;  %v1699_v6 = vshrl.u32 %v1569_v7, 16 }
  0xa7   : > { %v1702_v39 = vshll.u32 %v1569_v7, 16  ;;  %v3619_v52 = vrot.slane %v2771_v0, 9  ;;  %v2807_v42 = vrot.slane %v2805_v2, 4  ;;  %v2808_v18 = vrot.slane %v4789_v28, 5  ;;  %v4146_v7 = vld [vmem:[#allocation2 + $0x30] sm:$0xff]  }
  0xa8   : > { %v2580_v49 = vsel %vm4404_vm6, %v2575_v12, %v2579_v61  ;;  %v1721_v21 = vsel %vm4404_vm6, %v1716_v55, %v1720_v34  ;;  %v2589_v5 = vrot.slane %v2588_v9, 4  ;;  %v2599_v10 = vrot.slane %v2598_v24, 4 }
  0xa9   : > { %v2603_v17 = vrot.slane %v2601_v31, 5  ;;  %v1701_v29 = vrot.slane %v1699_v6, 4  ;;  %v3609_v26 = vcombine.low %v2570_v16, %v2580_v49  ;;  %v1704_v32 = vrot.slane %v1702_v39, 5  ;;  %v1572_v49 = vld [vmem:[#allocation2 + $0x54] sm:$0xf] }
  0xaa   : > { %v2806_v36 = vsel %vm4538_vm9, %v3619_v52, %v2805_v2  ;;  %v2809_v35 = vsel %vm4538_vm9, %v2807_v42, %v2808_v18  ;;  %v2812_v28 = vrot.slane %v4800_v37, 5  ;;  %v2594_v8 = vsel %vm4404_vm6, %v2589_v5, %v4965_v15  ;;  %v2775_v42 = vld [vmem:[#allocation2 + $0x48] sm:$0xe] }
  0xab   : > { %3923 = vmatmul.mubr.msk.bf16.gmra.mrb[4].mxu0 %vm816_vm5, %v3606_v27  ;;  %v1705_v20 = vor.u32 %v1704_v32, %v1701_v29  ;;  %v2604_v27 = vsel %vm4404_vm6, %v2599_v10, %v2603_v17  ;;  %v2819_v50 = vrot.slane %v4815_v62, 5  ;;  %v1675_v22 = vshrl.u32 %v1566_v25, 16 }
  0xac   : > { %3841 = vmatmul.mubr.msk.bf16.gmra.mrb[12].mxu1 %vm816_vm5, %v5239_v56  ;;  %3926 = vmatprep.mubr.msk.bf16.mxu0 %vm816_vm5, %v3607_v23  ;;  %v1678_v23 = vshll.u32 %v1566_v25, 16  ;;  %v1684_v37 = vshll.u32 %v4628_v43, 16  ;;  %v1688_v58 = vshrl.u32 %v4628_v43, 16  ;;  %v3620_v15 = vrot.slane %v2772_v48, 9 }
  0xad   : > { %3846 = vmatprep.mubr.msk.bf16.mxu1 %vm816_vm5, %v4143_v57  ;;  %v1706_v57 = vrot.slane %v1705_v20, 4  ;;  %v2815_v46 = vrot.slane %v4836_v60, 5  ;;  %v3628_v51 = vcombine.low %v2806_v36, %v2809_v35  ;;  %v2814_v62 = vrot.slane %v2812_v28, 4  ;;  %v4147_v60 = vld [vmem:[#allocation2 + $0x3c] sm:$0xff]  }
  0xae   : > { %v3621_v12 = vrot.slane %v2773_v13, 9  ;;  %v3610_v55 = vcombine.low %v2594_v8, %v2604_v27  ;;  %v2821_v34 = vrot.slane %v2819_v50, 4  ;;  %v2822_v2 = vrot.slane %v4842_v53, 5  ;;  %v1575_v13 = vld [vmem:[#allocation2 + $0x60] sm:$0xf] }
  0xaf   : > { %v1711_v61 = vsel %vm4404_vm6, %v1706_v57, %v4935_v63  ;;  %v1680_v9 = vrot.slane %v1678_v23, 5  ;;  %v5017_v24 = vrot.slane %v1684_v37, 5  ;;  %v1690_v31 = vrot.slane %v1688_v58, 4  ;;  %v2774_v63 = vld [vmem:[#allocation2 + $0x3c] sm:$0xe]  ;;  %v5240_v23 = vld [vmem:[#allocation6_spill] sm:$0xff] }
  0xb0   : > { %v5015_v43 = vcombine.low %v1711_v61, %v1721_v21  ;;  %v2813_v0 = vsel %vm4538_vm9, %v3620_v15, %v2812_v28  ;;  %v2816_v56 = vsel %vm4538_vm9, %v2814_v62, %v2815_v46  ;;  %v2820_v53 = vsel %vm4538_vm9, %v3621_v12, %v2819_v50  ;;  %v4149_v28 = vld [vmem:[#allocation2 + $0x54] sm:$0xff]   ;;  %v2777_v62 = vld [vmem:[#allocation2 + $0x60] sm:$0xe] }
  0xb1   : > { %v1694_v16 = vshll.u32 %v4630_v40, 16  ;;  %v2823_v6 = vsel %vm4538_vm9, %v2821_v34, %v2822_v2  ;;  %v1691_v52 = vor.u32 %v1690_v31, %v5017_v24  ;;  %v2833_v18 = vrot.slane %v4858_v59, 5  ;;  %v2776_v15 = vld [vmem:[#allocation2 + $0x54] sm:$0xe]  ;;  %v5241_v46 = vld [vmem:[#allocation7_spill] sm:$0xff] }
  0xb2   : > { %v3629_v21 = vcombine.low %v2813_v0, %v2816_v56  ;;  %v2829_v40 = vrot.slane %v4885_v44, 5  ;;  %v1723_v5 = vshrl.u32 %v1572_v49, 16  ;;  %v1726_v10 = vshll.u32 %v1572_v49, 16 }
  0xb3   : > { %3927 = vmatmul.mubr.msk.bf16.gmra.mrb[8].mxu0 %vm816_vm5, %v3608_v47  ;;  %v2826_v47 = vrot.slane %v4850_v38, 5  ;;  %v3622_v38 = vrot.slane %v2774_v63, 9  ;;  %v1732_v17 = vshll.u32 %v4652_v19, 16  ;;  %v1736_v29 = vshrl.u32 %v4652_v19, 16 }
  0xb4   : > { %3847 = vmatmul.mubr.msk.bf16.vlgmr.msra.gmra.mrb[0].mxu1 %vm816_vm5, %v4144_v54  ;;  %3930 = vmatprep.mubr.msk.bf16.mxu0 %vm816_vm5, %v3609_v26  ;;  %v3630_v54 = vcombine.low %v2820_v53, %v2823_v6  ;;  %v1696_v25 = vrot.slane %v1694_v16, 5  ;;  %v3623_v32 = vrot.slane %v2775_v42, 9  ;;  %v1692_v35 = vrot.slane %v1691_v52, 4  ;;  %v4150_v53 = vld [vmem:[#allocation2 + $0x60] sm:$0xff]  }
  0xb5   : > { %3953 = vmatpush3.bf16.msra.mxu1 %v4274_v3  ;;  %3850 = vmatprep.mubr.msk.bf16.mxu1 %vm816_vm5, %v4145_v45  ;;  %v1677_v3 = vrot.slane %v1675_v22, 4  ;;  %v2828_v26 = vrot.slane %v2826_v47, 4  ;;  %v4148_v45 = vld [vmem:[#allocation2 + $0x48] sm:$0xff]   ;;  %v2835_v59 = vrot.slane %v2833_v18, 4  ;;  %v2836_v48 = vrot.slane %v4889_v14, 5 }
  0xb6   : > { %v1725_v20 = vrot.slane %v1723_v5, 4  ;;  %v1728_v8 = vrot.slane %v1726_v10, 5  ;;  %v1734_v44 = vrot.slane %v1732_v17, 5  ;;  %v1738_v27 = vrot.slane %v1736_v29, 4 }
  0xb7   : > { %v1681_v39 = vor.u32 %v1680_v9, %v1677_v3  ;;  %v2827_v19 = vsel %vm4538_vm9, %v3622_v38, %v2826_v47  ;;  %v2830_v50 = vsel %vm4538_vm9, %v2828_v26, %v2829_v40  ;;  %v2834_v22 = vsel %vm4538_vm9, %v3623_v32, %v2833_v18  ;;  %v5244_v26 = vld [vmem:[#allocation5_spill] sm:$0xff] }
  0xb8   : > { %v2840_v37 = vrot.slane %v5240_v23, 5  ;;  %v1697_v58 = vsel %vm4404_vm6, %v1692_v35, %v1696_v25  ;;  %v2837_v57 = vsel %vm4538_vm9, %v2835_v59, %v2836_v48  ;;  %v1747_v12 = vshrl.u32 %v1575_v13, 16  ;;  %v2778_v32 = vld [vmem:[#allocation2 + $0x6c] sm:$0xe] }
  0xb9   : > { %v1682_v36 = vrot.slane %v1681_v39, 4  ;;  %v1750_v61 = vshll.u32 %v1575_v13, 16  ;;  %v1729_v3 = vor.u32 %v1728_v8, %v1725_v20  ;;  %v1739_v9 = vor.u32 %v1738_v27, %v1734_v44 }
  0xba   : > { %v3624_v0 = vrot.slane %v2776_v15, 9  ;;  %v2842_v56 = vrot.slane %v2840_v37, 4  ;;  %v2843_v63 = vrot.slane %v4924_v41, 5  ;;  %v3625_v16 = vrot.slane %v2777_v62, 9 }
  0xbb   : > { %3931 = vmatmul.mubr.msk.bf16.gmra.mrb[12].mxu0 %vm816_vm5, %v3610_v55  ;;  %v1687_v14 = vsel %vm4404_vm6, %v1682_v36, %v5017_v24  ;;  %v5242_v55 = vld [vmem:[#allocation4_spill] sm:$0xff]  ;;  %v5243_v24 = vld [vmem:[#allocation3_spill] sm:$0xff]  ;;  %v2850_v6 = vrot.slane %v4942_v1, 5  ;;  %v1749_v39 = vrot.slane %v1747_v12, 4  ;;  %v1752_v52 = vrot.slane %v1750_v61, 5 }
  0xbc   : > { %3851 = vmatmul.mubr.msk.bf16.gmra.mrb[4].mxu1 %vm816_vm5, %v4146_v7  ;;  %3936 = vmatprep.mubr.msk.bf16.mxu0 %vm816_vm5, %v3628_v51  ;;  %v2847_v51 = vrot.slane %v5241_v46, 5  ;;  %v1756_v34 = vshll.u32 %v5242_v55, 16  ;;  %v1760_v2 = vshrl.u32 %v5242_v55, 16  ;;  %v3631_v7 = vcombine.low %v2827_v19, %v2830_v50 }
  0xbd   : > { %3854 = vmatprep.mubr.msk.bf16.mxu1 %vm816_vm5, %v4147_v60  ;;  %v1742_v31 = vshll.u32 %v5243_v24, 16  ;;  %v3632_v60 = vcombine.low %v2834_v22, %v2837_v57  ;;  %v3548_v47 = vcombine.low %v1687_v14, %v1697_v58  ;;  %v1740_v38 = vrot.slane %v1739_v9, 4 }
  0xbe   : > { %v2849_v49 = vrot.slane %v2847_v51, 4  ;;  %v1758_v42 = vrot.slane %v1756_v34, 5  ;;  %v1762_v18 = vrot.slane %v1760_v2, 4  ;;  %v2841_v41 = vsel %vm4538_vm9, %v3624_v0, %v2840_v37 }
  0xbf   : > { %v1744_v40 = vrot.slane %v1742_v31, 5  ;;  %v2844_v5 = vsel %vm4538_vm9, %v2842_v56, %v2843_v63  ;;  %v2848_v1 = vsel %vm4538_vm9, %v3625_v16, %v2847_v51  ;;  %v2854_v10 = vrot.slane %v4931_v11, 5  ;;  %v5103_v51 = vld [vmem:[%s5216_s3] ss:$0 sm:$0xff] }
  0xc0   : > { %v2851_v17 = vsel %vm4538_vm9, %v2849_v49, %v2850_v6  ;;  %v1753_v29 = vor.u32 %v1752_v52, %v1749_v39  ;;  %v1766_v25 = vshll.u32 %v5244_v26, 16  ;;  %v3633_v35 = vcombine.low %v2841_v41, %v2844_v5 }
  0xc1   : > { %v1745_v36 = vsel %vm4404_vm6, %v1740_v38, %v1744_v40  ;;  %v3634_v59 = vcombine.low %v2848_v1, %v2851_v17  ;;  %v3626_v48 = vrot.slane %v2778_v32, 9  ;;  %v2856_v11 = vrot.slane %v2854_v10, 4 }
  0xc2   : > { %v1754_v8 = vrot.slane %v1753_v29, 4  ;;  %v1768_v13 = vrot.slane %v1766_v25, 5 }
  0xc3   : > { %3937 = vmatmul.mubr.msk.bf16.vlgmr.msra.gmra.mrb[0].mxu0 %vm816_vm5, %v3629_v21  ;;  %v1730_v21 = vrot.slane %v1729_v3, 4 }
  0xc4   : > { %3855 = vmatmul.mubr.msk.bf16.gmra.mrb[8].mxu1 %vm816_vm5, %v4148_v45  ;;  %3940 = vmatprep.mubr.msk.bf16.mxu0 %vm816_vm5, %v3630_v54  ;;  %v1763_v54 = vor.u32 %v1762_v18, %v1758_v42 }
  0xc5   : > { %3858 = vmatprep.mubr.msk.bf16.mxu1 %vm816_vm5, %v4149_v28  ;;  %v1735_v45 = vsel %vm4404_vm6, %v1730_v21, %v1734_v44  ;;  %v2857_v28 = vrot.slane %v4970_v33, 5  ;;  %v2855_v44 = vsel %vm4538_vm9, %v3626_v48, %v2854_v10  ;;  %v1759_v33 = vsel %vm4404_vm6, %v1754_v8, %v1758_v42 }
  0xc6   : > { %v3550_v20 = vcombine.low %v1735_v45, %v1745_v36  ;;  %v1764_v27 = vrot.slane %v1763_v54, 4 }
  0xc7   : > { %v2858_v19 = vsel %vm4538_vm9, %v2856_v11, %v2857_v28 }
  0xc8   : > { %v1769_v50 = vsel %vm4404_vm6, %v1764_v27, %v1768_v13  ;;  %v3635_v22 = vcombine.low %v2855_v44, %v2858_v19 }
  0xcb   : > { %3941 = vmatmul.mubr.msk.bf16.gmra.mrb[4].mxu0 %vm816_vm5, %v3631_v7 }
  0xcc   : > { %3859 = vmatmul.mubr.msk.bf16.gmra.mrb[12].mxu1 %vm816_vm5, %v4150_v53  ;;  %3944 = vmatprep.mubr.msk.bf16.mxu0 %vm816_vm5, %v3632_v60 }
  0xcd   : > { %3872 = vmatprep.mubr.msk.bf16.mxu1 %vm816_vm5, %v3548_v47 }
  0xd3   : > { %3945 = vmatmul.mubr.msk.bf16.gmra.mrb[8].mxu0 %vm816_vm5, %v3633_v35 }
  0xd4   : > { %3873 = vmatmul.mubr.msk.bf16.vlgmr.msra.gmra.mrb[8].mxu1 %vm816_vm5, %v5015_v43  ;;  %3948 = vmatprep.mubr.msk.bf16.mxu0 %vm816_vm5, %v3634_v59  ;;  %v3551_v43 = vcombine.low %v1759_v33, %v1769_v50 }
  0xd5   : > { %3876 = vmatprep.mubr.msk.bf16.mxu1 %vm816_vm5, %v3550_v20 }
  0xdb   : > { %3949 = vmatmul.mubr.msk.bf16.gmra.mrb[12].mxu0 %vm816_vm5, %v3635_v22 }
  0xdc   : > { %3877 = vmatmul.mubr.msk.bf16.gmra.mrb[12].mxu1 %vm816_vm5, %v3551_v43 }
 0x187   : > { %v3848_v23 = vpop.f32.mrb[0].mxu1 }
 0x188   : > { %v1475_v37 = vpop.f32.mrb[1].mxu1 }
 0x189   : > { %v3849_v4 = vpop.f32.mrb[2].mxu1 }
 0x18a   : > { %v1478_v14 = vpop.f32.mrb[3].mxu1 }
 0x18f   : > { %v3852_v58 = vpop.f32.mrb[4].mxu1 }
 0x190   : > { %v1491_v57 = vpop.f32.mrb[5].mxu1 }
 0x191   : > { %v3853_v15 = vpop.f32.mrb[6].mxu1 }
 0x192   : > { %v1494_v46 = vpop.f32.mrb[7].mxu1 }
 0x196   : > { %v3938_v30 = vpop.f32.mrb[0].mxu0 }
 0x197   : > { %v3954_v62 = vadd.f32 %v3938_v30, %v3848_v23  ;;  %v2946_v12 = vpop.f32.mrb[1].mxu0 }
 0x198   : > { %v3955_v61 = vadd.f32 %v2946_v12, %v1475_v37  ;;  %v3939_v55 = vpop.f32.mrb[2].mxu0 }
 0x199   : > { %v3034_v34 = vadd.f32 %v3954_v62, %v5103_v51  ;;  %v3956_v2 = vadd.f32 %v3939_v55, %v3849_v4  ;;  %v2949_v7 = vpop.f32.mrb[3].mxu0 }
 0x19a   : > { %v3032_v3 = vadd.f32 %v3955_v61, %v5103_v51  ;;  %v3957_v9 = vadd.f32 %v2949_v7, %v1478_v14 }
 0x19b   : > { %vm3050_vm10 = vcmp.ge.f32.partialorder %v3034_v34, 0.0  ;;  %v3066_v24 = vmul.f32 0.01, %v3034_v34  ;;  %v3035_v31 = vadd.f32 %v3956_v2, %v5103_v51 }
 0x19c   : > { %vm3048_vm13 = vcmp.ge.f32.partialorder %v3032_v3, 0.0  ;;  %v3064_v60 = vmul.f32 0.01, %v3032_v3  ;;  %v3033_v63 = vadd.f32 %v3957_v9, %v5103_v51 }
 0x19d   : > { %v3082_v0 = vsel %vm3050_vm10, %v3034_v34, %v3066_v24  ;;  %vm3051_vm14 = vcmp.ge.f32.partialorder %v3035_v31, 0.0  ;;  %v3067_v56 = vmul.f32 0.01, %v3035_v31 }
 0x19e   : > { %v3695_v53 = vpack.c.bf16 %v3082_v0, %v3082_v0  ;;  %v3080_v47 = vsel %vm3048_vm13, %v3032_v3, %v3064_v60  ;;  %v3942_v16 = vpop.f32.mrb[4].mxu0  ;;  %v3181_v42 = vsel %vm3177_vm12, %v3082_v0, 0.0  ;;  %v3219_v38 = vmul.f32 %v3082_v0, %v3082_v0 }
 0x19f   : > { %v3693_v49 = vpack.c.bf16 %v3080_v47, %v3080_v47  ;;  %v3217_v6 = vmul.f32 %v3080_v47, %v3080_v47  ;;  %v3083_v39 = vsel %vm3051_vm14, %v3035_v31, %v3067_v56  ;;  %v2962_v52 = vpop.f32.mrb[5].mxu0  ;;  %vm3049_vm15 = vcmp.ge.f32.partialorder %v3033_v63, 0.0 }
 0x1a0   : > { %3163 = vst.msk [vmem:[%s5111_s10 + $0x8] sm:$0xf] %vm3160_vm11, %v3695_v53  ;;  %v3696_v18 = vpack.c.bf16 %v3083_v39, %v3083_v39  ;;  %v3943_v21 = vpop.f32.mrb[6].mxu0  ;;  %v3065_v40 = vmul.f32 0.01, %v3033_v63  ;;  %v3958_v41 = vadd.f32 %v3942_v16, %v3852_v58  ;;  %v3178_v1 = vsel %vm3177_vm12, %v3080_v47, 0.0 }
 0x1a1   : > { %3161 = vst.msk [vmem:[%s5111_s10] sm:$0xf] %vm3160_vm11, %v3693_v49  ;;  %v2965_v5 = vpop.f32.mrb[7].mxu0  ;;  %v3959_v10 = vadd.f32 %v2962_v52, %v1491_v57  ;;  %v3960_v17 = vadd.f32 %v3943_v21, %v3853_v15  ;;  %v3233_v54 = vsel %vm3177_vm12, %v3217_v6, 0.0  ;;  %v3220_v26 = vmul.f32 %v3083_v39, %v3083_v39 }
 0x1a2   : > { %3164 = vst.msk [vmem:[%s5111_s10 + $0xc] sm:$0xf] %vm3160_vm11, %v3696_v18  ;;  %v3961_v29 = vadd.f32 %v2965_v5, %v1494_v46  ;;  %v3081_v25 = vsel %vm3049_vm15, %v3033_v63, %v3065_v40  ;;  %v3038_v32 = vadd.f32 %v3958_v41, %v5103_v51  ;;  %v3236_v44 = vsel %vm3177_vm12, %v3219_v38, 0.0 }
 0x1a3   : > { %v3694_v45 = vpack.c.bf16 %v3081_v25, %v3081_v25  ;;  %v3179_v36 = vsel %vm3177_vm12, %v3081_v25, 0.0  ;;  %v3218_v35 = vmul.f32 %v3081_v25, %v3081_v25  ;;  %v3036_v59 = vadd.f32 %v3959_v10, %v5103_v51 }
 0x1a4   : > { %v3180_v48 = vadd.f32 %v3179_v36, %v3178_v1  ;;  %vm3054_vm0 = vcmp.ge.f32.partialorder %v3038_v32, 0.0  ;;  %v3070_v11 = vmul.f32 0.01, %v3038_v32  ;;  %v3039_v28 = vadd.f32 %v3960_v17, %v5103_v51 }
 0x1a5   : > { %3162 = vst.msk [vmem:[%s5111_s10 + $0x4] sm:$0xf] %vm3160_vm11, %v3694_v45  ;;  %v3234_v20 = vsel %vm3177_vm12, %v3218_v35, 0.0  ;;  %vm3052_vm1 = vcmp.ge.f32.partialorder %v3036_v59, 0.0  ;;  %v3068_v8 = vmul.f32 0.01, %v3036_v59  ;;  %v3037_v27 = vadd.f32 %v3961_v29, %v5103_v51 }
 0x1a6   : > { %v3946_v13 = vpop.f32.mrb[8].mxu0  ;;  %v3182_v19 = vadd.f32 %v3181_v42, %v3180_v48  ;;  %v3235_v33 = vadd.f32 %v3234_v20, %v3233_v54  ;;  %v3086_v50 = vsel %vm3054_vm0, %v3038_v32, %v3070_v11  ;;  %v3183_v23 = vsel %vm3177_vm12, %v3083_v39, 0.0 }
 0x1a7   : > { %v3874_v22 = vpop.f32.mrb[8].mxu1  ;;  %v2978_v43 = vpop.f32.mrb[9].mxu0  ;;  %v3699_v37 = vpack.c.bf16 %v3086_v50, %v3086_v50  ;;  %v3084_v4 = vsel %vm3052_vm1, %v3036_v59, %v3068_v8  ;;  %vm3055_vm2 = vcmp.ge.f32.partialorder %v3039_v28, 0.0  ;;  %v3238_v61 = vsel %vm3177_vm12, %v3220_v26, 0.0 }
 0x1a8   : > { %v1889_v14 = vpop.f32.mrb[9].mxu1  ;;  %v3947_v58 = vpop.f32.mrb[10].mxu0  ;;  %v3237_v57 = vadd.f32 %v3236_v44, %v3235_v33  ;;  %v3697_v15 = vpack.c.bf16 %v3084_v4, %v3084_v4  ;;  %v3184_v46 = vadd.f32 %v3183_v23, %v3182_v19  ;;  %v3185_v30 = vsel %vm3177_vm12, %v3084_v4, 0.0 }
 0x1a9   : > { %v3875_v62 = vpop.f32.mrb[10].mxu1  ;;  %v2981_v12 = vpop.f32.mrb[11].mxu0  ;;  %3167 = vst.msk [vmem:[%s5111_s10 + $0x18] sm:$0xf] %vm3160_vm11, %v3699_v37  ;;  %v3221_v55 = vmul.f32 %v3084_v4, %v3084_v4  ;;  %v3071_v34 = vmul.f32 0.01, %v3039_v28  ;;  %v3962_v24 = vadd.f32 %v3946_v13, %v3874_v22  ;;  %v3963_v0 = vadd.f32 %v2978_v43, %v1889_v14 }
 0x1aa   : > { %vm3053_vm3 = vcmp.ge.f32.partialorder %v3037_v27, 0.0  ;;  %v1892_v2 = vpop.f32.mrb[11].mxu1  ;;  %3165 = vst.msk [vmem:[%s5111_s10 + $0x10] sm:$0xf] %vm3160_vm11, %v3697_v15  ;;  %v3186_v7 = vadd.f32 %v3185_v30, %v3184_v46  ;;  %v3239_v3 = vadd.f32 %v3238_v61, %v3237_v57  ;;  %v3069_v9 = vmul.f32 0.01, %v3037_v27 }
 0x1ab   : > { %v3240_v31 = vsel %vm3177_vm12, %v3221_v55, 0.0  ;;  %v3087_v60 = vsel %vm3055_vm2, %v3039_v28, %v3071_v34  ;;  %v3964_v56 = vadd.f32 %v3947_v58, %v3875_v62  ;;  %v3189_v63 = vsel %vm3177_vm12, %v3086_v50, 0.0 }
 0x1ac   : > { %v3223_v53 = vmul.f32 %v3086_v50, %v3086_v50  ;;  %v3241_v47 = vadd.f32 %v3240_v31, %v3239_v3  ;;  %v3700_v16 = vpack.c.bf16 %v3087_v60, %v3087_v60  ;;  %v3085_v49 = vsel %vm3053_vm3, %v3037_v27, %v3069_v9 }
 0x1ad   : > { %v3042_v6 = vadd.f32 %v3962_v24, %v5103_v51  ;;  %v3040_v39 = vadd.f32 %v3963_v0, %v5103_v51  ;;  %v3043_v52 = vadd.f32 %v3964_v56, %v5103_v51  ;;  %v3224_v18 = vmul.f32 %v3087_v60, %v3087_v60 }
 0x1ae   : > { %v3950_v42 = vpop.f32.mrb[12].mxu0  ;;  %3168 = vst.msk [vmem:[%s5111_s10 + $0x1c] sm:$0xf] %vm3160_vm11, %v3700_v16  ;;  %v3698_v21 = vpack.c.bf16 %v3085_v49, %v3085_v49  ;;  %v3187_v38 = vsel %vm3177_vm12, %v3085_v49, 0.0  ;;  %v3222_v40 = vmul.f32 %v3085_v49, %v3085_v49  ;;  %v3965_v35 = vadd.f32 %v2981_v12, %v1892_v2 }
 0x1af   : > { %v3878_v41 = vpop.f32.mrb[12].mxu1  ;;  %v2994_v5 = vpop.f32.mrb[13].mxu0  ;;  %v3188_v1 = vadd.f32 %v3187_v38, %v3186_v7  ;;  %vm3058_vm4 = vcmp.ge.f32.partialorder %v3042_v6, 0.0  ;;  %v3074_v10 = vmul.f32 0.01, %v3042_v6  ;;  %vm3056_vm5 = vcmp.ge.f32.partialorder %v3040_v39, 0.0 }
 0x1b0   : > { %v1905_v17 = vpop.f32.mrb[13].mxu1  ;;  %v3951_v29 = vpop.f32.mrb[14].mxu0  ;;  %3166 = vst.msk [vmem:[%s5111_s10 + $0x14] sm:$0xf] %vm3160_vm11, %v3698_v21  ;;  %v3242_v54 = vsel %vm3177_vm12, %v3222_v40, 0.0  ;;  %vm3059_vm6 = vcmp.ge.f32.partialorder %v3043_v52, 0.0  ;;  %v3041_v23 = vadd.f32 %v3965_v35, %v5103_v51  ;;  %v3966_v46 = vadd.f32 %v3950_v42, %v3878_v41 }
 0x1b1   : > { %v3072_v26 = vmul.f32 0.01, %v3040_v39  ;;  %v3075_v25 = vmul.f32 0.01, %v3043_v52  ;;  %v3190_v32 = vadd.f32 %v3189_v63, %v3188_v1  ;;  %v3243_v45 = vadd.f32 %v3242_v54, %v3241_v47  ;;  %v3879_v59 = vpop.f32.mrb[14].mxu1  ;;  %v2997_v48 = vpop.f32.mrb[15].mxu0 }
 0x1b2   : > { %v3090_v36 = vsel %vm3058_vm4, %v3042_v6, %v3074_v10  ;;  %v3244_v11 = vsel %vm3177_vm12, %v3223_v53, 0.0  ;;  %v3191_v28 = vsel %vm3177_vm12, %v3087_v60, 0.0  ;;  %v1908_v27 = vpop.f32.mrb[15].mxu1  ;;  %v3246_v50 = vsel %vm3177_vm12, %v3224_v18, 0.0 }
 0x1b3   : > { %v3703_v20 = vpack.c.bf16 %v3090_v36, %v3090_v36  ;;  %v3088_v8 = vsel %vm3056_vm5, %v3040_v39, %v3072_v26  ;;  %v3245_v13 = vadd.f32 %v3244_v11, %v3243_v45  ;;  %v3192_v19 = vadd.f32 %v3191_v28, %v3190_v32 }
 0x1b4   : > { %v3701_v44 = vpack.c.bf16 %v3088_v8, %v3088_v8  ;;  %v3193_v33 = vsel %vm3177_vm12, %v3088_v8, 0.0  ;;  %v3225_v22 = vmul.f32 %v3088_v8, %v3088_v8  ;;  %v3091_v43 = vsel %vm3059_vm6, %v3043_v52, %v3075_v25 }
 0x1b5   : > { %3171 = vst.msk [vmem:[%s5111_s10 + $0x28] sm:$0xf] %vm3160_vm11, %v3703_v20  ;;  %v3194_v37 = vadd.f32 %v3193_v33, %v3192_v19  ;;  %v3247_v4 = vadd.f32 %v3246_v50, %v3245_v13  ;;  %v3704_v14 = vpack.c.bf16 %v3091_v43, %v3091_v43  ;;  %vm3057_vm7 = vcmp.ge.f32.partialorder %v3041_v23, 0.0 }
 0x1b6   : > { %3169 = vst.msk [vmem:[%s5111_s10 + $0x20] sm:$0xf] %vm3160_vm11, %v3701_v44  ;;  %v3248_v58 = vsel %vm3177_vm12, %v3225_v22, 0.0  ;;  %v3073_v57 = vmul.f32 0.01, %v3041_v23  ;;  %v3967_v30 = vadd.f32 %v2994_v5, %v1905_v17  ;;  %v3968_v62 = vadd.f32 %v3951_v29, %v3879_v59 }
 0x1b7   : > { %v3249_v15 = vadd.f32 %v3248_v58, %v3247_v4  ;;  %3172 = vst.msk [vmem:[%s5111_s10 + $0x2c] sm:$0xf] %vm3160_vm11, %v3704_v14  ;;  %v3197_v12 = vsel %vm3177_vm12, %v3090_v36, 0.0  ;;  %v3227_v61 = vmul.f32 %v3090_v36, %v3090_v36  ;;  %v3969_v34 = vadd.f32 %v2997_v48, %v1908_v27 }
 0x1b8   : > { %v3089_v55 = vsel %vm3057_vm7, %v3041_v23, %v3073_v57  ;;  %v3046_v9 = vadd.f32 %v3966_v46, %v5103_v51  ;;  %v3044_v31 = vadd.f32 %v3967_v30, %v5103_v51  ;;  %v3047_v60 = vadd.f32 %v3968_v62, %v5103_v51 }
 0x1b9   : > { %v3702_v2 = vpack.c.bf16 %v3089_v55, %v3089_v55  ;;  %v3195_v7 = vsel %vm3177_vm12, %v3089_v55, 0.0  ;;  %v3226_v3 = vmul.f32 %v3089_v55, %v3089_v55  ;;  %v3045_v0 = vadd.f32 %v3969_v34, %v5103_v51 }
 0x1ba   : > { %v3196_v24 = vadd.f32 %v3195_v7, %v3194_v37  ;;  %v3228_v56 = vmul.f32 %v3091_v43, %v3091_v43  ;;  %vm3062_vm8 = vcmp.ge.f32.partialorder %v3046_v9, 0.0  ;;  %v3078_v53 = vmul.f32 0.01, %v3046_v9 }
 0x1bb   : > { %3170 = vst.msk [vmem:[%s5111_s10 + $0x24] sm:$0xf] %vm3160_vm11, %v3702_v2  ;;  %v3250_v63 = vsel %vm3177_vm12, %v3226_v3, 0.0  ;;  %vm3060_vm9 = vcmp.ge.f32.partialorder %v3044_v31, 0.0  ;;  %v3076_v49 = vmul.f32 0.01, %v3044_v31 }
 0x1bc   : > { %v3198_v47 = vadd.f32 %v3197_v12, %v3196_v24  ;;  %v3251_v16 = vadd.f32 %v3250_v63, %v3249_v15  ;;  %v3252_v6 = vsel %vm3177_vm12, %v3227_v61, 0.0  ;;  %v3094_v39 = vsel %vm3062_vm8, %v3046_v9, %v3078_v53 }
 0x1bd   : > { %vm3063_vm10 = vcmp.ge.f32.partialorder %v3047_v60, 0.0  ;;  %v3079_v52 = vmul.f32 0.01, %v3047_v60  ;;  %v3199_v42 = vsel %vm3177_vm12, %v3091_v43, 0.0  ;;  %v3707_v18 = vpack.c.bf16 %v3094_v39, %v3094_v39 }
 0x1be   : > { %v3253_v51 = vadd.f32 %v3252_v6, %v3251_v16  ;;  %vm3061_vm13 = vcmp.ge.f32.partialorder %v3045_v0, 0.0  ;;  %v3092_v21 = vsel %vm3060_vm9, %v3044_v31, %v3076_v49  ;;  %v3200_v38 = vadd.f32 %v3199_v42, %v3198_v47 }
 0x1bf   : > { %v3095_v40 = vsel %vm3063_vm10, %v3047_v60, %v3079_v52  ;;  %v3077_v41 = vmul.f32 0.01, %v3045_v0  ;;  %v3254_v5 = vsel %vm3177_vm12, %v3228_v56, 0.0  ;;  %3175 = vst.msk [vmem:[%s5111_s10 + $0x38] sm:$0xf] %vm3160_vm11, %v3707_v18  ;;  %v3705_v1 = vpack.c.bf16 %v3092_v21, %v3092_v21 }
 0x1c0   : > { %v3201_v10 = vsel %vm3177_vm12, %v3092_v21, 0.0  ;;  %v3229_v17 = vmul.f32 %v3092_v21, %v3092_v21  ;;  %v3255_v54 = vadd.f32 %v3254_v5, %v3253_v51  ;;  %v3708_v26 = vpack.c.bf16 %v3095_v40, %v3095_v40 }
 0x1c1   : > { %v3202_v29 = vadd.f32 %v3201_v10, %v3200_v38  ;;  %v3231_v25 = vmul.f32 %v3094_v39, %v3094_v39  ;;  %3173 = vst.msk [vmem:[%s5111_s10 + $0x30] sm:$0xf] %vm3160_vm11, %v3705_v1  ;;  %v3093_v45 = vsel %vm3061_vm13, %v3045_v0, %v3077_v41  ;;  %v3205_v28 = vsel %vm3177_vm12, %v3094_v39, 0.0 }
 0x1c2   : > { %v3256_v32 = vsel %vm3177_vm12, %v3229_v17, 0.0  ;;  %3176 = vst.msk [vmem:[%s5111_s10 + $0x3c] sm:$0xf] %vm3160_vm11, %v3708_v26  ;;  %v3706_v35 = vpack.c.bf16 %v3093_v45, %v3093_v45  ;;  %v3203_v59 = vsel %vm3177_vm12, %v3093_v45, 0.0  ;;  %v3230_v48 = vmul.f32 %v3093_v45, %v3093_v45 }
 0x1c3   : > { %v3257_v36 = vadd.f32 %v3256_v32, %v3255_v54  ;;  %v3204_v11 = vadd.f32 %v3203_v59, %v3202_v29  ;;  %v3232_v20 = vmul.f32 %v3095_v40, %v3095_v40  ;;  %v3260_v44 = vsel %vm3177_vm12, %v3231_v25, 0.0 }
 0x1c4   : > { %3174 = vst.msk [vmem:[%s5111_s10 + $0x34] sm:$0xf] %vm3160_vm11, %v3706_v35  ;;  %v3258_v8 = vsel %vm3177_vm12, %v3230_v48, 0.0  ;;  %v3207_v19 = vsel %vm3177_vm12, %v3095_v40, 0.0  ;;  %vm3215_vm11 = vcmask 57344  }
 0x1c5   : > { %v3206_v27 = vadd.f32 %v3205_v28, %v3204_v11  ;;  %v3259_v13 = vadd.f32 %v3258_v8, %v3257_v36  ;;  %v3262_v22 = vsel %vm3177_vm12, %v3232_v20, 0.0 }
 0x1c7   : > { %v3208_v33 = vadd.f32 %v3207_v19, %v3206_v27  ;;  %v3261_v50 = vadd.f32 %v3260_v44, %v3259_v13 }
 0x1c9   : > { %v3209_v43 = vrot.slane %v3208_v33, 4  ;;  %v3263_v23 = vadd.f32 %v3262_v22, %v3261_v50 }
 0x1cb   : > { %v3210_v37 = vadd.f32 %v3209_v43, %v3208_v33  ;;  %v3264_v4 = vrot.slane %v3263_v23, 4 }
 0x1cd   : > { %v3211_v14 = vrot.slane %v3210_v37, 2  ;;  %v3265_v58 = vadd.f32 %v3264_v4, %v3263_v23 }
 0x1cf   : > { %v3212_v57 = vadd.f32 %v3211_v14, %v3210_v37  ;;  %v3266_v15 = vrot.slane %v3265_v58, 2 }
 0x1d1   : > { %v3213_v46 = vrot.slane %v3212_v57, 1  ;;  %v3267_v30 = vadd.f32 %v3266_v15, %v3265_v58 }
 0x1d3   : > { %v3214_v62 = vadd.f32 %v3213_v46, %v3212_v57  ;;  %v3268_v12 = vrot.slane %v3267_v30, 1 }
 0x1d5   : > { %3216 = vst.msk [vmem:[%s373_s14] sm:$0x1] %vm3215_vm11, %v3214_v62  ;;  %v3269_v61 = vadd.f32 %v3268_v12, %v3267_v30 }
 0x1d7   : > { %3270 = vst.msk [vmem:[%s373_s14 + $0x1] sm:$0x1] %vm3215_vm11, %v3269_v61 }
 0x1d8 PF: > { %s17_s25 = sadd.s32 1, %s4190_s25   ;;  %s5245_s21 = smov %s4182_s23 }
 0x1d9   : > { %p14_p9 = scmp.ge.s32.totalorder %s17_s25, 6   ;;  %s5246_s22 = smov %s4186_s24 }
 0x1da   : > { %s5247_s23 = smov %s5250_s4  ;;  %s5248_s24 = smov %s5254_s26 }
 0x1db   :  { %16 = sbr.rel (!%p14_p9) target bundleno = 3 (0x3), region = 96 }

</bundles_post_ra>
